<compile_context>
chip_gen: v7x
topology: tpu7x:2x2x1
jax: 0.10.0
libtpu: 0.0.40
codegen_flags: <defaults>
</compile_context>

<pallas_src>
import jax
import jax.numpy as jnp
import numpy as np
from jax import lax
from jax.experimental import pallas as pl
from jax.experimental.pallas import tpu as pltpu

MISSING_VALUE = -1.0


# ----------------------------------------------------------------------------
# Kernel 1: fused 2-layer GraphConvolution (+bias+ReLU) + hoisted GRU input
#           projection, tiled over the time-major (t, b) axis.
# ----------------------------------------------------------------------------
def gcn_gates_kernel(x_ref, abd_ref, w1_ref, b1_ref, w2_ref, b2_ref,
                     wi_ref, bi_ref, g_ref):
    x = x_ref[...]                                    # (rows, F), rows = bt_tile * N
    xm = jnp.where(x == MISSING_VALUE, 0.0, x)        # missing-value mask (exact f32 compare)

    abd = abd_ref[...]                                # (rows, rows) block-diag normalized adj

    # ----- GC layer 1: relu( A_bd @ (Xm @ W1) + b1 )  -- two wide 2-D MXU matmuls -----
    s1 = jnp.dot(xm, w1_ref[...], preferred_element_type=jnp.float32)
    h1 = jnp.dot(abd, s1, preferred_element_type=jnp.float32) + b1_ref[...]
    h1 = jnp.maximum(h1, 0.0)

    # ----- GC layer 2 (post-ReLU values are >= 0, so the 2nd missing-value mask is a no-op) -----
    s2 = jnp.dot(h1, w2_ref[...], preferred_element_type=jnp.float32)
    h2 = jnp.dot(abd, s2, preferred_element_type=jnp.float32) + b2_ref[...]
    h2 = jnp.maximum(h2, 0.0)

    # ----- hoisted GRU input projections, one per gate (leading gate axis: no lane slicing) -----
    g_ref[0, :, :] = jnp.dot(h2, wi_ref[0], preferred_element_type=jnp.float32) + bi_ref[0]
    g_ref[1, :, :] = jnp.dot(h2, wi_ref[1], preferred_element_type=jnp.float32) + bi_ref[1]
    g_ref[2, :, :] = jnp.dot(h2, wi_ref[2], preferred_element_type=jnp.float32) + bi_ref[2]


def run_gcn_gates(x2d, adj_bd, w1, b1, w2, b2, w_i, b_i, *,
                  rows_per_block, num_blocks):
    R, F = x2d.shape
    H = w1.shape[1]
    return pl.pallas_call(
        gcn_gates_kernel,
        out_shape=jax.ShapeDtypeStruct((3, R, H), jnp.float32),
        grid=(num_blocks,),
        in_specs=[
            pl.BlockSpec((rows_per_block, F), lambda i: (i, 0)),              # x rows (t,b,n)
            pl.BlockSpec((rows_per_block, rows_per_block), lambda i: (0, 0)), # block-diag adj (resident)
            pl.BlockSpec((F, H), lambda i: (0, 0)),
            pl.BlockSpec((1, H), lambda i: (0, 0)),
            pl.BlockSpec((H, H), lambda i: (0, 0)),
            pl.BlockSpec((1, H), lambda i: (0, 0)),
            pl.BlockSpec((3, H, H), lambda i: (0, 0, 0)),
            pl.BlockSpec((3, 1, H), lambda i: (0, 0, 0)),
        ],
        out_specs=pl.BlockSpec((3, rows_per_block, H), lambda i: (0, i, 0)),
        compiler_params=pltpu.CompilerParams(
            dimension_semantics=("parallel",)),        # independent blocks -> megacore on v7x
    )(x2d, adj_bd, w1, b1, w2, b2, w_i, b_i)


# ----------------------------------------------------------------------------
# Kernel 2: GRU recurrence (input projections precomputed) as an in-kernel
#           unrolled fori_loop over T, + fc_out applied once at the end from
#           VMEM-buffered hidden states.
# ----------------------------------------------------------------------------
def gru_fc_kernel(g_ref, wh_ref, bh_ref, wfc_ref, bfc_ref, o_ref, hs_scr):
    _, T, bn, H = g_ref.shape
    O = wfc_ref.shape[1]

    def step(t, h):
        # recurrent projections, one per gate (no lane slicing inside the serial loop)
        hr = jnp.dot(h, wh_ref[0], preferred_element_type=jnp.float32) + bh_ref[0]
        hz = jnp.dot(h, wh_ref[1], preferred_element_type=jnp.float32) + bh_ref[1]
        hn = jnp.dot(h, wh_ref[2], preferred_element_type=jnp.float32) + bh_ref[2]
        r = jax.nn.sigmoid(g_ref[0, t, :, :] + hr)
        z = jax.nn.sigmoid(g_ref[1, t, :, :] + hz)
        n = jnp.tanh(g_ref[2, t, :, :] + r * hn)
        h_new = (1.0 - z) * n + z * h
        hs_scr[t, :, :] = h_new                        # buffer hidden state in VMEM
        return h_new

    h0 = jnp.zeros((bn, H), jnp.float32)
    lax.fori_loop(0, T, step, h0, unroll=True)         # short fixed T -> unroll for LLO visibility

    # deferred fc_out: one (T*bn, H) @ (H, O) matmul + a single store
    hs = hs_scr[...].reshape(T * bn, H)
    y = jnp.dot(hs, wfc_ref[...], preferred_element_type=jnp.float32) + bfc_ref[...]
    o_ref[...] = y.reshape(T, bn, O)


def run_gru_fc(gates, w_h, b_h, wfc, bfc, *, bn_block):
    _, T, BN, H = gates.shape
    O = wfc.shape[1]
    assert BN % bn_block == 0
    nb = BN // bn_block
    return pl.pallas_call(
        gru_fc_kernel,
        out_shape=jax.ShapeDtypeStruct((T, BN, O), jnp.float32),
        grid=(nb,),
        in_specs=[
            pl.BlockSpec((3, T, bn_block, H), lambda j: (0, 0, j, 0)),  # whole gates slab per block
            pl.BlockSpec((3, H, H), lambda j: (0, 0, 0)),
            pl.BlockSpec((3, 1, H), lambda j: (0, 0, 0)),
            pl.BlockSpec((H, O), lambda j: (0, 0)),
            pl.BlockSpec((1, O), lambda j: (0, 0)),
        ],
        out_specs=pl.BlockSpec((T, bn_block, O), lambda j: (0, j, 0)),
        scratch_shapes=[
            pltpu.VMEM((T, bn_block, H), jnp.float32),  # all hidden states for deferred fc_out
        ],
        compiler_params=pltpu.CompilerParams(
            dimension_semantics=("parallel",)),         # nb >= 2 -> both TCs busy on v7x
    )(gates, w_h, b_h, wfc, bfc)


# ----------------------------------------------------------------------------
# Tiling heuristics (sized so double-buffered blocks stay far below the 32 MiB
# scoped-VMEM default and also fit v7x's 64 MiB physical VMEM).
# ----------------------------------------------------------------------------
def _pick_bt_tile(BT, N, max_rows=512):
    """Largest divisor of BT with bt*N <= max_rows, bt*N % 8 == 0, preferring >= 2 blocks."""
    cands = [d for d in range(1, BT + 1)
             if BT % d == 0 and d * N <= max_rows and (d * N) % 8 == 0]
    two_plus = [d for d in cands if BT // d >= 2]
    if two_plus:
        return max(two_plus)
    if cands:
        return max(cands)
    return BT                                  # single full block (always a legal BlockSpec)


def _pick_bn_block(BN, max_rows=512):
    """Largest multiple of 8 dividing BN (<= max_rows), preferring >= 2 blocks for megacore."""
    cands = [d for d in range(8, BN + 1, 8) if BN % d == 0 and d <= max_rows]
    if not cands:
        return BN
    two_plus = [d for d in cands if BN // d >= 2]
    return max(two_plus) if two_plus else max(cands)


# ----------------------------------------------------------------------------
# Glue: adjacency normalization + parameter prep + layout plumbing
# ----------------------------------------------------------------------------
def normalize_adj(adj):
    N = adj.shape[0]
    a = adj + jnp.eye(N, dtype=adj.dtype)
    rowsum = a.sum(axis=1)
    d_inv_sqrt = jnp.power(rowsum, -0.5)
    d_inv_sqrt = jnp.where(jnp.isinf(d_inv_sqrt), 0.0, d_inv_sqrt)
    d = jnp.diag(d_inv_sqrt)
    return d @ a @ d


def prepare_params(params):
    """Hoisted out of the jitted forward: stack GRU weights/biases per gate once."""
    return {
        "W_gc1": params["W_gc1"], "b_gc1": params["b_gc1"],
        "W_gc2": params["W_gc2"], "b_gc2": params["b_gc2"],
        "W_i": jnp.stack([params["Wir"], params["Wiz"], params["Win"]], axis=0),  # (3,H,H)
        "b_i": jnp.stack([params["bir"], params["biz"], params["bin"]], axis=0),  # (3,1,H)
        "W_h": jnp.stack([params["Whr"], params["Whz"], params["Whn"]], axis=0),  # (3,H,H)
        "b_h": jnp.stack([params["bhr"], params["bhz"], params["bhn"]], axis=0),  # (3,1,H)
        "Wfc": params["Wfc"], "bfc": params["bfc"],
    }


@jax.jit
def temporal_gcn_forward(x, adj, prep):
    """x: [B, N, T, F] (PyTorch convention). Returns [B, N, T, output_dim]."""
    B, N, T, F = x.shape
    H = prep["W_gc1"].shape[1]
    O = prep["Wfc"].shape[1]

    BT = B * T
    bt_tile = _pick_bt_tile(BT, N)
    rows_per_block = bt_tile * N
    num_blocks = BT // bt_tile

    adj_n = normalize_adj(adj)
    # Block-diagonal normalized adjacency: applies adj_n independently to each of the
    # bt_tile graph slices in a block with ONE wide 2-D MXU matmul (no (bt,N,N)
    # broadcast, no per-slice tiny batched matmuls).  Tiny: (bt*N)^2 * 4 B <= 1 MiB.
    adj_bd = jnp.kron(jnp.eye(bt_tile, dtype=adj_n.dtype), adj_n)

    # Time-major row order (t, b, n): the gates come out of kernel 1 already time-major,
    # so no HBM-round-trip transpose of the large gates tensor is needed.
    x2d = jnp.transpose(x, (2, 0, 1, 3)).reshape(BT * N, F)

    gates = run_gcn_gates(
        x2d, adj_bd,
        prep["W_gc1"], prep["b_gc1"],
        prep["W_gc2"], prep["b_gc2"],
        prep["W_i"], prep["b_i"],
        rows_per_block=rows_per_block, num_blocks=num_blocks)    # (3, T*B*N, H)
    gates = gates.reshape(3, T, B * N, H)                        # free (leading-dim) reshape

    bn_block = _pick_bn_block(B * N)
    out_t = run_gru_fc(gates, prep["W_h"], prep["b_h"],
                       prep["Wfc"], prep["bfc"], bn_block=bn_block)  # (T, B*N, O)

    return out_t.reshape(T, B, N, O).transpose(1, 2, 0, 3)       # [B, N, T, O] (tiny output)


# ----------------------------------------------------------------------------
# Pure-numpy (float64) reference mirroring the PyTorch forward (eval, mask=None)
# ----------------------------------------------------------------------------
def reference_forward_np(x, adj, p):
    x = np.asarray(x, np.float64)
    adj = np.asarray(adj, np.float64)
    pp = {k: np.asarray(v, np.float64) for k, v in p.items()}
    B, N, T, F = x.shape
    H = pp["W_gc1"].shape[1]

    a = adj + np.eye(N)
    rowsum = a.sum(axis=1)
    d_inv_sqrt = np.power(rowsum, -0.5)
    d_inv_sqrt[np.isinf(d_inv_sqrt)] = 0.0
    adj_n = np.diag(d_inv_sqrt) @ a @ np.diag(d_inv_sqrt)

    def sigmoid(v):
        return 1.0 / (1.0 + np.exp(-v))

    def gc(xt, W, b):
        m = (xt != MISSING_VALUE).astype(np.float64)
        s = (xt * m) @ W
        out = np.einsum("ij,bjh->bih", adj_n, s) + b[0]
        return np.maximum(out, 0.0)

    feats = []
    for t in range(T):
        h = gc(x[:, :, t, :], pp["W_gc1"], pp["b_gc1"])
        h = gc(h, pp["W_gc2"], pp["b_gc2"])
        feats.append(h)
    tf_ = np.stack(feats, axis=2)                     # [B, N, T, H]

    seq = tf_.reshape(B * N, T, H)
    h = np.zeros((B * N, H))
    outs = []
    for t in range(T):
        xt = seq[:, t, :]
        r = sigmoid(xt @ pp["Wir"] + pp["bir"][0] + h @ pp["Whr"] + pp["bhr"][0])
        z = sigmoid(xt @ pp["Wiz"] + pp["biz"][0] + h @ pp["Whz"] + pp["bhz"][0])
        n = np.tanh(xt @ pp["Win"] + pp["bin"][0] + r * (h @ pp["Whn"] + pp["bhn"][0]))
        h = (1.0 - z) * n + z * h
        outs.append(h @ pp["Wfc"] + pp["bfc"][0])
    out = np.stack(outs, axis=0)                      # [T, B*N, O]
    return out.reshape(T, B, N, -1).transpose(1, 2, 0, 3)


# ----------------------------------------------------------------------------
# Deterministic parameter init (Glorot for GC, uniform(-1/sqrt(H),1/sqrt(H)) for GRU/fc)
# ----------------------------------------------------------------------------
def init_params(key, input_dim, hidden_dim, output_dim):
    ks = jax.random.split(key, 20)
    F, H, O = input_dim, hidden_dim, output_dim

    def xavier(k, fan_in, fan_out):
        bound = np.sqrt(6.0 / (fan_in + fan_out))
        return jax.random.uniform(k, (fan_in, fan_out), jnp.float32, -bound, bound)

    def uni(k, shape):
        bound = 1.0 / np.sqrt(H)
        return jax.random.uniform(k, shape, jnp.float32, -bound, bound)

    return {
        "W_gc1": xavier(ks[0], F, H), "b_gc1": jnp.zeros((1, H), jnp.float32),
        "W_gc2": xavier(ks[1], H, H), "b_gc2": jnp.zeros((1, H), jnp.float32),
        # GRU (single layer), stored transposed so activations are (x @ W)
        "Wir": uni(ks[2], (H, H)), "Wiz": uni(ks[3], (H, H)), "Win": uni(ks[4], (H, H)),
        "Whr": uni(ks[5], (H, H)), "Whz": uni(ks[6], (H, H)), "Whn": uni(ks[7], (H, H)),
        "bir": uni(ks[8], (1, H)), "biz": uni(ks[9], (1, H)), "bin": uni(ks[10], (1, H)),
        "bhr": uni(ks[11], (1, H)), "bhz": uni(ks[12], (1, H)), "bhn": uni(ks[13], (1, H)),
        "Wfc": uni(ks[14], (H, O)), "bfc": uni(ks[15], (1, O)),
    }


if __name__ == "__main__":
    B, N, T, F = 2, 16, 8, 4      # batch, num_nodes, seq_len, input_dim
    H, O = 32, 4                  # hidden_dim, output_dim

    key = jax.random.PRNGKey(0)
    k_x, k_adj, k_p = jax.random.split(key, 3)

    x = jax.random.normal(k_x, (B, N, T, F), jnp.float32)
    # inject a few "missing" entries to exercise the missing-value mask
    x = x.at[0, 0, 0, 0].set(MISSING_VALUE).at[1, 3, 2, 1].set(MISSING_VALUE)

    # symmetric binary adjacency, zero diagonal
    a = (jax.random.uniform(k_adj, (N, N)) > 0.7).astype(jnp.float32)
    adj = jnp.clip(a + a.T, 0.0, 1.0) * (1.0 - jnp.eye(N, dtype=jnp.float32))

    params = init_params(k_p, F, H, O)
    prep = prepare_params(params)       # GRU weight stacking hoisted out of the jitted forward

    out = temporal_gcn_forward(x, adj, prep)
    out = jax.block_until_ready(out)

    ref = reference_forward_np(x, adj, params)
    assert out.shape == (B, N, T, O), out.shape
    # tolerance accommodates the default (non-'highest') MXU f32 matmul precision
    # accumulated through the serial GRU recurrence
    np.testing.assert_allclose(np.asarray(out), ref, rtol=1e-2, atol=1e-2)

    print("KERNEL_OK")
</pallas_src>

<mosaic_0001>
module attributes {stable_mosaic.version = 11 : i64} {
  func.func @gcn_gates_kernel(%arg0: i32, %arg1: memref<128x4xf32, #tpu.memory_space<vmem>>, %arg2: memref<128x128xf32, #tpu.memory_space<vmem>>, %arg3: memref<4x32xf32, #tpu.memory_space<vmem>>, %arg4: memref<1x32xf32, #tpu.memory_space<vmem>>, %arg5: memref<32x32xf32, #tpu.memory_space<vmem>>, %arg6: memref<1x32xf32, #tpu.memory_space<vmem>>, %arg7: memref<3x32x32xf32, #tpu.memory_space<vmem>>, %arg8: memref<3x1x32xf32, #tpu.memory_space<vmem>>, %arg9: memref<3x128x32xf32, #tpu.memory_space<vmem>>) attributes {dimension_semantics = [#tpu.dimension_semantics<parallel>], iteration_bounds = array<i64: 2>, scalar_prefetch = 0 : i64, scratch_operands = 0 : i64, tpu.core_type = #tpu.core_type<tc>, window_params = [{transform_indices = @transform_0, window_bounds = array<i64: 128, 4>}, {pipeline_mode = #tpu.pipeline_mode<synchronous>, transform_indices = @transform_1, window_bounds = array<i64: 128, 128>}, {pipeline_mode = #tpu.pipeline_mode<synchronous>, transform_indices = @transform_2, window_bounds = array<i64: 4, 32>}, {pipeline_mode = #tpu.pipeline_mode<synchronous>, transform_indices = @transform_3, window_bounds = array<i64: 1, 32>}, {pipeline_mode = #tpu.pipeline_mode<synchronous>, transform_indices = @transform_4, window_bounds = array<i64: 32, 32>}, {pipeline_mode = #tpu.pipeline_mode<synchronous>, transform_indices = @transform_5, window_bounds = array<i64: 1, 32>}, {pipeline_mode = #tpu.pipeline_mode<synchronous>, transform_indices = @transform_6, window_bounds = array<i64: 3, 32, 32>}, {pipeline_mode = #tpu.pipeline_mode<synchronous>, transform_indices = @transform_7, window_bounds = array<i64: 3, 1, 32>}, {transform_indices = @transform_8, window_bounds = array<i64: 3, 128, 32>}]} {
    %c0 = arith.constant 0 : index
    %c0_0 = arith.constant 0 : index
    %0 = vector.load %arg1[%c0, %c0_0] : memref<128x4xf32, #tpu.memory_space<vmem>>, vector<128x4xf32>
    %cst = arith.constant -1.000000e+00 : f32
    %1 = vector.broadcast %cst : f32 to vector<128x4xf32>
    %2 = arith.cmpf oeq, %0, %1 : vector<128x4xf32>
    %cst_1 = arith.constant 0.000000e+00 : f32
    %3 = vector.broadcast %cst_1 : f32 to vector<128x4xf32>
    %4 = arith.select %2, %3, %0 : vector<128x4xi1>, vector<128x4xf32>
    %c0_2 = arith.constant 0 : index
    %c0_3 = arith.constant 0 : index
    %5 = vector.load %arg2[%c0_2, %c0_3] : memref<128x128xf32, #tpu.memory_space<vmem>>, vector<128x128xf32>
    %c0_4 = arith.constant 0 : index
    %c0_5 = arith.constant 0 : index
    %6 = vector.load %arg3[%c0_4, %c0_5] : memref<4x32xf32, #tpu.memory_space<vmem>>, vector<4x32xf32>
    %cst_6 = arith.constant dense<0.000000e+00> : vector<128x32xf32>
    %7 = tpu.matmul %4, %6, %cst_6 {dimension_numbers = #tpu.dot_dimension_numbers<[1], [0], [0], [1], [0, 0, 1, 1], [], []>} : vector<128x4xf32>, vector<4x32xf32>, vector<128x32xf32> -> vector<128x32xf32>
    %cst_7 = arith.constant dense<0.000000e+00> : vector<128x32xf32>
    %8 = tpu.matmul %5, %7, %cst_7 {dimension_numbers = #tpu.dot_dimension_numbers<[1], [0], [0], [1], [0, 0, 1, 1], [], []>} : vector<128x128xf32>, vector<128x32xf32>, vector<128x32xf32> -> vector<128x32xf32>
    %c0_8 = arith.constant 0 : index
    %c0_9 = arith.constant 0 : index
    %9 = vector.load %arg4[%c0_8, %c0_9] : memref<1x32xf32, #tpu.memory_space<vmem>>, vector<1x32xf32>
    %10 = vector.broadcast %9 : vector<1x32xf32> to vector<128x32xf32>
    %11 = arith.addf %8, %10 : vector<128x32xf32>
    %cst_10 = arith.constant 0.000000e+00 : f32
    %12 = vector.broadcast %cst_10 : f32 to vector<128x32xf32>
    %13 = arith.maximumf %11, %12 : vector<128x32xf32>
    %c0_11 = arith.constant 0 : index
    %c0_12 = arith.constant 0 : index
    %14 = vector.load %arg5[%c0_11, %c0_12] : memref<32x32xf32, #tpu.memory_space<vmem>>, vector<32x32xf32>
    %cst_13 = arith.constant dense<0.000000e+00> : vector<128x32xf32>
    %15 = tpu.matmul %13, %14, %cst_13 {dimension_numbers = #tpu.dot_dimension_numbers<[1], [0], [0], [1], [0, 0, 1, 1], [], []>} : vector<128x32xf32>, vector<32x32xf32>, vector<128x32xf32> -> vector<128x32xf32>
    %cst_14 = arith.constant dense<0.000000e+00> : vector<128x32xf32>
    %16 = tpu.matmul %5, %15, %cst_14 {dimension_numbers = #tpu.dot_dimension_numbers<[1], [0], [0], [1], [0, 0, 1, 1], [], []>} : vector<128x128xf32>, vector<128x32xf32>, vector<128x32xf32> -> vector<128x32xf32>
    %c0_15 = arith.constant 0 : index
    %c0_16 = arith.constant 0 : index
    %17 = vector.load %arg6[%c0_15, %c0_16] : memref<1x32xf32, #tpu.memory_space<vmem>>, vector<1x32xf32>
    %18 = vector.broadcast %17 : vector<1x32xf32> to vector<128x32xf32>
    %19 = arith.addf %16, %18 : vector<128x32xf32>
    %cst_17 = arith.constant 0.000000e+00 : f32
    %20 = vector.broadcast %cst_17 : f32 to vector<128x32xf32>
    %21 = arith.maximumf %19, %20 : vector<128x32xf32>
    %c0_18 = arith.constant 0 : index
    %c0_19 = arith.constant 0 : index
    %c0_20 = arith.constant 0 : index
    %22 = vector.load %arg7[%c0_18, %c0_19, %c0_20] : memref<3x32x32xf32, #tpu.memory_space<vmem>>, vector<1x32x32xf32>
    %23 = vector.shape_cast %22 : vector<1x32x32xf32> to vector<32x32xf32>
    %cst_21 = arith.constant dense<0.000000e+00> : vector<128x32xf32>
    %24 = tpu.matmul %21, %23, %cst_21 {dimension_numbers = #tpu.dot_dimension_numbers<[1], [0], [0], [1], [0, 0, 1, 1], [], []>} : vector<128x32xf32>, vector<32x32xf32>, vector<128x32xf32> -> vector<128x32xf32>
    %c0_22 = arith.constant 0 : index
    %c0_23 = arith.constant 0 : index
    %c0_24 = arith.constant 0 : index
    %25 = vector.load %arg8[%c0_22, %c0_23, %c0_24] : memref<3x1x32xf32, #tpu.memory_space<vmem>>, vector<1x1x32xf32>
    %26 = vector.shape_cast %25 : vector<1x1x32xf32> to vector<1x32xf32>
    %27 = vector.broadcast %26 : vector<1x32xf32> to vector<128x32xf32>
    %28 = arith.addf %24, %27 : vector<128x32xf32>
    %c0_25 = arith.constant 0 : index
    %c0_26 = arith.constant 0 : index
    %c0_27 = arith.constant 0 : index
    %29 = vector.load %arg9[%c0_25, %c0_26, %c0_27] : memref<3x128x32xf32, #tpu.memory_space<vmem>>, vector<1x128x32xf32>
    %30 = vector.shape_cast %29 : vector<1x128x32xf32> to vector<128x32xf32>
    %31 = vector.shape_cast %28 : vector<128x32xf32> to vector<1x128x32xf32>
    tpu.vector_store %arg9[%c0_25, %c0_26, %c0_27], %31 {strides = array<i32>} : memref<3x128x32xf32, #tpu.memory_space<vmem>>, vector<1x128x32xf32>,
    %c1 = arith.constant 1 : index
    %c0_28 = arith.constant 0 : index
    %c0_29 = arith.constant 0 : index
    %32 = vector.load %arg7[%c1, %c0_28, %c0_29] : memref<3x32x32xf32, #tpu.memory_space<vmem>>, vector<1x32x32xf32>
    %33 = vector.shape_cast %32 : vector<1x32x32xf32> to vector<32x32xf32>
    %cst_30 = arith.constant dense<0.000000e+00> : vector<128x32xf32>
    %34 = tpu.matmul %21, %33, %cst_30 {dimension_numbers = #tpu.dot_dimension_numbers<[1], [0], [0], [1], [0, 0, 1, 1], [], []>} : vector<128x32xf32>, vector<32x32xf32>, vector<128x32xf32> -> vector<128x32xf32>
    %c1_31 = arith.constant 1 : index
    %c0_32 = arith.constant 0 : index
    %c0_33 = arith.constant 0 : index
    %35 = vector.load %arg8[%c1_31, %c0_32, %c0_33] : memref<3x1x32xf32, #tpu.memory_space<vmem>>, vector<1x1x32xf32>
    %36 = vector.shape_cast %35 : vector<1x1x32xf32> to vector<1x32xf32>
    %37 = vector.broadcast %36 : vector<1x32xf32> to vector<128x32xf32>
    %38 = arith.addf %34, %37 : vector<128x32xf32>
    %c1_34 = arith.constant 1 : index
    %c0_35 = arith.constant 0 : index
    %c0_36 = arith.constant 0 : index
    %39 = vector.load %arg9[%c1_34, %c0_35, %c0_36] : memref<3x128x32xf32, #tpu.memory_space<vmem>>, vector<1x128x32xf32>
    %40 = vector.shape_cast %39 : vector<1x128x32xf32> to vector<128x32xf32>
    %41 = vector.shape_cast %38 : vector<128x32xf32> to vector<1x128x32xf32>
    tpu.vector_store %arg9[%c1_34, %c0_35, %c0_36], %41 {strides = array<i32>} : memref<3x128x32xf32, #tpu.memory_space<vmem>>, vector<1x128x32xf32>,
    %c2 = arith.constant 2 : index
    %c0_37 = arith.constant 0 : index
    %c0_38 = arith.constant 0 : index
    %42 = vector.load %arg7[%c2, %c0_37, %c0_38] : memref<3x32x32xf32, #tpu.memory_space<vmem>>, vector<1x32x32xf32>
    %43 = vector.shape_cast %42 : vector<1x32x32xf32> to vector<32x32xf32>
    %cst_39 = arith.constant dense<0.000000e+00> : vector<128x32xf32>
    %44 = tpu.matmul %21, %43, %cst_39 {dimension_numbers = #tpu.dot_dimension_numbers<[1], [0], [0], [1], [0, 0, 1, 1], [], []>} : vector<128x32xf32>, vector<32x32xf32>, vector<128x32xf32> -> vector<128x32xf32>
    %c2_40 = arith.constant 2 : index
    %c0_41 = arith.constant 0 : index
    %c0_42 = arith.constant 0 : index
    %45 = vector.load %arg8[%c2_40, %c0_41, %c0_42] : memref<3x1x32xf32, #tpu.memory_space<vmem>>, vector<1x1x32xf32>
    %46 = vector.shape_cast %45 : vector<1x1x32xf32> to vector<1x32xf32>
    %47 = vector.broadcast %46 : vector<1x32xf32> to vector<128x32xf32>
    %48 = arith.addf %44, %47 : vector<128x32xf32>
    %c2_43 = arith.constant 2 : index
    %c0_44 = arith.constant 0 : index
    %c0_45 = arith.constant 0 : index
    %49 = vector.load %arg9[%c2_43, %c0_44, %c0_45] : memref<3x128x32xf32, #tpu.memory_space<vmem>>, vector<1x128x32xf32>
    %50 = vector.shape_cast %49 : vector<1x128x32xf32> to vector<128x32xf32>
    %51 = vector.shape_cast %48 : vector<128x32xf32> to vector<1x128x32xf32>
    tpu.vector_store %arg9[%c2_43, %c0_44, %c0_45], %51 {strides = array<i32>} : memref<3x128x32xf32, #tpu.memory_space<vmem>>, vector<1x128x32xf32>,
    return
  }
  func.func @transform_0(%arg0: i32) -> (i32, i32) {
    %c0_i32 = arith.constant 0 : i32
    %c0_i32_0 = arith.constant 0 : i32
    return %arg0, %c0_i32 : i32, i32
  }
  func.func @transform_1(%arg0: i32) -> (i32, i32) {
    %c0_i32 = arith.constant 0 : i32
    %c0_i32_0 = arith.constant 0 : i32
    %c0_i32_1 = arith.constant 0 : i32
    return %c0_i32, %c0_i32_0 : i32, i32
  }
  func.func @transform_2(%arg0: i32) -> (i32, i32) {
    %c0_i32 = arith.constant 0 : i32
    %c0_i32_0 = arith.constant 0 : i32
    %c0_i32_1 = arith.constant 0 : i32
    return %c0_i32, %c0_i32_0 : i32, i32
  }
  func.func @transform_3(%arg0: i32) -> (i32, i32) {
    %c0_i32 = arith.constant 0 : i32
    %c0_i32_0 = arith.constant 0 : i32
    %c0_i32_1 = arith.constant 0 : i32
    return %c0_i32, %c0_i32_0 : i32, i32
  }
  func.func @transform_4(%arg0: i32) -> (i32, i32) {
    %c0_i32 = arith.constant 0 : i32
    %c0_i32_0 = arith.constant 0 : i32
    %c0_i32_1 = arith.constant 0 : i32
    return %c0_i32, %c0_i32_0 : i32, i32
  }
  func.func @transform_5(%arg0: i32) -> (i32, i32) {
    %c0_i32 = arith.constant 0 : i32
    %c0_i32_0 = arith.constant 0 : i32
    %c0_i32_1 = arith.constant 0 : i32
    return %c0_i32, %c0_i32_0 : i32, i32
  }
  func.func @transform_6(%arg0: i32) -> (i32, i32, i32) {
    %c0_i32 = arith.constant 0 : i32
    %c0_i32_0 = arith.constant 0 : i32
    %c0_i32_1 = arith.constant 0 : i32
    %c0_i32_2 = arith.constant 0 : i32
    return %c0_i32, %c0_i32_0, %c0_i32_1 : i32, i32, i32
  }
  func.func @transform_7(%arg0: i32) -> (i32, i32, i32) {
    %c0_i32 = arith.constant 0 : i32
    %c0_i32_0 = arith.constant 0 : i32
    %c0_i32_1 = arith.constant 0 : i32
    %c0_i32_2 = arith.constant 0 : i32
    return %c0_i32, %c0_i32_0, %c0_i32_1 : i32, i32, i32
  }
  func.func @transform_8(%arg0: i32) -> (i32, i32, i32) {
    %c0_i32 = arith.constant 0 : i32
    %c0_i32_0 = arith.constant 0 : i32
    %c0_i32_1 = arith.constant 0 : i32
    return %c0_i32, %arg0, %c0_i32_0 : i32, i32, i32
  }
}

module attributes {stable_mosaic.version = 11 : i64} {
  func.func @gru_fc_kernel(%arg0: i32, %arg1: memref<3x8x16x32xf32, #tpu.memory_space<vmem>>, %arg2: memref<3x32x32xf32, #tpu.memory_space<vmem>>, %arg3: memref<3x1x32xf32, #tpu.memory_space<vmem>>, %arg4: memref<32x4xf32, #tpu.memory_space<vmem>>, %arg5: memref<1x4xf32, #tpu.memory_space<vmem>>, %arg6: memref<8x16x4xf32, #tpu.memory_space<vmem>>, %arg7: memref<8x16x32xf32, #tpu.memory_space<vmem>>) attributes {dimension_semantics = [#tpu.dimension_semantics<parallel>], iteration_bounds = array<i64: 2>, scalar_prefetch = 0 : i64, scratch_operands = 1 : i64, tpu.core_type = #tpu.core_type<tc>, window_params = [{transform_indices = @transform_0, window_bounds = array<i64: 3, 8, 16, 32>}, {pipeline_mode = #tpu.pipeline_mode<synchronous>, transform_indices = @transform_1, window_bounds = array<i64: 3, 32, 32>}, {pipeline_mode = #tpu.pipeline_mode<synchronous>, transform_indices = @transform_2, window_bounds = array<i64: 3, 1, 32>}, {pipeline_mode = #tpu.pipeline_mode<synchronous>, transform_indices = @transform_3, window_bounds = array<i64: 32, 4>}, {pipeline_mode = #tpu.pipeline_mode<synchronous>, transform_indices = @transform_4, window_bounds = array<i64: 1, 4>}, {transform_indices = @transform_5, window_bounds = array<i64: 8, 16, 4>}]} {
    %cst = arith.constant 0.000000e+00 : f32
    %0 = vector.broadcast %cst : f32 to vector<16x32xf32>
    %c0_i32 = arith.constant 0 : i32
    %c0 = arith.constant 0 : index
    %c0_0 = arith.constant 0 : index
    %c0_1 = arith.constant 0 : index
    %1 = vector.load %arg2[%c0, %c0_0, %c0_1] : memref<3x32x32xf32, #tpu.memory_space<vmem>>, vector<1x32x32xf32>
    %2 = vector.shape_cast %1 : vector<1x32x32xf32> to vector<32x32xf32>
    %cst_2 = arith.constant dense<0.000000e+00> : vector<16x32xf32>
    %3 = tpu.matmul %0, %2, %cst_2 {dimension_numbers = #tpu.dot_dimension_numbers<[1], [0], [0], [1], [0, 0, 1, 1], [], []>} : vector<16x32xf32>, vector<32x32xf32>, vector<16x32xf32> -> vector<16x32xf32>
    %c0_3 = arith.constant 0 : index
    %c0_4 = arith.constant 0 : index
    %c0_5 = arith.constant 0 : index
    %4 = vector.load %arg3[%c0_3, %c0_4, %c0_5] : memref<3x1x32xf32, #tpu.memory_space<vmem>>, vector<1x1x32xf32>
    %5 = vector.shape_cast %4 : vector<1x1x32xf32> to vector<1x32xf32>
    %6 = vector.broadcast %5 : vector<1x32xf32> to vector<16x32xf32>
    %7 = arith.addf %3, %6 : vector<16x32xf32>
    %c1 = arith.constant 1 : index
    %c0_6 = arith.constant 0 : index
    %c0_7 = arith.constant 0 : index
    %8 = vector.load %arg2[%c1, %c0_6, %c0_7] : memref<3x32x32xf32, #tpu.memory_space<vmem>>, vector<1x32x32xf32>
    %9 = vector.shape_cast %8 : vector<1x32x32xf32> to vector<32x32xf32>
    %cst_8 = arith.constant dense<0.000000e+00> : vector<16x32xf32>
    %10 = tpu.matmul %0, %9, %cst_8 {dimension_numbers = #tpu.dot_dimension_numbers<[1], [0], [0], [1], [0, 0, 1, 1], [], []>} : vector<16x32xf32>, vector<32x32xf32>, vector<16x32xf32> -> vector<16x32xf32>
    %c1_9 = arith.constant 1 : index
    %c0_10 = arith.constant 0 : index
    %c0_11 = arith.constant 0 : index
    %11 = vector.load %arg3[%c1_9, %c0_10, %c0_11] : memref<3x1x32xf32, #tpu.memory_space<vmem>>, vector<1x1x32xf32>
    %12 = vector.shape_cast %11 : vector<1x1x32xf32> to vector<1x32xf32>
    %13 = vector.broadcast %12 : vector<1x32xf32> to vector<16x32xf32>
    %14 = arith.addf %10, %13 : vector<16x32xf32>
    %c2 = arith.constant 2 : index
    %c0_12 = arith.constant 0 : index
    %c0_13 = arith.constant 0 : index
    %15 = vector.load %arg2[%c2, %c0_12, %c0_13] : memref<3x32x32xf32, #tpu.memory_space<vmem>>, vector<1x32x32xf32>
    %16 = vector.shape_cast %15 : vector<1x32x32xf32> to vector<32x32xf32>
    %cst_14 = arith.constant dense<0.000000e+00> : vector<16x32xf32>
    %17 = tpu.matmul %0, %16, %cst_14 {dimension_numbers = #tpu.dot_dimension_numbers<[1], [0], [0], [1], [0, 0, 1, 1], [], []>} : vector<16x32xf32>, vector<32x32xf32>, vector<16x32xf32> -> vector<16x32xf32>
    %c2_15 = arith.constant 2 : index
    %c0_16 = arith.constant 0 : index
    %c0_17 = arith.constant 0 : index
    %18 = vector.load %arg3[%c2_15, %c0_16, %c0_17] : memref<3x1x32xf32, #tpu.memory_space<vmem>>, vector<1x1x32xf32>
    %19 = vector.shape_cast %18 : vector<1x1x32xf32> to vector<1x32xf32>
    %20 = vector.broadcast %19 : vector<1x32xf32> to vector<16x32xf32>
    %21 = arith.addf %17, %20 : vector<16x32xf32>
    %c0_18 = arith.constant 0 : index
    %22 = arith.index_cast %c0_i32 : i32 to index
    %c0_19 = arith.constant 0 : index
    %c0_20 = arith.constant 0 : index
    %23 = vector.load %arg1[%c0_18, %22, %c0_19, %c0_20] : memref<3x8x16x32xf32, #tpu.memory_space<vmem>>, vector<1x1x16x32xf32>
    %24 = vector.shape_cast %23 : vector<1x1x16x32xf32> to vector<16x32xf32>
    %25 = arith.addf %24, %7 : vector<16x32xf32>
    %26 = arith.negf %25 : vector<16x32xf32>
    %27 = math.exp %26 : vector<16x32xf32>
    %cst_21 = arith.constant 1.000000e+00 : f32
    %28 = vector.broadcast %cst_21 : f32 to vector<16x32xf32>
    %29 = arith.addf %28, %27 : vector<16x32xf32>
    %30 = arith.divf %28, %29 : vector<16x32xf32>
    %c1_22 = arith.constant 1 : index
    %31 = arith.index_cast %c0_i32 : i32 to index
    %c0_23 = arith.constant 0 : index
    %c0_24 = arith.constant 0 : index
    %32 = vector.load %arg1[%c1_22, %31, %c0_23, %c0_24] : memref<3x8x16x32xf32, #tpu.memory_space<vmem>>, vector<1x1x16x32xf32>
    %33 = vector.shape_cast %32 : vector<1x1x16x32xf32> to vector<16x32xf32>
    %34 = arith.addf %33, %14 : vector<16x32xf32>
    %35 = arith.negf %34 : vector<16x32xf32>
    %36 = math.exp %35 : vector<16x32xf32>
    %cst_25 = arith.constant 1.000000e+00 : f32
    %37 = vector.broadcast %cst_25 : f32 to vector<16x32xf32>
    %38 = arith.addf %37, %36 : vector<16x32xf32>
    %39 = arith.divf %37, %38 : vector<16x32xf32>
    %c2_26 = arith.constant 2 : index
    %40 = arith.index_cast %c0_i32 : i32 to index
    %c0_27 = arith.constant 0 : index
    %c0_28 = arith.constant 0 : index
    %41 = vector.load %arg1[%c2_26, %40, %c0_27, %c0_28] : memref<3x8x16x32xf32, #tpu.memory_space<vmem>>, vector<1x1x16x32xf32>
    %42 = vector.shape_cast %41 : vector<1x1x16x32xf32> to vector<16x32xf32>
    %43 = arith.mulf %30, %21 : vector<16x32xf32>
    %44 = arith.addf %42, %43 : vector<16x32xf32>
    %45 = math.tanh %44 : vector<16x32xf32>
    %cst_29 = arith.constant 1.000000e+00 : f32
    %46 = vector.broadcast %cst_29 : f32 to vector<16x32xf32>
    %47 = arith.subf %46, %39 : vector<16x32xf32>
    %48 = arith.mulf %47, %45 : vector<16x32xf32>
    %49 = arith.mulf %39, %0 : vector<16x32xf32>
    %50 = arith.addf %48, %49 : vector<16x32xf32>
    %51 = arith.index_cast %c0_i32 : i32 to index
    %c0_30 = arith.constant 0 : index
    %c0_31 = arith.constant 0 : index
    %52 = vector.load %arg7[%51, %c0_30, %c0_31] : memref<8x16x32xf32, #tpu.memory_space<vmem>>, vector<1x16x32xf32>
    %53 = vector.shape_cast %52 : vector<1x16x32xf32> to vector<16x32xf32>
    %54 = vector.shape_cast %50 : vector<16x32xf32> to vector<1x16x32xf32>
    tpu.vector_store %arg7[%51, %c0_30, %c0_31], %54 {strides = array<i32>} : memref<8x16x32xf32, #tpu.memory_space<vmem>>, vector<1x16x32xf32>,
    %c1_i32 = arith.constant 1 : i32
    %c0_32 = arith.constant 0 : index
    %c0_33 = arith.constant 0 : index
    %c0_34 = arith.constant 0 : index
    %55 = vector.load %arg2[%c0_32, %c0_33, %c0_34] : memref<3x32x32xf32, #tpu.memory_space<vmem>>, vector<1x32x32xf32>
    %56 = vector.shape_cast %55 : vector<1x32x32xf32> to vector<32x32xf32>
    %cst_35 = arith.constant dense<0.000000e+00> : vector<16x32xf32>
    %57 = tpu.matmul %50, %56, %cst_35 {dimension_numbers = #tpu.dot_dimension_numbers<[1], [0], [0], [1], [0, 0, 1, 1], [], []>} : vector<16x32xf32>, vector<32x32xf32>, vector<16x32xf32> -> vector<16x32xf32>
    %c0_36 = arith.constant 0 : index
    %c0_37 = arith.constant 0 : index
    %c0_38 = arith.constant 0 : index
    %58 = vector.load %arg3[%c0_36, %c0_37, %c0_38] : memref<3x1x32xf32, #tpu.memory_space<vmem>>, vector<1x1x32xf32>
    %59 = vector.shape_cast %58 : vector<1x1x32xf32> to vector<1x32xf32>
    %60 = vector.broadcast %59 : vector<1x32xf32> to vector<16x32xf32>
    %61 = arith.addf %57, %60 : vector<16x32xf32>
    %c1_39 = arith.constant 1 : index
    %c0_40 = arith.constant 0 : index
    %c0_41 = arith.constant 0 : index
    %62 = vector.load %arg2[%c1_39, %c0_40, %c0_41] : memref<3x32x32xf32, #tpu.memory_space<vmem>>, vector<1x32x32xf32>
    %63 = vector.shape_cast %62 : vector<1x32x32xf32> to vector<32x32xf32>
    %cst_42 = arith.constant dense<0.000000e+00> : vector<16x32xf32>
    %64 = tpu.matmul %50, %63, %cst_42 {dimension_numbers = #tpu.dot_dimension_numbers<[1], [0], [0], [1], [0, 0, 1, 1], [], []>} : vector<16x32xf32>, vector<32x32xf32>, vector<16x32xf32> -> vector<16x32xf32>
    %c1_43 = arith.constant 1 : index
    %c0_44 = arith.constant 0 : index
    %c0_45 = arith.constant 0 : index
    %65 = vector.load %arg3[%c1_43, %c0_44, %c0_45] : memref<3x1x32xf32, #tpu.memory_space<vmem>>, vector<1x1x32xf32>
    %66 = vector.shape_cast %65 : vector<1x1x32xf32> to vector<1x32xf32>
    %67 = vector.broadcast %66 : vector<1x32xf32> to vector<16x32xf32>
    %68 = arith.addf %64, %67 : vector<16x32xf32>
    %c2_46 = arith.constant 2 : index
    %c0_47 = arith.constant 0 : index
    %c0_48 = arith.constant 0 : index
    %69 = vector.load %arg2[%c2_46, %c0_47, %c0_48] : memref<3x32x32xf32, #tpu.memory_space<vmem>>, vector<1x32x32xf32>
    %70 = vector.shape_cast %69 : vector<1x32x32xf32> to vector<32x32xf32>
    %cst_49 = arith.constant dense<0.000000e+00> : vector<16x32xf32>
    %71 = tpu.matmul %50, %70, %cst_49 {dimension_numbers = #tpu.dot_dimension_numbers<[1], [0], [0], [1], [0, 0, 1, 1], [], []>} : vector<16x32xf32>, vector<32x32xf32>, vector<16x32xf32> -> vector<16x32xf32>
    %c2_50 = arith.constant 2 : index
    %c0_51 = arith.constant 0 : index
    %c0_52 = arith.constant 0 : index
    %72 = vector.load %arg3[%c2_50, %c0_51, %c0_52] : memref<3x1x32xf32, #tpu.memory_space<vmem>>, vector<1x1x32xf32>
    %73 = vector.shape_cast %72 : vector<1x1x32xf32> to vector<1x32xf32>
    %74 = vector.broadcast %73 : vector<1x32xf32> to vector<16x32xf32>
    %75 = arith.addf %71, %74 : vector<16x32xf32>
    %c0_53 = arith.constant 0 : index
    %76 = arith.index_cast %c1_i32 : i32 to index
    %c0_54 = arith.constant 0 : index
    %c0_55 = arith.constant 0 : index
    %77 = vector.load %arg1[%c0_53, %76, %c0_54, %c0_55] : memref<3x8x16x32xf32, #tpu.memory_space<vmem>>, vector<1x1x16x32xf32>
    %78 = vector.shape_cast %77 : vector<1x1x16x32xf32> to vector<16x32xf32>
    %79 = arith.addf %78, %61 : vector<16x32xf32>
    %80 = arith.negf %79 : vector<16x32xf32>
    %81 = math.exp %80 : vector<16x32xf32>
    %cst_56 = arith.constant 1.000000e+00 : f32
    %82 = vector.broadcast %cst_56 : f32 to vector<16x32xf32>
    %83 = arith.addf %82, %81 : vector<16x32xf32>
    %84 = arith.divf %82, %83 : vector<16x32xf32>
    %c1_57 = arith.constant 1 : index
    %85 = arith.index_cast %c1_i32 : i32 to index
    %c0_58 = arith.constant 0 : index
    %c0_59 = arith.constant 0 : index
    %86 = vector.load %arg1[%c1_57, %85, %c0_58, %c0_59] : memref<3x8x16x32xf32, #tpu.memory_space<vmem>>, vector<1x1x16x32xf32>
    %87 = vector.shape_cast %86 : vector<1x1x16x32xf32> to vector<16x32xf32>
    %88 = arith.addf %87, %68 : vector<16x32xf32>
    %89 = arith.negf %88 : vector<16x32xf32>
    %90 = math.exp %89 : vector<16x32xf32>
    %cst_60 = arith.constant 1.000000e+00 : f32
    %91 = vector.broadcast %cst_60 : f32 to vector<16x32xf32>
    %92 = arith.addf %91, %90 : vector<16x32xf32>
    %93 = arith.divf %91, %92 : vector<16x32xf32>
    %c2_61 = arith.constant 2 : index
    %94 = arith.index_cast %c1_i32 : i32 to index
    %c0_62 = arith.constant 0 : index
    %c0_63 = arith.constant 0 : index
    %95 = vector.load %arg1[%c2_61, %94, %c0_62, %c0_63] : memref<3x8x16x32xf32, #tpu.memory_space<vmem>>, vector<1x1x16x32xf32>
    %96 = vector.shape_cast %95 : vector<1x1x16x32xf32> to vector<16x32xf32>
    %97 = arith.mulf %84, %75 : vector<16x32xf32>
    %98 = arith.addf %96, %97 : vector<16x32xf32>
    %99 = math.tanh %98 : vector<16x32xf32>
    %cst_64 = arith.constant 1.000000e+00 : f32
    %100 = vector.broadcast %cst_64 : f32 to vector<16x32xf32>
    %101 = arith.subf %100, %93 : vector<16x32xf32>
    %102 = arith.mulf %101, %99 : vector<16x32xf32>
    %103 = arith.mulf %93, %50 : vector<16x32xf32>
    %104 = arith.addf %102, %103 : vector<16x32xf32>
    %105 = arith.index_cast %c1_i32 : i32 to index
    %c0_65 = arith.constant 0 : index
    %c0_66 = arith.constant 0 : index
    %106 = vector.load %arg7[%105, %c0_65, %c0_66] : memref<8x16x32xf32, #tpu.memory_space<vmem>>, vector<1x16x32xf32>
    %107 = vector.shape_cast %106 : vector<1x16x32xf32> to vector<16x32xf32>
    %108 = vector.shape_cast %104 : vector<16x32xf32> to vector<1x16x32xf32>
    tpu.vector_store %arg7[%105, %c0_65, %c0_66], %108 {strides = array<i32>} : memref<8x16x32xf32, #tpu.memory_space<vmem>>, vector<1x16x32xf32>,
    %c2_i32 = arith.constant 2 : i32
    %c0_67 = arith.constant 0 : index
    %c0_68 = arith.constant 0 : index
    %c0_69 = arith.constant 0 : index
    %109 = vector.load %arg2[%c0_67, %c0_68, %c0_69] : memref<3x32x32xf32, #tpu.memory_space<vmem>>, vector<1x32x32xf32>
    %110 = vector.shape_cast %109 : vector<1x32x32xf32> to vector<32x32xf32>
    %cst_70 = arith.constant dense<0.000000e+00> : vector<16x32xf32>
    %111 = tpu.matmul %104, %110, %cst_70 {dimension_numbers = #tpu.dot_dimension_numbers<[1], [0], [0], [1], [0, 0, 1, 1], [], []>} : vector<16x32xf32>, vector<32x32xf32>, vector<16x32xf32> -> vector<16x32xf32>
    %c0_71 = arith.constant 0 : index
    %c0_72 = arith.constant 0 : index
    %c0_73 = arith.constant 0 : index
    %112 = vector.load %arg3[%c0_71, %c0_72, %c0_73] : memref<3x1x32xf32, #tpu.memory_space<vmem>>, vector<1x1x32xf32>
    %113 = vector.shape_cast %112 : vector<1x1x32xf32> to vector<1x32xf32>
    %114 = vector.broadcast %113 : vector<1x32xf32> to vector<16x32xf32>
    %115 = arith.addf %111, %114 : vector<16x32xf32>
    %c1_74 = arith.constant 1 : index
    %c0_75 = arith.constant 0 : index
    %c0_76 = arith.constant 0 : index
    %116 = vector.load %arg2[%c1_74, %c0_75, %c0_76] : memref<3x32x32xf32, #tpu.memory_space<vmem>>, vector<1x32x32xf32>
    %117 = vector.shape_cast %116 : vector<1x32x32xf32> to vector<32x32xf32>
    %cst_77 = arith.constant dense<0.000000e+00> : vector<16x32xf32>
    %118 = tpu.matmul %104, %117, %cst_77 {dimension_numbers = #tpu.dot_dimension_numbers<[1], [0], [0], [1], [0, 0, 1, 1], [], []>} : vector<16x32xf32>, vector<32x32xf32>, vector<16x32xf32> -> vector<16x32xf32>
    %c1_78 = arith.constant 1 : index
    %c0_79 = arith.constant 0 : index
    %c0_80 = arith.constant 0 : index
    %119 = vector.load %arg3[%c1_78, %c0_79, %c0_80] : memref<3x1x32xf32, #tpu.memory_space<vmem>>, vector<1x1x32xf32>
    %120 = vector.shape_cast %119 : vector<1x1x32xf32> to vector<1x32xf32>
    %121 = vector.broadcast %120 : vector<1x32xf32> to vector<16x32xf32>
    %122 = arith.addf %118, %121 : vector<16x32xf32>
    %c2_81 = arith.constant 2 : index
    %c0_82 = arith.constant 0 : index
    %c0_83 = arith.constant 0 : index
    %123 = vector.load %arg2[%c2_81, %c0_82, %c0_83] : memref<3x32x32xf32, #tpu.memory_space<vmem>>, vector<1x32x32xf32>
    %124 = vector.shape_cast %123 : vector<1x32x32xf32> to vector<32x32xf32>
    %cst_84 = arith.constant dense<0.000000e+00> : vector<16x32xf32>
    %125 = tpu.matmul %104, %124, %cst_84 {dimension_numbers = #tpu.dot_dimension_numbers<[1], [0], [0], [1], [0, 0, 1, 1], [], []>} : vector<16x32xf32>, vector<32x32xf32>, vector<16x32xf32> -> vector<16x32xf32>
    %c2_85 = arith.constant 2 : index
    %c0_86 = arith.constant 0 : index
    %c0_87 = arith.constant 0 : index
    %126 = vector.load %arg3[%c2_85, %c0_86, %c0_87] : memref<3x1x32xf32, #tpu.memory_space<vmem>>, vector<1x1x32xf32>
    %127 = vector.shape_cast %126 : vector<1x1x32xf32> to vector<1x32xf32>
    %128 = vector.broadcast %127 : vector<1x32xf32> to vector<16x32xf32>
    %129 = arith.addf %125, %128 : vector<16x32xf32>
    %c0_88 = arith.constant 0 : index
    %130 = arith.index_cast %c2_i32 : i32 to index
    %c0_89 = arith.constant 0 : index
    %c0_90 = arith.constant 0 : index
    %131 = vector.load %arg1[%c0_88, %130, %c0_89, %c0_90] : memref<3x8x16x32xf32, #tpu.memory_space<vmem>>, vector<1x1x16x32xf32>
    %132 = vector.shape_cast %131 : vector<1x1x16x32xf32> to vector<16x32xf32>
    %133 = arith.addf %132, %115 : vector<16x32xf32>
    %134 = arith.negf %133 : vector<16x32xf32>
    %135 = math.exp %134 : vector<16x32xf32>
    %cst_91 = arith.constant 1.000000e+00 : f32
    %136 = vector.broadcast %cst_91 : f32 to vector<16x32xf32>
    %137 = arith.addf %136, %135 : vector<16x32xf32>
    %138 = arith.divf %136, %137 : vector<16x32xf32>
    %c1_92 = arith.constant 1 : index
    %139 = arith.index_cast %c2_i32 : i32 to index
    %c0_93 = arith.constant 0 : index
    %c0_94 = arith.constant 0 : index
    %140 = vector.load %arg1[%c1_92, %139, %c0_93, %c0_94] : memref<3x8x16x32xf32, #tpu.memory_space<vmem>>, vector<1x1x16x32xf32>
    %141 = vector.shape_cast %140 : vector<1x1x16x32xf32> to vector<16x32xf32>
    %142 = arith.addf %141, %122 : vector<16x32xf32>
    %143 = arith.negf %142 : vector<16x32xf32>
    %144 = math.exp %143 : vector<16x32xf32>
    %cst_95 = arith.constant 1.000000e+00 : f32
    %145 = vector.broadcast %cst_95 : f32 to vector<16x32xf32>
    %146 = arith.addf %145, %144 : vector<16x32xf32>
    %147 = arith.divf %145, %146 : vector<16x32xf32>
    %c2_96 = arith.constant 2 : index
    %148 = arith.index_cast %c2_i32 : i32 to index
    %c0_97 = arith.constant 0 : index
    %c0_98 = arith.constant 0 : index
    %149 = vector.load %arg1[%c2_96, %148, %c0_97, %c0_98] : memref<3x8x16x32xf32, #tpu.memory_space<vmem>>, vector<1x1x16x32xf32>
    %150 = vector.shape_cast %149 : vector<1x1x16x32xf32> to vector<16x32xf32>
    %151 = arith.mulf %138, %129 : vector<16x32xf32>
    %152 = arith.addf %150, %151 : vector<16x32xf32>
    %153 = math.tanh %152 : vector<16x32xf32>
    %cst_99 = arith.constant 1.000000e+00 : f32
    %154 = vector.broadcast %cst_99 : f32 to vector<16x32xf32>
    %155 = arith.subf %154, %147 : vector<16x32xf32>
    %156 = arith.mulf %155, %153 : vector<16x32xf32>
    %157 = arith.mulf %147, %104 : vector<16x32xf32>
    %158 = arith.addf %156, %157 : vector<16x32xf32>
    %159 = arith.index_cast %c2_i32 : i32 to index
    %c0_100 = arith.constant 0 : index
    %c0_101 = arith.constant 0 : index
    %160 = vector.load %arg7[%159, %c0_100, %c0_101] : memref<8x16x32xf32, #tpu.memory_space<vmem>>, vector<1x16x32xf32>
    %161 = vector.shape_cast %160 : vector<1x16x32xf32> to vector<16x32xf32>
    %162 = vector.shape_cast %158 : vector<16x32xf32> to vector<1x16x32xf32>
    tpu.vector_store %arg7[%159, %c0_100, %c0_101], %162 {strides = array<i32>} : memref<8x16x32xf32, #tpu.memory_space<vmem>>, vector<1x16x32xf32>,
    %c3_i32 = arith.constant 3 : i32
    %c0_102 = arith.constant 0 : index
    %c0_103 = arith.constant 0 : index
    %c0_104 = arith.constant 0 : index
    %163 = vector.load %arg2[%c0_102, %c0_103, %c0_104] : memref<3x32x32xf32, #tpu.memory_space<vmem>>, vector<1x32x32xf32>
    %164 = vector.shape_cast %163 : vector<1x32x32xf32> to vector<32x32xf32>
    %cst_105 = arith.constant dense<0.000000e+00> : vector<16x32xf32>
    %165 = tpu.matmul %158, %164, %cst_105 {dimension_numbers = #tpu.dot_dimension_numbers<[1], [0], [0], [1], [0, 0, 1, 1], [], []>} : vector<16x32xf32>, vector<32x32xf32>, vector<16x32xf32> -> vector<16x32xf32>
    %c0_106 = arith.constant 0 : index
    %c0_107 = arith.constant 0 : index
    %c0_108 = arith.constant 0 : index
    %166 = vector.load %arg3[%c0_106, %c0_107, %c0_108] : memref<3x1x32xf32, #tpu.memory_space<vmem>>, vector<1x1x32xf32>
    %167 = vector.shape_cast %166 : vector<1x1x32xf32> to vector<1x32xf32>
    %168 = vector.broadcast %167 : vector<1x32xf32> to vector<16x32xf32>
    %169 = arith.addf %165, %168 : vector<16x32xf32>
    %c1_109 = arith.constant 1 : index
    %c0_110 = arith.constant 0 : index
    %c0_111 = arith.constant 0 : index
    %170 = vector.load %arg2[%c1_109, %c0_110, %c0_111] : memref<3x32x32xf32, #tpu.memory_space<vmem>>, vector<1x32x32xf32>
    %171 = vector.shape_cast %170 : vector<1x32x32xf32> to vector<32x32xf32>
    %cst_112 = arith.constant dense<0.000000e+00> : vector<16x32xf32>
    %172 = tpu.matmul %158, %171, %cst_112 {dimension_numbers = #tpu.dot_dimension_numbers<[1], [0], [0], [1], [0, 0, 1, 1], [], []>} : vector<16x32xf32>, vector<32x32xf32>, vector<16x32xf32> -> vector<16x32xf32>
    %c1_113 = arith.constant 1 : index
    %c0_114 = arith.constant 0 : index
    %c0_115 = arith.constant 0 : index
    %173 = vector.load %arg3[%c1_113, %c0_114, %c0_115] : memref<3x1x32xf32, #tpu.memory_space<vmem>>, vector<1x1x32xf32>
    %174 = vector.shape_cast %173 : vector<1x1x32xf32> to vector<1x32xf32>
    %175 = vector.broadcast %174 : vector<1x32xf32> to vector<16x32xf32>
    %176 = arith.addf %172, %175 : vector<16x32xf32>
    %c2_116 = arith.constant 2 : index
    %c0_117 = arith.constant 0 : index
    %c0_118 = arith.constant 0 : index
    %177 = vector.load %arg2[%c2_116, %c0_117, %c0_118] : memref<3x32x32xf32, #tpu.memory_space<vmem>>, vector<1x32x32xf32>
    %178 = vector.shape_cast %177 : vector<1x32x32xf32> to vector<32x32xf32>
    %cst_119 = arith.constant dense<0.000000e+00> : vector<16x32xf32>
    %179 = tpu.matmul %158, %178, %cst_119 {dimension_numbers = #tpu.dot_dimension_numbers<[1], [0], [0], [1], [0, 0, 1, 1], [], []>} : vector<16x32xf32>, vector<32x32xf32>, vector<16x32xf32> -> vector<16x32xf32>
    %c2_120 = arith.constant 2 : index
    %c0_121 = arith.constant 0 : index
    %c0_122 = arith.constant 0 : index
    %180 = vector.load %arg3[%c2_120, %c0_121, %c0_122] : memref<3x1x32xf32, #tpu.memory_space<vmem>>, vector<1x1x32xf32>
    %181 = vector.shape_cast %180 : vector<1x1x32xf32> to vector<1x32xf32>
    %182 = vector.broadcast %181 : vector<1x32xf32> to vector<16x32xf32>
    %183 = arith.addf %179, %182 : vector<16x32xf32>
    %c0_123 = arith.constant 0 : index
    %184 = arith.index_cast %c3_i32 : i32 to index
    %c0_124 = arith.constant 0 : index
    %c0_125 = arith.constant 0 : index
    %185 = vector.load %arg1[%c0_123, %184, %c0_124, %c0_125] : memref<3x8x16x32xf32, #tpu.memory_space<vmem>>, vector<1x1x16x32xf32>
    %186 = vector.shape_cast %185 : vector<1x1x16x32xf32> to vector<16x32xf32>
    %187 = arith.addf %186, %169 : vector<16x32xf32>
    %188 = arith.negf %187 : vector<16x32xf32>
    %189 = math.exp %188 : vector<16x32xf32>
    %cst_126 = arith.constant 1.000000e+00 : f32
    %190 = vector.broadcast %cst_126 : f32 to vector<16x32xf32>
    %191 = arith.addf %190, %189 : vector<16x32xf32>
    %192 = arith.divf %190, %191 : vector<16x32xf32>
    %c1_127 = arith.constant 1 : index
    %193 = arith.index_cast %c3_i32 : i32 to index
    %c0_128 = arith.constant 0 : index
    %c0_129 = arith.constant 0 : index
    %194 = vector.load %arg1[%c1_127, %193, %c0_128, %c0_129] : memref<3x8x16x32xf32, #tpu.memory_space<vmem>>, vector<1x1x16x32xf32>
    %195 = vector.shape_cast %194 : vector<1x1x16x32xf32> to vector<16x32xf32>
    %196 = arith.addf %195, %176 : vector<16x32xf32>
    %197 = arith.negf %196 : vector<16x32xf32>
    %198 = math.exp %197 : vector<16x32xf32>
    %cst_130 = arith.constant 1.000000e+00 : f32
    %199 = vector.broadcast %cst_130 : f32 to vector<16x32xf32>
    %200 = arith.addf %199, %198 : vector<16x32xf32>
    %201 = arith.divf %199, %200 : vector<16x32xf32>
    %c2_131 = arith.constant 2 : index
    %202 = arith.index_cast %c3_i32 : i32 to index
    %c0_132 = arith.constant 0 : index
    %c0_133 = arith.constant 0 : index
    %203 = vector.load %arg1[%c2_131, %202, %c0_132, %c0_133] : memref<3x8x16x32xf32, #tpu.memory_space<vmem>>, vector<1x1x16x32xf32>
    %204 = vector.shape_cast %203 : vector<1x1x16x32xf32> to vector<16x32xf32>
    %205 = arith.mulf %192, %183 : vector<16x32xf32>
    %206 = arith.addf %204, %205 : vector<16x32xf32>
    %207 = math.tanh %206 : vector<16x32xf32>
    %cst_134 = arith.constant 1.000000e+00 : f32
    %208 = vector.broadcast %cst_134 : f32 to vector<16x32xf32>
    %209 = arith.subf %208, %201 : vector<16x32xf32>
    %210 = arith.mulf %209, %207 : vector<16x32xf32>
    %211 = arith.mulf %201, %158 : vector<16x32xf32>
    %212 = arith.addf %210, %211 : vector<16x32xf32>
    %213 = arith.index_cast %c3_i32 : i32 to index
    %c0_135 = arith.constant 0 : index
    %c0_136 = arith.constant 0 : index
    %214 = vector.load %arg7[%213, %c0_135, %c0_136] : memref<8x16x32xf32, #tpu.memory_space<vmem>>, vector<1x16x32xf32>
    %215 = vector.shape_cast %214 : vector<1x16x32xf32> to vector<16x32xf32>
    %216 = vector.shape_cast %212 : vector<16x32xf32> to vector<1x16x32xf32>
    tpu.vector_store %arg7[%213, %c0_135, %c0_136], %216 {strides = array<i32>} : memref<8x16x32xf32, #tpu.memory_space<vmem>>, vector<1x16x32xf32>,
    %c4_i32 = arith.constant 4 : i32
    %c0_137 = arith.constant 0 : index
    %c0_138 = arith.constant 0 : index
    %c0_139 = arith.constant 0 : index
    %217 = vector.load %arg2[%c0_137, %c0_138, %c0_139] : memref<3x32x32xf32, #tpu.memory_space<vmem>>, vector<1x32x32xf32>
    %218 = vector.shape_cast %217 : vector<1x32x32xf32> to vector<32x32xf32>
    %cst_140 = arith.constant dense<0.000000e+00> : vector<16x32xf32>
    %219 = tpu.matmul %212, %218, %cst_140 {dimension_numbers = #tpu.dot_dimension_numbers<[1], [0], [0], [1], [0, 0, 1, 1], [], []>} : vector<16x32xf32>, vector<32x32xf32>, vector<16x32xf32> -> vector<16x32xf32>
    %c0_141 = arith.constant 0 : index
    %c0_142 = arith.constant 0 : index
    %c0_143 = arith.constant 0 : index
    %220 = vector.load %arg3[%c0_141, %c0_142, %c0_143] : memref<3x1x32xf32, #tpu.memory_space<vmem>>, vector<1x1x32xf32>
    %221 = vector.shape_cast %220 : vector<1x1x32xf32> to vector<1x32xf32>
    %222 = vector.broadcast %221 : vector<1x32xf32> to vector<16x32xf32>
    %223 = arith.addf %219, %222 : vector<16x32xf32>
    %c1_144 = arith.constant 1 : index
    %c0_145 = arith.constant 0 : index
    %c0_146 = arith.constant 0 : index
    %224 = vector.load %arg2[%c1_144, %c0_145, %c0_146] : memref<3x32x32xf32, #tpu.memory_space<vmem>>, vector<1x32x32xf32>
    %225 = vector.shape_cast %224 : vector<1x32x32xf32> to vector<32x32xf32>
    %cst_147 = arith.constant dense<0.000000e+00> : vector<16x32xf32>
    %226 = tpu.matmul %212, %225, %cst_147 {dimension_numbers = #tpu.dot_dimension_numbers<[1], [0], [0], [1], [0, 0, 1, 1], [], []>} : vector<16x32xf32>, vector<32x32xf32>, vector<16x32xf32> -> vector<16x32xf32>
    %c1_148 = arith.constant 1 : index
    %c0_149 = arith.constant 0 : index
    %c0_150 = arith.constant 0 : index
    %227 = vector.load %arg3[%c1_148, %c0_149, %c0_150] : memref<3x1x32xf32, #tpu.memory_space<vmem>>, vector<1x1x32xf32>
    %228 = vector.shape_cast %227 : vector<1x1x32xf32> to vector<1x32xf32>
    %229 = vector.broadcast %228 : vector<1x32xf32> to vector<16x32xf32>
    %230 = arith.addf %226, %229 : vector<16x32xf32>
    %c2_151 = arith.constant 2 : index
    %c0_152 = arith.constant 0 : index
    %c0_153 = arith.constant 0 : index
    %231 = vector.load %arg2[%c2_151, %c0_152, %c0_153] : memref<3x32x32xf32, #tpu.memory_space<vmem>>, vector<1x32x32xf32>
    %232 = vector.shape_cast %231 : vector<1x32x32xf32> to vector<32x32xf32>
    %cst_154 = arith.constant dense<0.000000e+00> : vector<16x32xf32>
    %233 = tpu.matmul %212, %232, %cst_154 {dimension_numbers = #tpu.dot_dimension_numbers<[1], [0], [0], [1], [0, 0, 1, 1], [], []>} : vector<16x32xf32>, vector<32x32xf32>, vector<16x32xf32> -> vector<16x32xf32>
    %c2_155 = arith.constant 2 : index
    %c0_156 = arith.constant 0 : index
    %c0_157 = arith.constant 0 : index
    %234 = vector.load %arg3[%c2_155, %c0_156, %c0_157] : memref<3x1x32xf32, #tpu.memory_space<vmem>>, vector<1x1x32xf32>
    %235 = vector.shape_cast %234 : vector<1x1x32xf32> to vector<1x32xf32>
    %236 = vector.broadcast %235 : vector<1x32xf32> to vector<16x32xf32>
    %237 = arith.addf %233, %236 : vector<16x32xf32>
    %c0_158 = arith.constant 0 : index
    %238 = arith.index_cast %c4_i32 : i32 to index
    %c0_159 = arith.constant 0 : index
    %c0_160 = arith.constant 0 : index
    %239 = vector.load %arg1[%c0_158, %238, %c0_159, %c0_160] : memref<3x8x16x32xf32, #tpu.memory_space<vmem>>, vector<1x1x16x32xf32>
    %240 = vector.shape_cast %239 : vector<1x1x16x32xf32> to vector<16x32xf32>
    %241 = arith.addf %240, %223 : vector<16x32xf32>
    %242 = arith.negf %241 : vector<16x32xf32>
    %243 = math.exp %242 : vector<16x32xf32>
    %cst_161 = arith.constant 1.000000e+00 : f32
    %244 = vector.broadcast %cst_161 : f32 to vector<16x32xf32>
    %245 = arith.addf %244, %243 : vector<16x32xf32>
    %246 = arith.divf %244, %245 : vector<16x32xf32>
    %c1_162 = arith.constant 1 : index
    %247 = arith.index_cast %c4_i32 : i32 to index
    %c0_163 = arith.constant 0 : index
    %c0_164 = arith.constant 0 : index
    %248 = vector.load %arg1[%c1_162, %247, %c0_163, %c0_164] : memref<3x8x16x32xf32, #tpu.memory_space<vmem>>, vector<1x1x16x32xf32>
    %249 = vector.shape_cast %248 : vector<1x1x16x32xf32> to vector<16x32xf32>
    %250 = arith.addf %249, %230 : vector<16x32xf32>
    %251 = arith.negf %250 : vector<16x32xf32>
    %252 = math.exp %251 : vector<16x32xf32>
    %cst_165 = arith.constant 1.000000e+00 : f32
    %253 = vector.broadcast %cst_165 : f32 to vector<16x32xf32>
    %254 = arith.addf %253, %252 : vector<16x32xf32>
    %255 = arith.divf %253, %254 : vector<16x32xf32>
    %c2_166 = arith.constant 2 : index
    %256 = arith.index_cast %c4_i32 : i32 to index
    %c0_167 = arith.constant 0 : index
    %c0_168 = arith.constant 0 : index
    %257 = vector.load %arg1[%c2_166, %256, %c0_167, %c0_168] : memref<3x8x16x32xf32, #tpu.memory_space<vmem>>, vector<1x1x16x32xf32>
    %258 = vector.shape_cast %257 : vector<1x1x16x32xf32> to vector<16x32xf32>
    %259 = arith.mulf %246, %237 : vector<16x32xf32>
    %260 = arith.addf %258, %259 : vector<16x32xf32>
    %261 = math.tanh %260 : vector<16x32xf32>
    %cst_169 = arith.constant 1.000000e+00 : f32
    %262 = vector.broadcast %cst_169 : f32 to vector<16x32xf32>
    %263 = arith.subf %262, %255 : vector<16x32xf32>
    %264 = arith.mulf %263, %261 : vector<16x32xf32>
    %265 = arith.mulf %255, %212 : vector<16x32xf32>
    %266 = arith.addf %264, %265 : vector<16x32xf32>
    %267 = arith.index_cast %c4_i32 : i32 to index
    %c0_170 = arith.constant 0 : index
    %c0_171 = arith.constant 0 : index
    %268 = vector.load %arg7[%267, %c0_170, %c0_171] : memref<8x16x32xf32, #tpu.memory_space<vmem>>, vector<1x16x32xf32>
    %269 = vector.shape_cast %268 : vector<1x16x32xf32> to vector<16x32xf32>
    %270 = vector.shape_cast %266 : vector<16x32xf32> to vector<1x16x32xf32>
    tpu.vector_store %arg7[%267, %c0_170, %c0_171], %270 {strides = array<i32>} : memref<8x16x32xf32, #tpu.memory_space<vmem>>, vector<1x16x32xf32>,
    %c5_i32 = arith.constant 5 : i32
    %c0_172 = arith.constant 0 : index
    %c0_173 = arith.constant 0 : index
    %c0_174 = arith.constant 0 : index
    %271 = vector.load %arg2[%c0_172, %c0_173, %c0_174] : memref<3x32x32xf32, #tpu.memory_space<vmem>>, vector<1x32x32xf32>
    %272 = vector.shape_cast %271 : vector<1x32x32xf32> to vector<32x32xf32>
    %cst_175 = arith.constant dense<0.000000e+00> : vector<16x32xf32>
    %273 = tpu.matmul %266, %272, %cst_175 {dimension_numbers = #tpu.dot_dimension_numbers<[1], [0], [0], [1], [0, 0, 1, 1], [], []>} : vector<16x32xf32>, vector<32x32xf32>, vector<16x32xf32> -> vector<16x32xf32>
    %c0_176 = arith.constant 0 : index
    %c0_177 = arith.constant 0 : index
    %c0_178 = arith.constant 0 : index
    %274 = vector.load %arg3[%c0_176, %c0_177, %c0_178] : memref<3x1x32xf32, #tpu.memory_space<vmem>>, vector<1x1x32xf32>
    %275 = vector.shape_cast %274 : vector<1x1x32xf32> to vector<1x32xf32>
    %276 = vector.broadcast %275 : vector<1x32xf32> to vector<16x32xf32>
    %277 = arith.addf %273, %276 : vector<16x32xf32>
    %c1_179 = arith.constant 1 : index
    %c0_180 = arith.constant 0 : index
    %c0_181 = arith.constant 0 : index
    %278 = vector.load %arg2[%c1_179, %c0_180, %c0_181] : memref<3x32x32xf32, #tpu.memory_space<vmem>>, vector<1x32x32xf32>
    %279 = vector.shape_cast %278 : vector<1x32x32xf32> to vector<32x32xf32>
    %cst_182 = arith.constant dense<0.000000e+00> : vector<16x32xf32>
    %280 = tpu.matmul %266, %279, %cst_182 {dimension_numbers = #tpu.dot_dimension_numbers<[1], [0], [0], [1], [0, 0, 1, 1], [], []>} : vector<16x32xf32>, vector<32x32xf32>, vector<16x32xf32> -> vector<16x32xf32>
    %c1_183 = arith.constant 1 : index
    %c0_184 = arith.constant 0 : index
    %c0_185 = arith.constant 0 : index
    %281 = vector.load %arg3[%c1_183, %c0_184, %c0_185] : memref<3x1x32xf32, #tpu.memory_space<vmem>>, vector<1x1x32xf32>
    %282 = vector.shape_cast %281 : vector<1x1x32xf32> to vector<1x32xf32>
    %283 = vector.broadcast %282 : vector<1x32xf32> to vector<16x32xf32>
    %284 = arith.addf %280, %283 : vector<16x32xf32>
    %c2_186 = arith.constant 2 : index
    %c0_187 = arith.constant 0 : index
    %c0_188 = arith.constant 0 : index
    %285 = vector.load %arg2[%c2_186, %c0_187, %c0_188] : memref<3x32x32xf32, #tpu.memory_space<vmem>>, vector<1x32x32xf32>
    %286 = vector.shape_cast %285 : vector<1x32x32xf32> to vector<32x32xf32>
    %cst_189 = arith.constant dense<0.000000e+00> : vector<16x32xf32>
    %287 = tpu.matmul %266, %286, %cst_189 {dimension_numbers = #tpu.dot_dimension_numbers<[1], [0], [0], [1], [0, 0, 1, 1], [], []>} : vector<16x32xf32>, vector<32x32xf32>, vector<16x32xf32> -> vector<16x32xf32>
    %c2_190 = arith.constant 2 : index
    %c0_191 = arith.constant 0 : index
    %c0_192 = arith.constant 0 : index
    %288 = vector.load %arg3[%c2_190, %c0_191, %c0_192] : memref<3x1x32xf32, #tpu.memory_space<vmem>>, vector<1x1x32xf32>
    %289 = vector.shape_cast %288 : vector<1x1x32xf32> to vector<1x32xf32>
    %290 = vector.broadcast %289 : vector<1x32xf32> to vector<16x32xf32>
    %291 = arith.addf %287, %290 : vector<16x32xf32>
    %c0_193 = arith.constant 0 : index
    %292 = arith.index_cast %c5_i32 : i32 to index
    %c0_194 = arith.constant 0 : index
    %c0_195 = arith.constant 0 : index
    %293 = vector.load %arg1[%c0_193, %292, %c0_194, %c0_195] : memref<3x8x16x32xf32, #tpu.memory_space<vmem>>, vector<1x1x16x32xf32>
    %294 = vector.shape_cast %293 : vector<1x1x16x32xf32> to vector<16x32xf32>
    %295 = arith.addf %294, %277 : vector<16x32xf32>
    %296 = arith.negf %295 : vector<16x32xf32>
    %297 = math.exp %296 : vector<16x32xf32>
    %cst_196 = arith.constant 1.000000e+00 : f32
    %298 = vector.broadcast %cst_196 : f32 to vector<16x32xf32>
    %299 = arith.addf %298, %297 : vector<16x32xf32>
    %300 = arith.divf %298, %299 : vector<16x32xf32>
    %c1_197 = arith.constant 1 : index
    %301 = arith.index_cast %c5_i32 : i32 to index
    %c0_198 = arith.constant 0 : index
    %c0_199 = arith.constant 0 : index
    %302 = vector.load %arg1[%c1_197, %301, %c0_198, %c0_199] : memref<3x8x16x32xf32, #tpu.memory_space<vmem>>, vector<1x1x16x32xf32>
    %303 = vector.shape_cast %302 : vector<1x1x16x32xf32> to vector<16x32xf32>
    %304 = arith.addf %303, %284 : vector<16x32xf32>
    %305 = arith.negf %304 : vector<16x32xf32>
    %306 = math.exp %305 : vector<16x32xf32>
    %cst_200 = arith.constant 1.000000e+00 : f32
    %307 = vector.broadcast %cst_200 : f32 to vector<16x32xf32>
    %308 = arith.addf %307, %306 : vector<16x32xf32>
    %309 = arith.divf %307, %308 : vector<16x32xf32>
    %c2_201 = arith.constant 2 : index
    %310 = arith.index_cast %c5_i32 : i32 to index
    %c0_202 = arith.constant 0 : index
    %c0_203 = arith.constant 0 : index
    %311 = vector.load %arg1[%c2_201, %310, %c0_202, %c0_203] : memref<3x8x16x32xf32, #tpu.memory_space<vmem>>, vector<1x1x16x32xf32>
    %312 = vector.shape_cast %311 : vector<1x1x16x32xf32> to vector<16x32xf32>
    %313 = arith.mulf %300, %291 : vector<16x32xf32>
    %314 = arith.addf %312, %313 : vector<16x32xf32>
    %315 = math.tanh %314 : vector<16x32xf32>
    %cst_204 = arith.constant 1.000000e+00 : f32
    %316 = vector.broadcast %cst_204 : f32 to vector<16x32xf32>
    %317 = arith.subf %316, %309 : vector<16x32xf32>
    %318 = arith.mulf %317, %315 : vector<16x32xf32>
    %319 = arith.mulf %309, %266 : vector<16x32xf32>
    %320 = arith.addf %318, %319 : vector<16x32xf32>
    %321 = arith.index_cast %c5_i32 : i32 to index
    %c0_205 = arith.constant 0 : index
    %c0_206 = arith.constant 0 : index
    %322 = vector.load %arg7[%321, %c0_205, %c0_206] : memref<8x16x32xf32, #tpu.memory_space<vmem>>, vector<1x16x32xf32>
    %323 = vector.shape_cast %322 : vector<1x16x32xf32> to vector<16x32xf32>
    %324 = vector.shape_cast %320 : vector<16x32xf32> to vector<1x16x32xf32>
    tpu.vector_store %arg7[%321, %c0_205, %c0_206], %324 {strides = array<i32>} : memref<8x16x32xf32, #tpu.memory_space<vmem>>, vector<1x16x32xf32>,
    %c6_i32 = arith.constant 6 : i32
    %c0_207 = arith.constant 0 : index
    %c0_208 = arith.constant 0 : index
    %c0_209 = arith.constant 0 : index
    %325 = vector.load %arg2[%c0_207, %c0_208, %c0_209] : memref<3x32x32xf32, #tpu.memory_space<vmem>>, vector<1x32x32xf32>
    %326 = vector.shape_cast %325 : vector<1x32x32xf32> to vector<32x32xf32>
    %cst_210 = arith.constant dense<0.000000e+00> : vector<16x32xf32>
    %327 = tpu.matmul %320, %326, %cst_210 {dimension_numbers = #tpu.dot_dimension_numbers<[1], [0], [0], [1], [0, 0, 1, 1], [], []>} : vector<16x32xf32>, vector<32x32xf32>, vector<16x32xf32> -> vector<16x32xf32>
    %c0_211 = arith.constant 0 : index
    %c0_212 = arith.constant 0 : index
    %c0_213 = arith.constant 0 : index
    %328 = vector.load %arg3[%c0_211, %c0_212, %c0_213] : memref<3x1x32xf32, #tpu.memory_space<vmem>>, vector<1x1x32xf32>
    %329 = vector.shape_cast %328 : vector<1x1x32xf32> to vector<1x32xf32>
    %330 = vector.broadcast %329 : vector<1x32xf32> to vector<16x32xf32>
    %331 = arith.addf %327, %330 : vector<16x32xf32>
    %c1_214 = arith.constant 1 : index
    %c0_215 = arith.constant 0 : index
    %c0_216 = arith.constant 0 : index
    %332 = vector.load %arg2[%c1_214, %c0_215, %c0_216] : memref<3x32x32xf32, #tpu.memory_space<vmem>>, vector<1x32x32xf32>
    %333 = vector.shape_cast %332 : vector<1x32x32xf32> to vector<32x32xf32>
    %cst_217 = arith.constant dense<0.000000e+00> : vector<16x32xf32>
    %334 = tpu.matmul %320, %333, %cst_217 {dimension_numbers = #tpu.dot_dimension_numbers<[1], [0], [0], [1], [0, 0, 1, 1], [], []>} : vector<16x32xf32>, vector<32x32xf32>, vector<16x32xf32> -> vector<16x32xf32>
    %c1_218 = arith.constant 1 : index
    %c0_219 = arith.constant 0 : index
    %c0_220 = arith.constant 0 : index
    %335 = vector.load %arg3[%c1_218, %c0_219, %c0_220] : memref<3x1x32xf32, #tpu.memory_space<vmem>>, vector<1x1x32xf32>
    %336 = vector.shape_cast %335 : vector<1x1x32xf32> to vector<1x32xf32>
    %337 = vector.broadcast %336 : vector<1x32xf32> to vector<16x32xf32>
    %338 = arith.addf %334, %337 : vector<16x32xf32>
    %c2_221 = arith.constant 2 : index
    %c0_222 = arith.constant 0 : index
    %c0_223 = arith.constant 0 : index
    %339 = vector.load %arg2[%c2_221, %c0_222, %c0_223] : memref<3x32x32xf32, #tpu.memory_space<vmem>>, vector<1x32x32xf32>
    %340 = vector.shape_cast %339 : vector<1x32x32xf32> to vector<32x32xf32>
    %cst_224 = arith.constant dense<0.000000e+00> : vector<16x32xf32>
    %341 = tpu.matmul %320, %340, %cst_224 {dimension_numbers = #tpu.dot_dimension_numbers<[1], [0], [0], [1], [0, 0, 1, 1], [], []>} : vector<16x32xf32>, vector<32x32xf32>, vector<16x32xf32> -> vector<16x32xf32>
    %c2_225 = arith.constant 2 : index
    %c0_226 = arith.constant 0 : index
    %c0_227 = arith.constant 0 : index
    %342 = vector.load %arg3[%c2_225, %c0_226, %c0_227] : memref<3x1x32xf32, #tpu.memory_space<vmem>>, vector<1x1x32xf32>
    %343 = vector.shape_cast %342 : vector<1x1x32xf32> to vector<1x32xf32>
    %344 = vector.broadcast %343 : vector<1x32xf32> to vector<16x32xf32>
    %345 = arith.addf %341, %344 : vector<16x32xf32>
    %c0_228 = arith.constant 0 : index
    %346 = arith.index_cast %c6_i32 : i32 to index
    %c0_229 = arith.constant 0 : index
    %c0_230 = arith.constant 0 : index
    %347 = vector.load %arg1[%c0_228, %346, %c0_229, %c0_230] : memref<3x8x16x32xf32, #tpu.memory_space<vmem>>, vector<1x1x16x32xf32>
    %348 = vector.shape_cast %347 : vector<1x1x16x32xf32> to vector<16x32xf32>
    %349 = arith.addf %348, %331 : vector<16x32xf32>
    %350 = arith.negf %349 : vector<16x32xf32>
    %351 = math.exp %350 : vector<16x32xf32>
    %cst_231 = arith.constant 1.000000e+00 : f32
    %352 = vector.broadcast %cst_231 : f32 to vector<16x32xf32>
    %353 = arith.addf %352, %351 : vector<16x32xf32>
    %354 = arith.divf %352, %353 : vector<16x32xf32>
    %c1_232 = arith.constant 1 : index
    %355 = arith.index_cast %c6_i32 : i32 to index
    %c0_233 = arith.constant 0 : index
    %c0_234 = arith.constant 0 : index
    %356 = vector.load %arg1[%c1_232, %355, %c0_233, %c0_234] : memref<3x8x16x32xf32, #tpu.memory_space<vmem>>, vector<1x1x16x32xf32>
    %357 = vector.shape_cast %356 : vector<1x1x16x32xf32> to vector<16x32xf32>
    %358 = arith.addf %357, %338 : vector<16x32xf32>
    %359 = arith.negf %358 : vector<16x32xf32>
    %360 = math.exp %359 : vector<16x32xf32>
    %cst_235 = arith.constant 1.000000e+00 : f32
    %361 = vector.broadcast %cst_235 : f32 to vector<16x32xf32>
    %362 = arith.addf %361, %360 : vector<16x32xf32>
    %363 = arith.divf %361, %362 : vector<16x32xf32>
    %c2_236 = arith.constant 2 : index
    %364 = arith.index_cast %c6_i32 : i32 to index
    %c0_237 = arith.constant 0 : index
    %c0_238 = arith.constant 0 : index
    %365 = vector.load %arg1[%c2_236, %364, %c0_237, %c0_238] : memref<3x8x16x32xf32, #tpu.memory_space<vmem>>, vector<1x1x16x32xf32>
    %366 = vector.shape_cast %365 : vector<1x1x16x32xf32> to vector<16x32xf32>
    %367 = arith.mulf %354, %345 : vector<16x32xf32>
    %368 = arith.addf %366, %367 : vector<16x32xf32>
    %369 = math.tanh %368 : vector<16x32xf32>
    %cst_239 = arith.constant 1.000000e+00 : f32
    %370 = vector.broadcast %cst_239 : f32 to vector<16x32xf32>
    %371 = arith.subf %370, %363 : vector<16x32xf32>
    %372 = arith.mulf %371, %369 : vector<16x32xf32>
    %373 = arith.mulf %363, %320 : vector<16x32xf32>
    %374 = arith.addf %372, %373 : vector<16x32xf32>
    %375 = arith.index_cast %c6_i32 : i32 to index
    %c0_240 = arith.constant 0 : index
    %c0_241 = arith.constant 0 : index
    %376 = vector.load %arg7[%375, %c0_240, %c0_241] : memref<8x16x32xf32, #tpu.memory_space<vmem>>, vector<1x16x32xf32>
    %377 = vector.shape_cast %376 : vector<1x16x32xf32> to vector<16x32xf32>
    %378 = vector.shape_cast %374 : vector<16x32xf32> to vector<1x16x32xf32>
    tpu.vector_store %arg7[%375, %c0_240, %c0_241], %378 {strides = array<i32>} : memref<8x16x32xf32, #tpu.memory_space<vmem>>, vector<1x16x32xf32>,
    %c7_i32 = arith.constant 7 : i32
    %c0_242 = arith.constant 0 : index
    %c0_243 = arith.constant 0 : index
    %c0_244 = arith.constant 0 : index
    %379 = vector.load %arg2[%c0_242, %c0_243, %c0_244] : memref<3x32x32xf32, #tpu.memory_space<vmem>>, vector<1x32x32xf32>
    %380 = vector.shape_cast %379 : vector<1x32x32xf32> to vector<32x32xf32>
    %cst_245 = arith.constant dense<0.000000e+00> : vector<16x32xf32>
    %381 = tpu.matmul %374, %380, %cst_245 {dimension_numbers = #tpu.dot_dimension_numbers<[1], [0], [0], [1], [0, 0, 1, 1], [], []>} : vector<16x32xf32>, vector<32x32xf32>, vector<16x32xf32> -> vector<16x32xf32>
    %c0_246 = arith.constant 0 : index
    %c0_247 = arith.constant 0 : index
    %c0_248 = arith.constant 0 : index
    %382 = vector.load %arg3[%c0_246, %c0_247, %c0_248] : memref<3x1x32xf32, #tpu.memory_space<vmem>>, vector<1x1x32xf32>
    %383 = vector.shape_cast %382 : vector<1x1x32xf32> to vector<1x32xf32>
    %384 = vector.broadcast %383 : vector<1x32xf32> to vector<16x32xf32>
    %385 = arith.addf %381, %384 : vector<16x32xf32>
    %c1_249 = arith.constant 1 : index
    %c0_250 = arith.constant 0 : index
    %c0_251 = arith.constant 0 : index
    %386 = vector.load %arg2[%c1_249, %c0_250, %c0_251] : memref<3x32x32xf32, #tpu.memory_space<vmem>>, vector<1x32x32xf32>
    %387 = vector.shape_cast %386 : vector<1x32x32xf32> to vector<32x32xf32>
    %cst_252 = arith.constant dense<0.000000e+00> : vector<16x32xf32>
    %388 = tpu.matmul %374, %387, %cst_252 {dimension_numbers = #tpu.dot_dimension_numbers<[1], [0], [0], [1], [0, 0, 1, 1], [], []>} : vector<16x32xf32>, vector<32x32xf32>, vector<16x32xf32> -> vector<16x32xf32>
    %c1_253 = arith.constant 1 : index
    %c0_254 = arith.constant 0 : index
    %c0_255 = arith.constant 0 : index
    %389 = vector.load %arg3[%c1_253, %c0_254, %c0_255] : memref<3x1x32xf32, #tpu.memory_space<vmem>>, vector<1x1x32xf32>
    %390 = vector.shape_cast %389 : vector<1x1x32xf32> to vector<1x32xf32>
    %391 = vector.broadcast %390 : vector<1x32xf32> to vector<16x32xf32>
    %392 = arith.addf %388, %391 : vector<16x32xf32>
    %c2_256 = arith.constant 2 : index
    %c0_257 = arith.constant 0 : index
    %c0_258 = arith.constant 0 : index
    %393 = vector.load %arg2[%c2_256, %c0_257, %c0_258] : memref<3x32x32xf32, #tpu.memory_space<vmem>>, vector<1x32x32xf32>
    %394 = vector.shape_cast %393 : vector<1x32x32xf32> to vector<32x32xf32>
    %cst_259 = arith.constant dense<0.000000e+00> : vector<16x32xf32>
    %395 = tpu.matmul %374, %394, %cst_259 {dimension_numbers = #tpu.dot_dimension_numbers<[1], [0], [0], [1], [0, 0, 1, 1], [], []>} : vector<16x32xf32>, vector<32x32xf32>, vector<16x32xf32> -> vector<16x32xf32>
    %c2_260 = arith.constant 2 : index
    %c0_261 = arith.constant 0 : index
    %c0_262 = arith.constant 0 : index
    %396 = vector.load %arg3[%c2_260, %c0_261, %c0_262] : memref<3x1x32xf32, #tpu.memory_space<vmem>>, vector<1x1x32xf32>
    %397 = vector.shape_cast %396 : vector<1x1x32xf32> to vector<1x32xf32>
    %398 = vector.broadcast %397 : vector<1x32xf32> to vector<16x32xf32>
    %399 = arith.addf %395, %398 : vector<16x32xf32>
    %c0_263 = arith.constant 0 : index
    %400 = arith.index_cast %c7_i32 : i32 to index
    %c0_264 = arith.constant 0 : index
    %c0_265 = arith.constant 0 : index
    %401 = vector.load %arg1[%c0_263, %400, %c0_264, %c0_265] : memref<3x8x16x32xf32, #tpu.memory_space<vmem>>, vector<1x1x16x32xf32>
    %402 = vector.shape_cast %401 : vector<1x1x16x32xf32> to vector<16x32xf32>
    %403 = arith.addf %402, %385 : vector<16x32xf32>
    %404 = arith.negf %403 : vector<16x32xf32>
    %405 = math.exp %404 : vector<16x32xf32>
    %cst_266 = arith.constant 1.000000e+00 : f32
    %406 = vector.broadcast %cst_266 : f32 to vector<16x32xf32>
    %407 = arith.addf %406, %405 : vector<16x32xf32>
    %408 = arith.divf %406, %407 : vector<16x32xf32>
    %c1_267 = arith.constant 1 : index
    %409 = arith.index_cast %c7_i32 : i32 to index
    %c0_268 = arith.constant 0 : index
    %c0_269 = arith.constant 0 : index
    %410 = vector.load %arg1[%c1_267, %409, %c0_268, %c0_269] : memref<3x8x16x32xf32, #tpu.memory_space<vmem>>, vector<1x1x16x32xf32>
    %411 = vector.shape_cast %410 : vector<1x1x16x32xf32> to vector<16x32xf32>
    %412 = arith.addf %411, %392 : vector<16x32xf32>
    %413 = arith.negf %412 : vector<16x32xf32>
    %414 = math.exp %413 : vector<16x32xf32>
    %cst_270 = arith.constant 1.000000e+00 : f32
    %415 = vector.broadcast %cst_270 : f32 to vector<16x32xf32>
    %416 = arith.addf %415, %414 : vector<16x32xf32>
    %417 = arith.divf %415, %416 : vector<16x32xf32>
    %c2_271 = arith.constant 2 : index
    %418 = arith.index_cast %c7_i32 : i32 to index
    %c0_272 = arith.constant 0 : index
    %c0_273 = arith.constant 0 : index
    %419 = vector.load %arg1[%c2_271, %418, %c0_272, %c0_273] : memref<3x8x16x32xf32, #tpu.memory_space<vmem>>, vector<1x1x16x32xf32>
    %420 = vector.shape_cast %419 : vector<1x1x16x32xf32> to vector<16x32xf32>
    %421 = arith.mulf %408, %399 : vector<16x32xf32>
    %422 = arith.addf %420, %421 : vector<16x32xf32>
    %423 = math.tanh %422 : vector<16x32xf32>
    %cst_274 = arith.constant 1.000000e+00 : f32
    %424 = vector.broadcast %cst_274 : f32 to vector<16x32xf32>
    %425 = arith.subf %424, %417 : vector<16x32xf32>
    %426 = arith.mulf %425, %423 : vector<16x32xf32>
    %427 = arith.mulf %417, %374 : vector<16x32xf32>
    %428 = arith.addf %426, %427 : vector<16x32xf32>
    %429 = arith.index_cast %c7_i32 : i32 to index
    %c0_275 = arith.constant 0 : index
    %c0_276 = arith.constant 0 : index
    %430 = vector.load %arg7[%429, %c0_275, %c0_276] : memref<8x16x32xf32, #tpu.memory_space<vmem>>, vector<1x16x32xf32>
    %431 = vector.shape_cast %430 : vector<1x16x32xf32> to vector<16x32xf32>
    %432 = vector.shape_cast %428 : vector<16x32xf32> to vector<1x16x32xf32>
    tpu.vector_store %arg7[%429, %c0_275, %c0_276], %432 {strides = array<i32>} : memref<8x16x32xf32, #tpu.memory_space<vmem>>, vector<1x16x32xf32>,
    %c8_i32 = arith.constant 8 : i32
    %c0_277 = arith.constant 0 : index
    %c0_278 = arith.constant 0 : index
    %c0_279 = arith.constant 0 : index
    %433 = vector.load %arg7[%c0_277, %c0_278, %c0_279] : memref<8x16x32xf32, #tpu.memory_space<vmem>>, vector<8x16x32xf32>
    %434 = vector.shape_cast %433 : vector<8x16x32xf32> to vector<128x32xf32>
    %c0_280 = arith.constant 0 : index
    %c0_281 = arith.constant 0 : index
    %435 = vector.load %arg4[%c0_280, %c0_281] : memref<32x4xf32, #tpu.memory_space<vmem>>, vector<32x4xf32>
    %cst_282 = arith.constant dense<0.000000e+00> : vector<128x4xf32>
    %436 = tpu.matmul %434, %435, %cst_282 {dimension_numbers = #tpu.dot_dimension_numbers<[1], [0], [0], [1], [0, 0, 1, 1], [], []>} : vector<128x32xf32>, vector<32x4xf32>, vector<128x4xf32> -> vector<128x4xf32>
    %c0_283 = arith.constant 0 : index
    %c0_284 = arith.constant 0 : index
    %437 = vector.load %arg5[%c0_283, %c0_284] : memref<1x4xf32, #tpu.memory_space<vmem>>, vector<1x4xf32>
    %438 = vector.broadcast %437 : vector<1x4xf32> to vector<128x4xf32>
    %439 = arith.addf %436, %438 : vector<128x4xf32>
    %440 = vector.shape_cast %439 : vector<128x4xf32> to vector<8x16x4xf32>
    %c0_285 = arith.constant 0 : index
    %c0_286 = arith.constant 0 : index
    %c0_287 = arith.constant 0 : index
    %441 = vector.load %arg6[%c0_285, %c0_286, %c0_287] : memref<8x16x4xf32, #tpu.memory_space<vmem>>, vector<8x16x4xf32>
    tpu.vector_store %arg6[%c0_285, %c0_286, %c0_287], %440 {strides = array<i32>} : memref<8x16x4xf32, #tpu.memory_space<vmem>>, vector<8x16x4xf32>,
    return
  }
  func.func @transform_0(%arg0: i32) -> (i32, i32, i32, i32) {
    %c0_i32 = arith.constant 0 : i32
    %c0_i32_0 = arith.constant 0 : i32
    %c0_i32_1 = arith.constant 0 : i32
    %c0_i32_2 = arith.constant 0 : i32
    return %c0_i32, %c0_i32_0, %arg0, %c0_i32_1 : i32, i32, i32, i32
  }
  func.func @transform_1(%arg0: i32) -> (i32, i32, i32) {
    %c0_i32 = arith.constant 0 : i32
    %c0_i32_0 = arith.constant 0 : i32
    %c0_i32_1 = arith.constant 0 : i32
    %c0_i32_2 = arith.constant 0 : i32
    return %c0_i32, %c0_i32_0, %c0_i32_1 : i32, i32, i32
  }
  func.func @transform_2(%arg0: i32) -> (i32, i32, i32) {
    %c0_i32 = arith.constant 0 : i32
    %c0_i32_0 = arith.constant 0 : i32
    %c0_i32_1 = arith.constant 0 : i32
    %c0_i32_2 = arith.constant 0 : i32
    return %c0_i32, %c0_i32_0, %c0_i32_1 : i32, i32, i32
  }
  func.func @transform_3(%arg0: i32) -> (i32, i32) {
    %c0_i32 = arith.constant 0 : i32
    %c0_i32_0 = arith.constant 0 : i32
    %c0_i32_1 = arith.constant 0 : i32
    return %c0_i32, %c0_i32_0 : i32, i32
  }
  func.func @transform_4(%arg0: i32) -> (i32, i32) {
    %c0_i32 = arith.constant 0 : i32
    %c0_i32_0 = arith.constant 0 : i32
    %c0_i32_1 = arith.constant 0 : i32
    return %c0_i32, %c0_i32_0 : i32, i32
  }
  func.func @transform_5(%arg0: i32) -> (i32, i32, i32) {
    %c0_i32 = arith.constant 0 : i32
    %c0_i32_0 = arith.constant 0 : i32
    %c0_i32_1 = arith.constant 0 : i32
    return %c0_i32, %arg0, %c0_i32_0 : i32, i32, i32
  }
}

</mosaic_0001>

<bundles_post_ra>
// kernel: temporal_gcn_forward.2
= control target key start
LH: loop header
LB: loop body
LE: loop exit
PB: predicated region body
PF: predicated region fallthrough
CT: control target
= control target key end

     0   :  { %s2707_s27 = smov 0   ;;  %s2709_s28 = smov 0   ;;  %s3303_s0 = inlined_call_operand.vmem [shape: f32[256,4], index: 0, kind: input, shape index: {}]   ;;  %s3304_s1 = inlined_call_operand.vmem [shape: f32[128,128], index: 1, kind: input, shape index: {}]   ;;  %s3305_s2 = inlined_call_operand.vmem [shape: f32[4,32], index: 2, kind: input, shape index: {}]   ;;  %s3306_s3 = inlined_call_operand.vmem [shape: f32[1,32], index: 3, kind: input, shape index: {}]   ;;  %s3307_s4 = inlined_call_operand.vmem [shape: f32[32,32], index: 4, kind: input, shape index: {}]   ;;  %s3308_s5 = inlined_call_operand.vmem [shape: f32[1,32], index: 5, kind: input, shape index: {}]   ;;  %s3309_s6 = inlined_call_operand.vmem [shape: f32[3,32,32], index: 6, kind: input, shape index: {}]   ;;  %s3310_s7 = inlined_call_operand.vmem [shape: f32[3,1,32], index: 7, kind: input, shape index: {}]   ;;  %s3311_s8 = inlined_call_operand.vmem [shape: f32[3,256,32], index: 8, kind: output, shape index: {}]  }
   0x1   :  { %s2711_s29 = smov 0  }
   0x2 LB: > { %s2720_s30 = sadd.s32 4294967295, %s2660_s29   ;;  %s2722_s9 = sadd.s32 1, %s2660_s29   ;;  %s2660_s29 = sphi %s2711_s29, %s3315_s29   ;;  %s2656_s28 = sphi %s2709_s28, %s3314_s28   ;;  %s2652_s27 = sphi %s2707_s27, %s3313_s27  }
   0x3   : > { %s195_s10 = ssub.s32 %s2660_s29, %s2722_s9  ;;  %s198_s11 = sadd.s32 1, %s2656_s28 }
   0x4   : > { %p196_p0 = scmp.eq.s32.totalorder %s195_s10, 0  ;;  %p208_p1 = scmp.ne.s32.totalorder %s2656_s28, %s2652_s27 }
   0x5   : > { %p209_p2 = scmp.eq.s32.totalorder %s2720_s30, 1  ;;  %p1954_p3 = scmp.ge.s32.totalorder %s2660_s29, 1 }
   0x6   : > { %s2730_s12 = scalar_select %p196_p0, %s2656_s28, %s198_s11  }
   0x7   : > { %p2732_p4 = por %p209_p2, %p208_p1  ;;  %p263_p5 = scmp.lt.s32.totalorder %s2660_s29, 3 }
   0x9   : > { %p264_p6 = pnand %p1954_p3, %p263_p5 }
   0xa   : > { %v367_v0 = vld [vmem:[%s3305_s2] sm:$0xf] (!%p264_p6)  ;;  %vm417_vm0 = vcmask (!%p264_p6), 1043456   ;;  %s1955_s16 = sshll.u32 (!%p264_p6), %s2720_s30, 4  ;;  %vm368_vm1 = vcmask (!%p264_p6), 31744   ;;  %v735_v35 = vld [vmem:[%s3307_s4 + $0x8] sm:$0xff] (!%p264_p6) }
   0xb   : > { %267 = sbr.rel (%p264_p6) target bundleno = 1239 (0x4d7), region = 52  ;;  %2251 = vmatprep.subr.msk.mxu0 (!%p264_p6), %vm417_vm0, %v367_v0  ;;  %p297_p7 = scmp.lt.s32.totalorder (!%p264_p6), %s1955_s16, 31  ;;  %v2780_v33 = vld [vmem:[%s3304_s1] sm:$0xff] (!%p264_p6)  ;;  %v736_v36 = vld [vmem:[%s3307_s4 + $0x10] sm:$0xff] (!%p264_p6)  ;;  %v737_v38 = vld [vmem:[%s3307_s4 + $0x18] sm:$0xff] (!%p264_p6) }
   0xc   : > { %2252 = vmatpush3.msk.msra.mxu0 (!%p264_p6), %vm417_vm0, %v367_v0  ;;  %2309 = vmatprep.mubr.f32.mxu1 (!%p264_p6), %v2780_v33  ;;  %v734_v34 = vld [vmem:[%s3307_s4] sm:$0xff] (!%p264_p6)  ;;  %v2553_v39 = vpack.c.bf16 (!%p264_p6), %v737_v38, %v736_v36  ;;  %v2798_v0 = vld [vmem:[%s3304_s1 + $0x8] sm:$0xff] (!%p264_p6)  ;;  %s293_s25 = sand.u32 (!%p264_p6), 1, %s2652_s27  }
   0xd   : > { %v2549_v37 = vpack.c.bf16 (!%p264_p6), %v735_v35, %v734_v34  ;;  %s2613_s26 = smul.u32 (!%p264_p6), 384, %s293_s25 }
   0xf   : > { %2550 = vmatprep.subr.bf16.mxu0 (!%p264_p6), %v2549_v37  ;;  %s3060_s27 = scalar_lea.vmem (!%p264_p6), [#allocation2], %s2613_s26 }
  0x12   : > { %s3317_s16 = smov (!%p297_p7, %s1955_s16), 31 }
  0x13   : > { %s1956_s17 = sshll.u32 %s3317_s16, 3 }
  0x14   : > { %s2743_s20 = scalar_lea.vmem %s3303_s0, %s1956_s17  ;;  %s2089_s17 = sshll.u32 (%p2732_p4), %s2720_s30, 7 }
  0x15   : > { %v303_v1 = vld [vmem:[%s2743_s20] sm:$0xff]  ;;  %v304_v2 = vld [vmem:[%s2743_s20 + $0x8] sm:$0xff]  ;;  %v305_v3 = vld [vmem:[%s2743_s20 + $0x10] sm:$0xff] }
  0x16   : > { %vm319_vm2 = vcmp.eq.f32.partialorder %v303_v1, -1.0  ;;  %vm320_vm3 = vcmp.eq.f32.partialorder %v304_v2, -1.0  ;;  %vm321_vm4 = vcmp.eq.f32.partialorder %v305_v3, -1.0  ;;  %v306_v4 = vld [vmem:[%s2743_s20 + $0x18] sm:$0xff]  ;;  %v307_v5 = vld [vmem:[%s2743_s20 + $0x20] sm:$0xff]  ;;  %v308_v9 = vld [vmem:[%s2743_s20 + $0x28] sm:$0xff] }
  0x17   : > { %v335_v6 = vsel %vm319_vm2, 0.0, %v303_v1  ;;  %v336_v7 = vsel %vm320_vm3, 0.0, %v304_v2  ;;  %v337_v8 = vsel %vm321_vm4, 0.0, %v305_v3  ;;  %vm322_vm5 = vcmp.eq.f32.partialorder %v306_v4, -1.0  ;;  %v309_v10 = vld [vmem:[%s2743_s20 + $0x30] sm:$0xff]  ;;  %v310_v13 = vld [vmem:[%s2743_s20 + $0x38] sm:$0xff] }
  0x18   : > { %2253 = vmatprep.mubr.msk.f32.mxu0 %vm368_vm1, %v335_v6  ;;  %vm323_vm6 = vcmp.eq.f32.partialorder %v307_v5, -1.0  ;;  %v338_v11 = vsel %vm322_vm5, 0.0, %v306_v4  ;;  %vm324_vm7 = vcmp.eq.f32.partialorder %v308_v9, -1.0  ;;  %vm325_vm8 = vcmp.eq.f32.partialorder %v309_v10, -1.0  ;;  %v311_v14 = vld [vmem:[%s2743_s20 + $0x40] sm:$0xff]  ;;  %v312_v17 = vld [vmem:[%s2743_s20 + $0x48] sm:$0xff] }
  0x19   : > { %2254 = vmatmul.mubr.msk.f32.vlgmr.msra.gmra.mrb[0].mxu0 %vm368_vm1, %v336_v7  ;;  %v339_v12 = vsel %vm323_vm6, 0.0, %v307_v5  ;;  %v340_v15 = vsel %vm324_vm7, 0.0, %v308_v9  ;;  %v341_v16 = vsel %vm325_vm8, 0.0, %v309_v10  ;;  %vm326_vm9 = vcmp.eq.f32.partialorder %v310_v13, -1.0  ;;  %v313_v18 = vld [vmem:[%s2743_s20 + $0x50] sm:$0xff]  ;;  %v314_v21 = vld [vmem:[%s2743_s20 + $0x58] sm:$0xff] }
  0x1a   : > { %2256 = vmatprep.mubr.msk.f32.mxu0 %vm368_vm1, %v337_v8  ;;  %vm327_vm10 = vcmp.eq.f32.partialorder %v311_v14, -1.0  ;;  %v342_v19 = vsel %vm326_vm9, 0.0, %v310_v13  ;;  %vm328_vm11 = vcmp.eq.f32.partialorder %v312_v17, -1.0  ;;  %vm329_vm12 = vcmp.eq.f32.partialorder %v313_v18, -1.0  ;;  %v315_v22 = vld [vmem:[%s2743_s20 + $0x60] sm:$0xff]  ;;  %v316_v25 = vld [vmem:[%s2743_s20 + $0x68] sm:$0xff]  ;;  %2552 = vmatpush3.bf16.msra.mxu0 %v2549_v37 }
  0x1b   : > { %v343_v20 = vsel %vm327_vm10, 0.0, %v311_v14  ;;  %v344_v23 = vsel %vm328_vm11, 0.0, %v312_v17  ;;  %v345_v24 = vsel %vm329_vm12, 0.0, %v313_v18  ;;  %vm330_vm13 = vcmp.eq.f32.partialorder %v314_v21, -1.0  ;;  %v317_v26 = vld [vmem:[%s2743_s20 + $0x70] sm:$0xff]  ;;  %v318_v29 = vld [vmem:[%s2743_s20 + $0x78] sm:$0xff]  ;;  %2554 = vmatprep.subr.bf16.mxu0 %v2553_v39  ;;  %s3198_s20 = scalar_lea.vmem (%p2732_p4), %s3311_s8, %s2089_s17 }
  0x1c   : > { %vm331_vm14 = vcmp.eq.f32.partialorder %v315_v22, -1.0  ;;  %v346_v27 = vsel %vm330_vm13, 0.0, %v314_v21  ;;  %vm332_vm15 = vcmp.eq.f32.partialorder %v316_v25, -1.0  ;;  %vm333_vm0 = vcmp.eq.f32.partialorder %v317_v26, -1.0  ;;  %v2803_v1 = vld [vmem:[%s3304_s1 + $0x10] sm:$0xff]  ;;  %v2810_v2 = vld [vmem:[%s3304_s1 + $0x18] sm:$0xff] }
  0x1d   : > { %2257 = vmatmul.mubr.msk.f32.gmra.mrb[2].mxu0 %vm368_vm1, %v338_v11  ;;  %v347_v28 = vsel %vm331_vm14, 0.0, %v315_v22  ;;  %v348_v30 = vsel %vm332_vm15, 0.0, %v316_v25  ;;  %v349_v31 = vsel %vm333_vm0, 0.0, %v317_v26  ;;  %vm334_vm2 = vcmp.eq.f32.partialorder %v318_v29, -1.0  ;;  %v2815_v3 = vld [vmem:[%s3304_s1 + $0x20] sm:$0xff]  ;;  %v2822_v4 = vld [vmem:[%s3304_s1 + $0x28] sm:$0xff] }
  0x1e   : > { %2259 = vmatprep.mubr.msk.f32.mxu0 %vm368_vm1, %v339_v12  ;;  %v350_v32 = vsel %vm334_vm2, 0.0, %v318_v29  ;;  %2556 = vmatpush3.bf16.msra.mxu0 %v2553_v39  ;;  %v2827_v5 = vld [vmem:[%s3304_s1 + $0x30] sm:$0xff]  ;;  %v2834_v6 = vld [vmem:[%s3304_s1 + $0x38] sm:$0xff]  ;;  %v2839_v7 = vld [vmem:[%s3304_s1 + $0x40] sm:$0xff] }
  0x1f   : > { %v2846_v8 = vld [vmem:[%s3304_s1 + $0x48] sm:$0xff]  ;;  %v2851_v9 = vld [vmem:[%s3304_s1 + $0x50] sm:$0xff]  ;;  %v2858_v10 = vld [vmem:[%s3304_s1 + $0x58] sm:$0xff] }
  0x20   : > { %v2863_v11 = vld [vmem:[%s3304_s1 + $0x60] sm:$0xff]  ;;  %v2870_v12 = vld [vmem:[%s3304_s1 + $0x68] sm:$0xff]  ;;  %v2875_v13 = vld [vmem:[%s3304_s1 + $0x70] sm:$0xff] }
  0x21   : > { %2260 = vmatmul.mubr.msk.f32.gmra.mrb[4].mxu0 %vm368_vm1, %v340_v15  ;;  %v2882_v14 = vld [vmem:[%s3304_s1 + $0x78] sm:$0xff]  ;;  %v1974_v15 = vld [vmem:[%s3306_s3] ss:$0 sm:$0xff] }
  0x22   : > { %2262 = vmatprep.mubr.msk.f32.mxu0 %vm368_vm1, %v341_v16 }
  0x25   : > { %2263 = vmatmul.mubr.msk.f32.gmra.mrb[6].mxu0 %vm368_vm1, %v342_v19 }
  0x26   : > { %2265 = vmatprep.mubr.msk.f32.mxu0 %vm368_vm1, %v343_v20 }
  0x29   : > { %2266 = vmatmul.mubr.msk.f32.gmra.mrb[8].mxu0 %vm368_vm1, %v344_v23 }
  0x2a   : > { %2268 = vmatprep.mubr.msk.f32.mxu0 %vm368_vm1, %v345_v24 }
  0x2d   : > { %2269 = vmatmul.mubr.msk.f32.gmra.mrb[10].mxu0 %vm368_vm1, %v346_v27 }
  0x2e   : > { %2271 = vmatprep.mubr.msk.f32.mxu0 %vm368_vm1, %v347_v28 }
  0x31   : > { %2272 = vmatmul.mubr.msk.f32.gmra.mrb[12].mxu0 %vm368_vm1, %v348_v30 }
  0x32   : > { %2274 = vmatprep.mubr.msk.f32.mxu0 %vm368_vm1, %v349_v31 }
  0x35   : > { %2275 = vmatmul.mubr.msk.f32.gmra.mrb[14].mxu0 %vm368_vm1, %v350_v32  ;;  %vm738_vm1 = vcmask 261120  }
  0xec   : > { %v2255_v40 = vpop.f32.mrb[0].mxu0 }
  0xed   : > { %v487_v41 = vpop.f32.mrb[1].mxu0 }
  0xee   : > { %v2517_v42 = vpack.c.bf16 %v2255_v40, %v487_v41 }
  0xf0   : > { %v2258_v43 = vpop.f32.mrb[2].mxu0  ;;  %2518 = vmatprep.subr.bf16.mxu1 %v2517_v42 }
  0xf1   : > { %v497_v44 = vpop.f32.mrb[3].mxu0  ;;  %2520 = vmatpush3.bf16.msra.mxu1 %v2517_v42 }
  0xf2   : > { %v2521_v45 = vpack.c.bf16 %v2258_v43, %v497_v44 }
  0xf4   : > { %v2261_v46 = vpop.f32.mrb[4].mxu0  ;;  %2522 = vmatprep.subr.bf16.mxu1 %v2521_v45 }
  0xf5   : > { %v507_v47 = vpop.f32.mrb[5].mxu0  ;;  %2524 = vmatpush3.bf16.msra.mxu1 %v2521_v45 }
  0xf6   : > { %v2525_v48 = vpack.c.bf16 %v2261_v46, %v507_v47 }
  0xf8   : > { %v2264_v49 = vpop.f32.mrb[6].mxu0  ;;  %2526 = vmatprep.subr.bf16.mxu1 %v2525_v48 }
  0xf9   : > { %v517_v50 = vpop.f32.mrb[7].mxu0  ;;  %2528 = vmatpush3.bf16.msra.mxu1 %v2525_v48 }
  0xfa   : > { %v2529_v51 = vpack.c.bf16 %v2264_v49, %v517_v50 }
  0xfc   : > { %v2267_v52 = vpop.f32.mrb[8].mxu0  ;;  %2530 = vmatprep.subr.bf16.mxu1 %v2529_v51 }
  0xfd   : > { %v527_v53 = vpop.f32.mrb[9].mxu0  ;;  %2532 = vmatpush3.bf16.msra.mxu1 %v2529_v51 }
  0xfe   : > { %v2533_v54 = vpack.c.bf16 %v2267_v52, %v527_v53 }
 0x100   : > { %v2270_v55 = vpop.f32.mrb[10].mxu0  ;;  %2534 = vmatprep.subr.bf16.mxu1 %v2533_v54 }
 0x101   : > { %v537_v56 = vpop.f32.mrb[11].mxu0  ;;  %2536 = vmatpush3.bf16.msra.mxu1 %v2533_v54 }
 0x102   : > { %v2537_v57 = vpack.c.bf16 %v2270_v55, %v537_v56 }
 0x104   : > { %v2273_v58 = vpop.f32.mrb[12].mxu0  ;;  %2538 = vmatprep.subr.bf16.mxu1 %v2537_v57 }
 0x105   : > { %v547_v59 = vpop.f32.mrb[13].mxu0  ;;  %2540 = vmatpush3.bf16.msra.mxu1 %v2537_v57 }
 0x106   : > { %v2541_v60 = vpack.c.bf16 %v2273_v58, %v547_v59 }
 0x108   : > { %v2276_v61 = vpop.f32.mrb[14].mxu0  ;;  %2542 = vmatprep.subr.bf16.mxu1 %v2541_v60 }
 0x109   : > { %v557_v62 = vpop.f32.mrb[15].mxu0  ;;  %2544 = vmatpush3.bf16.msra.mxu1 %v2541_v60 }
 0x10a   : > { %v2545_v63 = vpack.c.bf16 %v2276_v61, %v557_v62 }
 0x10c   : > { %2546 = vmatprep.subr.bf16.mxu1 %v2545_v63 }
 0x10d   : > { %2548 = vmatpush3.bf16.msra.mxu1 %v2545_v63 }
 0x110   : > { %2310 = vmatmul.mubr.f32.vlgmr.msra.gmra.mrb[0].mxu1 %v2798_v0 }
 0x111   : > { %2312 = vmatprep.mubr.f32.mxu1 %v2803_v1 }
 0x114   : > { %2313 = vmatmul.mubr.f32.gmra.mrb[2].mxu1 %v2810_v2 }
 0x115   : > { %2315 = vmatprep.mubr.f32.mxu1 %v2815_v3 }
 0x118   : > { %2316 = vmatmul.mubr.f32.gmra.mrb[4].mxu1 %v2822_v4 }
 0x119   : > { %2318 = vmatprep.mubr.f32.mxu1 %v2827_v5 }
 0x11c   : > { %2319 = vmatmul.mubr.f32.gmra.mrb[6].mxu1 %v2834_v6 }
 0x11d   : > { %2321 = vmatprep.mubr.f32.mxu1 %v2839_v7 }
 0x120   : > { %2322 = vmatmul.mubr.f32.gmra.mrb[8].mxu1 %v2846_v8 }
 0x121   : > { %2324 = vmatprep.mubr.f32.mxu1 %v2851_v9 }
 0x124   : > { %2325 = vmatmul.mubr.f32.gmra.mrb[10].mxu1 %v2858_v10 }
 0x125   : > { %2327 = vmatprep.mubr.f32.mxu1 %v2863_v11 }
 0x128   : > { %2328 = vmatmul.mubr.f32.gmra.mrb[12].mxu1 %v2870_v12 }
 0x129   : > { %2330 = vmatprep.mubr.f32.mxu1 %v2875_v13 }
 0x12c   : > { %2331 = vmatmul.mubr.f32.gmra.mrb[14].mxu1 %v2882_v14 }
 0x12d   : > { %2397 = vmatprep.mubr.f32.mxu1 %v2780_v33 }
 0x1e3   : > { %v2311_v16 = vpop.f32.mrb[0].mxu1 }
 0x1e4   : > { %v645_v17 = vadd.f32 %v2311_v16, %v1974_v15  ;;  %v639_v18 = vpop.f32.mrb[1].mxu1  ;;  %v1100_v16 = vld [vmem:[%s3309_s6] sm:$0xff] }
 0x1e5   : > { %v640_v19 = vadd.f32 %v1974_v15, %v639_v18 }
 0x1e6   : > { %v719_v22 = vmax.f32 %v645_v17, 0.0  ;;  %v1101_v17 = vld [vmem:[%s3309_s6 + $0x8] sm:$0xff] }
 0x1e7   : > { %v718_v20 = vmax.f32 %v640_v19, 0.0  ;;  %v2314_v21 = vpop.f32.mrb[2].mxu1  ;;  %v2589_v18 = vpack.c.bf16 %v1101_v17, %v1100_v16  ;;  %v1103_v19 = vld [vmem:[%s3309_s6 + $0x18] sm:$0xff] }
 0x1e8   : > { %v655_v23 = vadd.f32 %v2314_v21, %v1974_v15  ;;  %v649_v24 = vpop.f32.mrb[3].mxu1 }
 0x1e9   : > { %v650_v25 = vadd.f32 %v1974_v15, %v649_v24  ;;  %2341 = vmatprep.mubr.msk.f32.mxu0 %vm738_vm1, %v718_v20  ;;  %2590 = vmatprep.subr.bf16.mxu0 %v2589_v18 }
 0x1ea   : > { %2342 = vmatmul.mubr.msk.f32.vlgmr.msra.gmra.mrb[16].mxu0 %vm738_vm1, %v719_v22  ;;  %v721_v28 = vmax.f32 %v655_v23, 0.0 }
 0x1eb   : > { %v720_v26 = vmax.f32 %v650_v25, 0.0  ;;  %v2317_v27 = vpop.f32.mrb[4].mxu1  ;;  %2592 = vmatpush3.bf16.msra.mxu0 %v2589_v18 }
 0x1ec   : > { %v665_v29 = vadd.f32 %v2317_v27, %v1974_v15  ;;  %v659_v30 = vpop.f32.mrb[5].mxu1 }
 0x1ed   : > { %v660_v31 = vadd.f32 %v1974_v15, %v659_v30  ;;  %2344 = vmatprep.mubr.msk.f32.mxu0 %vm738_vm1, %v720_v26 }
 0x1ee   : > { %2345 = vmatmul.mubr.msk.f32.gmra.mrb[18].mxu0 %vm738_vm1, %v721_v28  ;;  %v723_v34 = vmax.f32 %v665_v29, 0.0 }
 0x1ef   : > { %v722_v32 = vmax.f32 %v660_v31, 0.0  ;;  %v2320_v33 = vpop.f32.mrb[6].mxu1 }
 0x1f0   : > { %v675_v35 = vadd.f32 %v2320_v33, %v1974_v15  ;;  %v669_v36 = vpop.f32.mrb[7].mxu1 }
 0x1f1   : > { %v670_v37 = vadd.f32 %v1974_v15, %v669_v36  ;;  %2347 = vmatprep.mubr.msk.f32.mxu0 %vm738_vm1, %v722_v32 }
 0x1f2   : > { %2348 = vmatmul.mubr.msk.f32.gmra.mrb[20].mxu0 %vm738_vm1, %v723_v34  ;;  %v725_v40 = vmax.f32 %v675_v35, 0.0 }
 0x1f3   : > { %v724_v38 = vmax.f32 %v670_v37, 0.0  ;;  %v2323_v39 = vpop.f32.mrb[8].mxu1 }
 0x1f4   : > { %v685_v41 = vadd.f32 %v2323_v39, %v1974_v15  ;;  %v679_v42 = vpop.f32.mrb[9].mxu1 }
 0x1f5   : > { %v680_v43 = vadd.f32 %v1974_v15, %v679_v42  ;;  %2350 = vmatprep.mubr.msk.f32.mxu0 %vm738_vm1, %v724_v38  ;;  %v2009_v42 = vld [vmem:[%s3309_s6 + $0x20] sm:$0xff] }
 0x1f6   : > { %2351 = vmatmul.mubr.msk.f32.gmra.mrb[22].mxu0 %vm738_vm1, %v725_v40  ;;  %v727_v46 = vmax.f32 %v685_v41, 0.0 }
 0x1f7   : > { %v726_v44 = vmax.f32 %v680_v43, 0.0  ;;  %v2326_v45 = vpop.f32.mrb[10].mxu1  ;;  %v2010_v43 = vld [vmem:[%s3309_s6 + $0x28] sm:$0xff] }
 0x1f8   : > { %v695_v47 = vadd.f32 %v2326_v45, %v1974_v15  ;;  %v689_v48 = vpop.f32.mrb[11].mxu1 }
 0x1f9   : > { %v690_v49 = vadd.f32 %v1974_v15, %v689_v48  ;;  %2353 = vmatprep.mubr.msk.f32.mxu0 %vm738_vm1, %v726_v44 }
 0x1fa   : > { %2354 = vmatmul.mubr.msk.f32.gmra.mrb[24].mxu0 %vm738_vm1, %v727_v46  ;;  %v729_v52 = vmax.f32 %v695_v47, 0.0  ;;  %v2597_v47 = vpack.c.bf16 %v2010_v43, %v2009_v42  ;;  %v3049_v42 = vld [vmem:[%s3310_s7] ss:$0 sm:$0xff]  ;;  %v3054_v43 = vld [vmem:[%s3310_s7 + $0x1] ss:$0 sm:$0xff] }
 0x1fb   : > { %v728_v50 = vmax.f32 %v690_v49, 0.0  ;;  %v2329_v51 = vpop.f32.mrb[12].mxu1 }
 0x1fc   : > { %v705_v53 = vadd.f32 %v2329_v51, %v1974_v15  ;;  %v699_v54 = vpop.f32.mrb[13].mxu1 }
 0x1fd   : > { %v700_v55 = vadd.f32 %v1974_v15, %v699_v54  ;;  %2356 = vmatprep.mubr.msk.f32.mxu0 %vm738_vm1, %v728_v50 }
 0x1fe   : > { %2357 = vmatmul.mubr.msk.f32.gmra.mrb[26].mxu0 %vm738_vm1, %v729_v52  ;;  %v731_v58 = vmax.f32 %v705_v53, 0.0 }
 0x1ff   : > { %v730_v56 = vmax.f32 %v700_v55, 0.0  ;;  %v2332_v57 = vpop.f32.mrb[14].mxu1 }
 0x200   : > { %v715_v59 = vadd.f32 %v2332_v57, %v1974_v15  ;;  %v709_v60 = vpop.f32.mrb[15].mxu1 }
 0x201   : > { %v710_v61 = vadd.f32 %v1974_v15, %v709_v60  ;;  %2359 = vmatprep.mubr.msk.f32.mxu0 %vm738_vm1, %v730_v56  ;;  %v1102_v15 = vld [vmem:[%s3309_s6 + $0x10] sm:$0xff] }
 0x202   : > { %2360 = vmatmul.mubr.msk.f32.gmra.mrb[28].mxu0 %vm738_vm1, %v731_v58  ;;  %v733_v63 = vmax.f32 %v715_v59, 0.0  ;;  %v2593_v20 = vpack.c.bf16 %v1103_v19, %v1102_v15 }
 0x203   : > { %v732_v62 = vmax.f32 %v710_v61, 0.0 }
 0x204   : > { %2594 = vmatprep.subr.bf16.mxu0 %v2593_v20 }
 0x205   : > { %2362 = vmatprep.mubr.msk.f32.mxu0 %vm738_vm1, %v732_v62  ;;  %2596 = vmatpush3.bf16.msra.mxu0 %v2593_v20 }
 0x206   : > { %2363 = vmatmul.mubr.msk.f32.gmra.mrb[30].mxu0 %vm738_vm1, %v733_v63 }
 0x2bd   : > { %v2343_v21 = vpop.f32.mrb[16].mxu0 }
 0x2be   : > { %v853_v22 = vpop.f32.mrb[17].mxu0 }
 0x2bf   : > { %v2557_v23 = vpack.c.bf16 %v2343_v21, %v853_v22 }
 0x2c1   : > { %v2346_v24 = vpop.f32.mrb[18].mxu0  ;;  %2558 = vmatprep.subr.bf16.mxu1 %v2557_v23 }
 0x2c2   : > { %v863_v25 = vpop.f32.mrb[19].mxu0  ;;  %2560 = vmatpush3.bf16.msra.mxu1 %v2557_v23 }
 0x2c3   : > { %v2561_v26 = vpack.c.bf16 %v2346_v24, %v863_v25 }
 0x2c5   : > { %v2349_v27 = vpop.f32.mrb[20].mxu0  ;;  %2562 = vmatprep.subr.bf16.mxu1 %v2561_v26 }
 0x2c6   : > { %v873_v28 = vpop.f32.mrb[21].mxu0  ;;  %2564 = vmatpush3.bf16.msra.mxu1 %v2561_v26 }
 0x2c7   : > { %v2565_v29 = vpack.c.bf16 %v2349_v27, %v873_v28 }
 0x2c9   : > { %v2352_v30 = vpop.f32.mrb[22].mxu0  ;;  %2566 = vmatprep.subr.bf16.mxu1 %v2565_v29 }
 0x2ca   : > { %v883_v31 = vpop.f32.mrb[23].mxu0  ;;  %2568 = vmatpush3.bf16.msra.mxu1 %v2565_v29 }
 0x2cb   : > { %v2569_v32 = vpack.c.bf16 %v2352_v30, %v883_v31 }
 0x2cd   : > { %v2355_v33 = vpop.f32.mrb[24].mxu0  ;;  %2570 = vmatprep.subr.bf16.mxu1 %v2569_v32 }
 0x2ce   : > { %v893_v34 = vpop.f32.mrb[25].mxu0  ;;  %2572 = vmatpush3.bf16.msra.mxu1 %v2569_v32 }
 0x2cf   : > { %v2573_v35 = vpack.c.bf16 %v2355_v33, %v893_v34 }
 0x2d1   : > { %v2358_v36 = vpop.f32.mrb[26].mxu0  ;;  %2574 = vmatprep.subr.bf16.mxu1 %v2573_v35 }
 0x2d2   : > { %v903_v37 = vpop.f32.mrb[27].mxu0  ;;  %2576 = vmatpush3.bf16.msra.mxu1 %v2573_v35 }
 0x2d3   : > { %v2577_v38 = vpack.c.bf16 %v2358_v36, %v903_v37 }
 0x2d5   : > { %v2361_v39 = vpop.f32.mrb[28].mxu0  ;;  %2578 = vmatprep.subr.bf16.mxu1 %v2577_v38 }
 0x2d6   : > { %v913_v40 = vpop.f32.mrb[29].mxu0  ;;  %2580 = vmatpush3.bf16.msra.mxu1 %v2577_v38 }
 0x2d7   : > { %v2581_v41 = vpack.c.bf16 %v2361_v39, %v913_v40 }
 0x2d9   : > { %v2364_v44 = vpop.f32.mrb[30].mxu0  ;;  %2582 = vmatprep.subr.bf16.mxu1 %v2581_v41 }
 0x2da   : > { %v923_v45 = vpop.f32.mrb[31].mxu0  ;;  %2584 = vmatpush3.bf16.msra.mxu1 %v2581_v41 }
 0x2db   : > { %v2585_v46 = vpack.c.bf16 %v2364_v44, %v923_v45 }
 0x2dd   : > { %2586 = vmatprep.subr.bf16.mxu1 %v2585_v46 }
 0x2de   : > { %2588 = vmatpush3.bf16.msra.mxu1 %v2585_v46 }
 0x2df   : > { %2598 = vmatprep.subr.bf16.mxu1 %v2597_v47 }
 0x2e1   : > { %2398 = vmatmul.mubr.f32.vlgmr.msra.gmra.mrb[16].mxu1 %v2798_v0  ;;  %v2011_v0 = vld [vmem:[%s3309_s6 + $0x30] sm:$0xff] }
 0x2e2   : > { %2400 = vmatprep.mubr.f32.mxu1 %v2803_v1  ;;  %2600 = vmatpush3.bf16.msra.mxu1 %v2597_v47  ;;  %v2012_v1 = vld [vmem:[%s3309_s6 + $0x38] sm:$0xff] }
 0x2e5   : > { %2401 = vmatmul.mubr.f32.gmra.mrb[18].mxu1 %v2810_v2  ;;  %v2601_v2 = vpack.c.bf16 %v2012_v1, %v2011_v0 }
 0x2e6   : > { %2403 = vmatprep.mubr.f32.mxu1 %v2815_v3  ;;  %v2047_v3 = vld [vmem:[%s3309_s6 + $0x40] sm:$0xff] }
 0x2e7   : > { %2602 = vmatprep.subr.bf16.mxu1 %v2601_v2 }
 0x2e8   : > { %2604 = vmatpush3.bf16.msra.mxu1 %v2601_v2 }
 0x2e9   : > { %2404 = vmatmul.mubr.f32.gmra.mrb[20].mxu1 %v2822_v4  ;;  %v2048_v4 = vld [vmem:[%s3309_s6 + $0x48] sm:$0xff] }
 0x2ea   : > { %2406 = vmatprep.mubr.f32.mxu1 %v2827_v5  ;;  %v2605_v5 = vpack.c.bf16 %v2048_v4, %v2047_v3 }
 0x2ec   : > { %2606 = vmatprep.subr.bf16.mxu0 %v2605_v5 }
 0x2ed   : > { %2407 = vmatmul.mubr.f32.gmra.mrb[22].mxu1 %v2834_v6  ;;  %v2953_v6 = vld [vmem:[%s3308_s5] ss:$0 sm:$0xff] }
 0x2ee   : > { %2409 = vmatprep.mubr.f32.mxu1 %v2839_v7 }
 0x2f1   : > { %2410 = vmatmul.mubr.f32.gmra.mrb[24].mxu1 %v2846_v8 }
 0x2f2   : > { %2412 = vmatprep.mubr.f32.mxu1 %v2851_v9 }
 0x2f5   : > { %2413 = vmatmul.mubr.f32.gmra.mrb[26].mxu1 %v2858_v10 }
 0x2f6   : > { %2415 = vmatprep.mubr.f32.mxu1 %v2863_v11  ;;  %v2049_v11 = vld [vmem:[%s3309_s6 + $0x50] sm:$0xff] }
 0x2f9   : > { %2416 = vmatmul.mubr.f32.gmra.mrb[28].mxu1 %v2870_v12  ;;  %v2050_v12 = vld [vmem:[%s3309_s6 + $0x58] sm:$0xff] }
 0x2fa   : > { %2418 = vmatprep.mubr.f32.mxu1 %v2875_v13  ;;  %v2609_v51 = vpack.c.bf16 %v2050_v12, %v2049_v11 }
 0x2fd   : > { %2419 = vmatmul.mubr.f32.gmra.mrb[30].mxu1 %v2882_v14 }
 0x3b4   : > { %v2399_v7 = vpop.f32.mrb[16].mxu1 }
 0x3b5   : > { %v1011_v8 = vadd.f32 %v2399_v7, %v2953_v6  ;;  %v1005_v9 = vpop.f32.mrb[17].mxu1 }
 0x3b6   : > { %v1006_v10 = vadd.f32 %v2953_v6, %v1005_v9 }
 0x3b7   : > { %v2965_v48 = vmax.f32 %v1011_v8, 0.0 }
 0x3b8   : > { %v2963_v13 = vmax.f32 %v1006_v10, 0.0  ;;  %v2402_v14 = vpop.f32.mrb[18].mxu1 }
 0x3b9   : > { %v1021_v49 = vadd.f32 %v2402_v14, %v2953_v6  ;;  %v1015_v50 = vpop.f32.mrb[19].mxu1 }
 0x3ba   : > { %v1016_v52 = vadd.f32 %v2953_v6, %v1015_v50  ;;  %2429 = vmatprep.mubr.msk.f32.mxu0 %vm738_vm1, %v2963_v13  ;;  %2461 = vmatprep.mubr.msk.f32.mxu1 %vm738_vm1, %v2963_v13 }
 0x3bb   : > { %2430 = vmatmul.mubr.msk.f32.vlgmr.msra.gmra.mrb[32].mxu0 %vm738_vm1, %v2965_v48  ;;  %2462 = vmatmul.mubr.msk.f32.vlgmr.msra.gmra.mrb[32].mxu1 %vm738_vm1, %v2965_v48  ;;  %v2979_v55 = vmax.f32 %v1021_v49, 0.0 }
 0x3bc   : > { %v2977_v53 = vmax.f32 %v1016_v52, 0.0  ;;  %v2405_v54 = vpop.f32.mrb[20].mxu1  ;;  %2608 = vmatpush3.bf16.msra.mxu0 %v2605_v5 }
 0x3bd   : > { %v1031_v56 = vadd.f32 %v2405_v54, %v2953_v6  ;;  %v1025_v57 = vpop.f32.mrb[21].mxu1  ;;  %2610 = vmatprep.subr.bf16.mxu0 %v2609_v51 }
 0x3be   : > { %v1026_v58 = vadd.f32 %v2953_v6, %v1025_v57  ;;  %2432 = vmatprep.mubr.msk.f32.mxu0 %vm738_vm1, %v2977_v53  ;;  %2464 = vmatprep.mubr.msk.f32.mxu1 %vm738_vm1, %v2977_v53 }
 0x3bf   : > { %2433 = vmatmul.mubr.msk.f32.gmra.mrb[34].mxu0 %vm738_vm1, %v2979_v55  ;;  %2465 = vmatmul.mubr.msk.f32.gmra.mrb[34].mxu1 %vm738_vm1, %v2979_v55  ;;  %v1089_v61 = vmax.f32 %v1031_v56, 0.0 }
 0x3c0   : > { %v1088_v59 = vmax.f32 %v1026_v58, 0.0  ;;  %v2408_v60 = vpop.f32.mrb[22].mxu1  ;;  %2612 = vmatpush3.bf16.msra.mxu0 %v2609_v51 }
 0x3c1   : > { %v1041_v62 = vadd.f32 %v2408_v60, %v2953_v6  ;;  %v1035_v63 = vpop.f32.mrb[23].mxu1 }
 0x3c2   : > { %v1036_v16 = vadd.f32 %v2953_v6, %v1035_v63  ;;  %2435 = vmatprep.mubr.msk.f32.mxu0 %vm738_vm1, %v1088_v59  ;;  %2467 = vmatprep.mubr.msk.f32.mxu1 %vm738_vm1, %v1088_v59 }
 0x3c3   : > { %2436 = vmatmul.mubr.msk.f32.gmra.mrb[36].mxu0 %vm738_vm1, %v1089_v61  ;;  %2468 = vmatmul.mubr.msk.f32.gmra.mrb[36].mxu1 %vm738_vm1, %v1089_v61  ;;  %v1091_v18 = vmax.f32 %v1041_v62, 0.0 }
 0x3c4   : > { %v1090_v17 = vmax.f32 %v1036_v16, 0.0  ;;  %v2411_v15 = vpop.f32.mrb[24].mxu1 }
 0x3c5   : > { %v1051_v19 = vadd.f32 %v2411_v15, %v2953_v6  ;;  %v1045_v20 = vpop.f32.mrb[25].mxu1 }
 0x3c6   : > { %v1046_v21 = vadd.f32 %v2953_v6, %v1045_v20  ;;  %2438 = vmatprep.mubr.msk.f32.mxu0 %vm738_vm1, %v1090_v17  ;;  %2470 = vmatprep.mubr.msk.f32.mxu1 %vm738_vm1, %v1090_v17 }
 0x3c7   : > { %2439 = vmatmul.mubr.msk.f32.gmra.mrb[38].mxu0 %vm738_vm1, %v1091_v18  ;;  %2471 = vmatmul.mubr.msk.f32.gmra.mrb[38].mxu1 %vm738_vm1, %v1091_v18  ;;  %v1093_v24 = vmax.f32 %v1051_v19, 0.0 }
 0x3c8   : > { %v1092_v22 = vmax.f32 %v1046_v21, 0.0  ;;  %v2414_v23 = vpop.f32.mrb[26].mxu1 }
 0x3c9   : > { %v1061_v25 = vadd.f32 %v2414_v23, %v2953_v6  ;;  %v1055_v26 = vpop.f32.mrb[27].mxu1 }
 0x3ca   : > { %v1056_v27 = vadd.f32 %v2953_v6, %v1055_v26  ;;  %2441 = vmatprep.mubr.msk.f32.mxu0 %vm738_vm1, %v1092_v22  ;;  %2473 = vmatprep.mubr.msk.f32.mxu1 %vm738_vm1, %v1092_v22 }
 0x3cb   : > { %2442 = vmatmul.mubr.msk.f32.gmra.mrb[40].mxu0 %vm738_vm1, %v1093_v24  ;;  %2474 = vmatmul.mubr.msk.f32.gmra.mrb[40].mxu1 %vm738_vm1, %v1093_v24  ;;  %v1095_v30 = vmax.f32 %v1061_v25, 0.0 }
 0x3cc   : > { %v1094_v28 = vmax.f32 %v1056_v27, 0.0  ;;  %v2417_v29 = vpop.f32.mrb[28].mxu1 }
 0x3cd   : > { %v1071_v31 = vadd.f32 %v2417_v29, %v2953_v6  ;;  %v1065_v32 = vpop.f32.mrb[29].mxu1 }
 0x3ce   : > { %v1066_v33 = vadd.f32 %v2953_v6, %v1065_v32  ;;  %2444 = vmatprep.mubr.msk.f32.mxu0 %vm738_vm1, %v1094_v28  ;;  %2476 = vmatprep.mubr.msk.f32.mxu1 %vm738_vm1, %v1094_v28 }
 0x3cf   : > { %2445 = vmatmul.mubr.msk.f32.gmra.mrb[42].mxu0 %vm738_vm1, %v1095_v30  ;;  %2477 = vmatmul.mubr.msk.f32.gmra.mrb[42].mxu1 %vm738_vm1, %v1095_v30  ;;  %v1097_v36 = vmax.f32 %v1071_v31, 0.0 }
 0x3d0   : > { %v1096_v34 = vmax.f32 %v1066_v33, 0.0  ;;  %v2420_v35 = vpop.f32.mrb[30].mxu1 }
 0x3d1   : > { %v1081_v37 = vadd.f32 %v2420_v35, %v2953_v6  ;;  %v1075_v38 = vpop.f32.mrb[31].mxu1 }
 0x3d2   : > { %v1076_v39 = vadd.f32 %v2953_v6, %v1075_v38  ;;  %2447 = vmatprep.mubr.msk.f32.mxu0 %vm738_vm1, %v1096_v34  ;;  %2479 = vmatprep.mubr.msk.f32.mxu1 %vm738_vm1, %v1096_v34 }
 0x3d3   : > { %2448 = vmatmul.mubr.msk.f32.gmra.mrb[44].mxu0 %vm738_vm1, %v1097_v36  ;;  %2480 = vmatmul.mubr.msk.f32.gmra.mrb[44].mxu1 %vm738_vm1, %v1097_v36  ;;  %v1099_v41 = vmax.f32 %v1081_v37, 0.0 }
 0x3d4   : > { %v1098_v40 = vmax.f32 %v1076_v39, 0.0 }
 0x3d6   : > { %2450 = vmatprep.mubr.msk.f32.mxu0 %vm738_vm1, %v1098_v40  ;;  %2482 = vmatprep.mubr.msk.f32.mxu1 %vm738_vm1, %v1098_v40 }
 0x3d7   : > { %2451 = vmatmul.mubr.msk.f32.gmra.mrb[46].mxu0 %vm738_vm1, %v1099_v41  ;;  %2483 = vmatmul.mubr.msk.f32.gmra.mrb[46].mxu1 %vm738_vm1, %v1099_v41 }
 0x3d8   : > { %2493 = vmatprep.mubr.msk.f32.mxu0 %vm738_vm1, %v2963_v13 }
 0x3db   : > { %2494 = vmatmul.mubr.msk.f32.vlgmr.msra.gmra.mrb[48].mxu0 %vm738_vm1, %v2965_v48 }
 0x3dc   : > { %2496 = vmatprep.mubr.msk.f32.mxu0 %vm738_vm1, %v2977_v53 }
 0x3df   : > { %2497 = vmatmul.mubr.msk.f32.gmra.mrb[50].mxu0 %vm738_vm1, %v2979_v55 }
 0x3e0   : > { %2499 = vmatprep.mubr.msk.f32.mxu0 %vm738_vm1, %v1088_v59 }
 0x3e3   : > { %2500 = vmatmul.mubr.msk.f32.gmra.mrb[52].mxu0 %vm738_vm1, %v1089_v61 }
 0x3e4   : > { %2502 = vmatprep.mubr.msk.f32.mxu0 %vm738_vm1, %v1090_v17 }
 0x3e7   : > { %2503 = vmatmul.mubr.msk.f32.gmra.mrb[54].mxu0 %vm738_vm1, %v1091_v18 }
 0x3e8   : > { %2505 = vmatprep.mubr.msk.f32.mxu0 %vm738_vm1, %v1092_v22 }
 0x3eb   : > { %2506 = vmatmul.mubr.msk.f32.gmra.mrb[56].mxu0 %vm738_vm1, %v1093_v24 }
 0x3ec   : > { %2508 = vmatprep.mubr.msk.f32.mxu0 %vm738_vm1, %v1094_v28 }
 0x3ef   : > { %2509 = vmatmul.mubr.msk.f32.gmra.mrb[58].mxu0 %vm738_vm1, %v1095_v30 }
 0x3f0   : > { %2511 = vmatprep.mubr.msk.f32.mxu0 %vm738_vm1, %v1096_v34 }
 0x3f3   : > { %2512 = vmatmul.mubr.msk.f32.gmra.mrb[60].mxu0 %vm738_vm1, %v1097_v36 }
 0x3f4   : > { %2514 = vmatprep.mubr.msk.f32.mxu0 %vm738_vm1, %v1098_v40 }
 0x3f7   : > { %2515 = vmatmul.mubr.msk.f32.gmra.mrb[62].mxu0 %vm738_vm1, %v1099_v41 }
 0x48e   : > { %v2431_v44 = vpop.f32.mrb[32].mxu0  ;;  %v2463_v45 = vpop.f32.mrb[32].mxu1 }
 0x48f   : > { %v1231_v46 = vadd.f32 %v2431_v44, %v3049_v42  ;;  %v1405_v47 = vadd.f32 %v2463_v45, %v3054_v43  ;;  %v1225_v0 = vpop.f32.mrb[33].mxu0  ;;  %v1399_v1 = vpop.f32.mrb[33].mxu1 }
 0x490   : > { %v1226_v2 = vadd.f32 %v3049_v42, %v1225_v0  ;;  %v1400_v3 = vadd.f32 %v3054_v43, %v1399_v1 }
 0x491   : > { %1305 = vst.msk [vmem:[%s3060_s27 + $0x8] sm:$0xff] %vm738_vm1, %v1231_v46  ;;  %2032 = vst.msk [vmem:[%s3060_s27 + $0x88] sm:$0xff] %vm738_vm1, %v1405_v47  ;;  %v2052_v46 = vld [vmem:[%s3310_s7 + $0x2] ss:$0 sm:$0xff] }
 0x492   : > { %1304 = vst.msk [vmem:[%s3060_s27] sm:$0xff] %vm738_vm1, %v1226_v2  ;;  %2031 = vst.msk [vmem:[%s3060_s27 + $0x80] sm:$0xff] %vm738_vm1, %v1400_v3  ;;  %v2434_v4 = vpop.f32.mrb[34].mxu0  ;;  %v2466_v5 = vpop.f32.mrb[34].mxu1 }
 0x493   : > { %v1241_v6 = vadd.f32 %v2434_v4, %v3049_v42  ;;  %v1415_v7 = vadd.f32 %v2466_v5, %v3054_v43  ;;  %v1235_v8 = vpop.f32.mrb[35].mxu0  ;;  %v1409_v9 = vpop.f32.mrb[35].mxu1 }
 0x494   : > { %v1236_v10 = vadd.f32 %v3049_v42, %v1235_v8  ;;  %v1410_v11 = vadd.f32 %v3054_v43, %v1409_v9 }
 0x495   : > { %1307 = vst.msk [vmem:[%s3060_s27 + $0x18] sm:$0xff] %vm738_vm1, %v1241_v6  ;;  %2034 = vst.msk [vmem:[%s3060_s27 + $0x98] sm:$0xff] %vm738_vm1, %v1415_v7 }
 0x496   : > { %1306 = vst.msk [vmem:[%s3060_s27 + $0x10] sm:$0xff] %vm738_vm1, %v1236_v10  ;;  %2033 = vst.msk [vmem:[%s3060_s27 + $0x90] sm:$0xff] %vm738_vm1, %v1410_v11  ;;  %v2437_v12 = vpop.f32.mrb[36].mxu0  ;;  %v2469_v13 = vpop.f32.mrb[36].mxu1 }
 0x497   : > { %v1251_v14 = vadd.f32 %v2437_v12, %v3049_v42  ;;  %v1425_v48 = vadd.f32 %v2469_v13, %v3054_v43  ;;  %v1245_v49 = vpop.f32.mrb[37].mxu0  ;;  %v1419_v50 = vpop.f32.mrb[37].mxu1 }
 0x498   : > { %v1246_v51 = vadd.f32 %v3049_v42, %v1245_v49  ;;  %v1420_v52 = vadd.f32 %v3054_v43, %v1419_v50 }
 0x499   : > { %1309 = vst.msk [vmem:[%s3060_s27 + $0x28] sm:$0xff] %vm738_vm1, %v1251_v14  ;;  %2036 = vst.msk [vmem:[%s3060_s27 + $0xa8] sm:$0xff] %vm738_vm1, %v1425_v48 }
 0x49a   : > { %1308 = vst.msk [vmem:[%s3060_s27 + $0x20] sm:$0xff] %vm738_vm1, %v1246_v51  ;;  %2035 = vst.msk [vmem:[%s3060_s27 + $0xa0] sm:$0xff] %vm738_vm1, %v1420_v52  ;;  %v2440_v53 = vpop.f32.mrb[38].mxu0  ;;  %v2472_v54 = vpop.f32.mrb[38].mxu1 }
 0x49b   : > { %v1261_v55 = vadd.f32 %v2440_v53, %v3049_v42  ;;  %v1435_v56 = vadd.f32 %v2472_v54, %v3054_v43  ;;  %v1255_v57 = vpop.f32.mrb[39].mxu0  ;;  %v1429_v58 = vpop.f32.mrb[39].mxu1 }
 0x49c   : > { %v1256_v59 = vadd.f32 %v3049_v42, %v1255_v57  ;;  %v1430_v60 = vadd.f32 %v3054_v43, %v1429_v58 }
 0x49d   : > { %1311 = vst.msk [vmem:[%s3060_s27 + $0x38] sm:$0xff] %vm738_vm1, %v1261_v55  ;;  %2038 = vst.msk [vmem:[%s3060_s27 + $0xb8] sm:$0xff] %vm738_vm1, %v1435_v56 }
 0x49e   : > { %1310 = vst.msk [vmem:[%s3060_s27 + $0x30] sm:$0xff] %vm738_vm1, %v1256_v59  ;;  %2037 = vst.msk [vmem:[%s3060_s27 + $0xb0] sm:$0xff] %vm738_vm1, %v1430_v60  ;;  %v2443_v61 = vpop.f32.mrb[40].mxu0  ;;  %v2475_v62 = vpop.f32.mrb[40].mxu1 }
 0x49f   : > { %v1271_v63 = vadd.f32 %v2443_v61, %v3049_v42  ;;  %v1445_v16 = vadd.f32 %v2475_v62, %v3054_v43  ;;  %v1265_v17 = vpop.f32.mrb[41].mxu0  ;;  %v1439_v15 = vpop.f32.mrb[41].mxu1  ;;  %v1801_v62 = vld [vmem:[%s3060_s27] sm:$0xff] (%p2732_p4) }
 0x4a0   : > { %v1266_v18 = vadd.f32 %v3049_v42, %v1265_v17  ;;  %v1440_v19 = vadd.f32 %v3054_v43, %v1439_v15  ;;  %v1807_v17 = vld [vmem:[%s3060_s27 + $0x18] sm:$0xff] (%p2732_p4)  ;;  %1802 = vst [vmem:[%s3198_s20] sm:$0xff] (%p2732_p4), %v1801_v62 }
 0x4a1   : > { %1313 = vst.msk [vmem:[%s3060_s27 + $0x48] sm:$0xff] %vm738_vm1, %v1271_v63  ;;  %2040 = vst.msk [vmem:[%s3060_s27 + $0xc8] sm:$0xff] %vm738_vm1, %v1445_v16  ;;  %v1803_v63 = vld [vmem:[%s3060_s27 + $0x8] sm:$0xff] (%p2732_p4)  ;;  %v1805_v16 = vld [vmem:[%s3060_s27 + $0x10] sm:$0xff] (%p2732_p4) }
 0x4a2   : > { %1312 = vst.msk [vmem:[%s3060_s27 + $0x40] sm:$0xff] %vm738_vm1, %v1266_v18  ;;  %2039 = vst.msk [vmem:[%s3060_s27 + $0xc0] sm:$0xff] %vm738_vm1, %v1440_v19  ;;  %v2446_v20 = vpop.f32.mrb[42].mxu0  ;;  %v2478_v21 = vpop.f32.mrb[42].mxu1  ;;  %v1809_v15 = vld [vmem:[%s3060_s27 + $0x20] sm:$0xff] (%p2732_p4)  ;;  %v1811_v18 = vld [vmem:[%s3060_s27 + $0x28] sm:$0xff] (%p2732_p4) }
 0x4a3   : > { %v1281_v22 = vadd.f32 %v2446_v20, %v3049_v42  ;;  %v1455_v23 = vadd.f32 %v2478_v21, %v3054_v43  ;;  %v1275_v24 = vpop.f32.mrb[43].mxu0  ;;  %v1449_v25 = vpop.f32.mrb[43].mxu1  ;;  %1804 = vst [vmem:[%s3198_s20 + $0x8] sm:$0xff] (%p2732_p4), %v1803_v63  ;;  %1806 = vst [vmem:[%s3198_s20 + $0x10] sm:$0xff] (%p2732_p4), %v1805_v16 }
 0x4a4   : > { %v1276_v26 = vadd.f32 %v3049_v42, %v1275_v24  ;;  %v1450_v27 = vadd.f32 %v3054_v43, %v1449_v25  ;;  %1808 = vst [vmem:[%s3198_s20 + $0x18] sm:$0xff] (%p2732_p4), %v1807_v17  ;;  %1810 = vst [vmem:[%s3198_s20 + $0x20] sm:$0xff] (%p2732_p4), %v1809_v15  ;;  %v1815_v20 = vld [vmem:[%s3060_s27 + $0x38] sm:$0xff] (%p2732_p4) }
 0x4a5   : > { %1315 = vst.msk [vmem:[%s3060_s27 + $0x58] sm:$0xff] %vm738_vm1, %v1281_v22  ;;  %2042 = vst.msk [vmem:[%s3060_s27 + $0xd8] sm:$0xff] %vm738_vm1, %v1455_v23  ;;  %v1813_v19 = vld [vmem:[%s3060_s27 + $0x30] sm:$0xff] (%p2732_p4) }
 0x4a6   : > { %1314 = vst.msk [vmem:[%s3060_s27 + $0x50] sm:$0xff] %vm738_vm1, %v1276_v26  ;;  %2041 = vst.msk [vmem:[%s3060_s27 + $0xd0] sm:$0xff] %vm738_vm1, %v1450_v27  ;;  %v2449_v28 = vpop.f32.mrb[44].mxu0  ;;  %v2481_v29 = vpop.f32.mrb[44].mxu1 }
 0x4a7   : > { %v1291_v30 = vadd.f32 %v2449_v28, %v3049_v42  ;;  %v1465_v31 = vadd.f32 %v2481_v29, %v3054_v43  ;;  %v1285_v32 = vpop.f32.mrb[45].mxu0  ;;  %v1459_v33 = vpop.f32.mrb[45].mxu1  ;;  %1812 = vst [vmem:[%s3198_s20 + $0x28] sm:$0xff] (%p2732_p4), %v1811_v18  ;;  %1814 = vst [vmem:[%s3198_s20 + $0x30] sm:$0xff] (%p2732_p4), %v1813_v19  ;;  %v1833_v29 = vld [vmem:[%s3060_s27 + $0x80] sm:$0xff] (%p2732_p4) }
 0x4a8   : > { %v1286_v34 = vadd.f32 %v3049_v42, %v1285_v32  ;;  %v1460_v35 = vadd.f32 %v3054_v43, %v1459_v33  ;;  %1816 = vst [vmem:[%s3198_s20 + $0x38] sm:$0xff] (%p2732_p4), %v1815_v20  ;;  %v1819_v22 = vld [vmem:[%s3060_s27 + $0x48] sm:$0xff] (%p2732_p4)  ;;  %1834 = vst [vmem:[%s3198_s20 + $0x100] sm:$0xff] (%p2732_p4), %v1833_v29  ;;  %v1839_v32 = vld [vmem:[%s3060_s27 + $0x98] sm:$0xff] (%p2732_p4) }
 0x4a9   : > { %1317 = vst.msk [vmem:[%s3060_s27 + $0x68] sm:$0xff] %vm738_vm1, %v1291_v30  ;;  %2044 = vst.msk [vmem:[%s3060_s27 + $0xe8] sm:$0xff] %vm738_vm1, %v1465_v31  ;;  %v1817_v21 = vld [vmem:[%s3060_s27 + $0x40] sm:$0xff] (%p2732_p4)  ;;  %v1835_v30 = vld [vmem:[%s3060_s27 + $0x88] sm:$0xff] (%p2732_p4) }
 0x4aa   : > { %1316 = vst.msk [vmem:[%s3060_s27 + $0x60] sm:$0xff] %vm738_vm1, %v1286_v34  ;;  %2043 = vst.msk [vmem:[%s3060_s27 + $0xe0] sm:$0xff] %vm738_vm1, %v1460_v35  ;;  %v2452_v36 = vpop.f32.mrb[46].mxu0  ;;  %v2484_v37 = vpop.f32.mrb[46].mxu1  ;;  %v1837_v31 = vld [vmem:[%s3060_s27 + $0x90] sm:$0xff] (%p2732_p4)  ;;  %v1841_v33 = vld [vmem:[%s3060_s27 + $0xa0] sm:$0xff] (%p2732_p4) }
 0x4ab   : > { %v1301_v38 = vadd.f32 %v2452_v36, %v3049_v42  ;;  %v1475_v39 = vadd.f32 %v2484_v37, %v3054_v43  ;;  %v1295_v40 = vpop.f32.mrb[47].mxu0  ;;  %v1469_v41 = vpop.f32.mrb[47].mxu1  ;;  %1818 = vst [vmem:[%s3198_s20 + $0x40] sm:$0xff] (%p2732_p4), %v1817_v21  ;;  %1820 = vst [vmem:[%s3198_s20 + $0x48] sm:$0xff] (%p2732_p4), %v1819_v22  ;;  %v1843_v34 = vld [vmem:[%s3060_s27 + $0xa8] sm:$0xff] (%p2732_p4)  ;;  %v1845_v35 = vld [vmem:[%s3060_s27 + $0xb0] sm:$0xff] (%p2732_p4) }
 0x4ac   : > { %v1296_v44 = vadd.f32 %v3049_v42, %v1295_v40  ;;  %v1470_v45 = vadd.f32 %v3054_v43, %v1469_v41  ;;  %v1823_v24 = vld [vmem:[%s3060_s27 + $0x58] sm:$0xff] (%p2732_p4)  ;;  %1836 = vst [vmem:[%s3198_s20 + $0x108] sm:$0xff] (%p2732_p4), %v1835_v30  ;;  %1838 = vst [vmem:[%s3198_s20 + $0x110] sm:$0xff] (%p2732_p4), %v1837_v31  ;;  %v1849_v37 = vld [vmem:[%s3060_s27 + $0xc0] sm:$0xff] (%p2732_p4) }
 0x4ad   : > { %1319 = vst.msk [vmem:[%s3060_s27 + $0x78] sm:$0xff] %vm738_vm1, %v1301_v38  ;;  %2046 = vst.msk [vmem:[%s3060_s27 + $0xf8] sm:$0xff] %vm738_vm1, %v1475_v39  ;;  %v1821_v23 = vld [vmem:[%s3060_s27 + $0x50] sm:$0xff] (%p2732_p4)  ;;  %v1847_v36 = vld [vmem:[%s3060_s27 + $0xb8] sm:$0xff] (%p2732_p4) }
 0x4ae   : > { %1318 = vst.msk [vmem:[%s3060_s27 + $0x70] sm:$0xff] %vm738_vm1, %v1296_v44  ;;  %2045 = vst.msk [vmem:[%s3060_s27 + $0xf0] sm:$0xff] %vm738_vm1, %v1470_v45  ;;  %v2495_v47 = vpop.f32.mrb[48].mxu0  ;;  %v1851_v38 = vld [vmem:[%s3060_s27 + $0xc8] sm:$0xff] (%p2732_p4)  ;;  %v1853_v39 = vld [vmem:[%s3060_s27 + $0xd0] sm:$0xff] (%p2732_p4) }
 0x4af   : > { %v1580_v0 = vadd.f32 %v2495_v47, %v2052_v46  ;;  %v1574_v42 = vpop.f32.mrb[49].mxu0  ;;  %1822 = vst [vmem:[%s3198_s20 + $0x50] sm:$0xff] (%p2732_p4), %v1821_v23  ;;  %1824 = vst [vmem:[%s3198_s20 + $0x58] sm:$0xff] (%p2732_p4), %v1823_v24  ;;  %v1855_v40 = vld [vmem:[%s3060_s27 + $0xd8] sm:$0xff] (%p2732_p4) }
 0x4b0   : > { %v1575_v43 = vadd.f32 %v2052_v46, %v1574_v42  ;;  %v1827_v26 = vld [vmem:[%s3060_s27 + $0x68] sm:$0xff] (%p2732_p4)  ;;  %1840 = vst [vmem:[%s3198_s20 + $0x118] sm:$0xff] (%p2732_p4), %v1839_v32  ;;  %1842 = vst [vmem:[%s3198_s20 + $0x120] sm:$0xff] (%p2732_p4), %v1841_v33 }
 0x4b1   : > { %2070 = vst.msk [vmem:[%s3060_s27 + $0x108] sm:$0xff] %vm738_vm1, %v1580_v0  ;;  %v1825_v25 = vld [vmem:[%s3060_s27 + $0x60] sm:$0xff] (%p2732_p4)  ;;  %1828 = vst [vmem:[%s3198_s20 + $0x68] sm:$0xff] (%p2732_p4), %v1827_v26  ;;  %v1859_v44 = vld [vmem:[%s3060_s27 + $0xe8] sm:$0xff] (%p2732_p4) }
 0x4b2   : > { %2069 = vst.msk [vmem:[%s3060_s27 + $0x100] sm:$0xff] %vm738_vm1, %v1575_v43  ;;  %v2498_v1 = vpop.f32.mrb[50].mxu0  ;;  %1826 = vst [vmem:[%s3198_s20 + $0x60] sm:$0xff] (%p2732_p4), %v1825_v25  ;;  %v1857_v41 = vld [vmem:[%s3060_s27 + $0xe0] sm:$0xff] (%p2732_p4) }
 0x4b3   : > { %v1590_v2 = vadd.f32 %v2498_v1, %v2052_v46  ;;  %v1584_v3 = vpop.f32.mrb[51].mxu0  ;;  %1844 = vst [vmem:[%s3198_s20 + $0x128] sm:$0xff] (%p2732_p4), %v1843_v34  ;;  %1846 = vst [vmem:[%s3198_s20 + $0x130] sm:$0xff] (%p2732_p4), %v1845_v35 }
 0x4b4   : > { %v1585_v4 = vadd.f32 %v2052_v46, %v1584_v3  ;;  %v1831_v28 = vld [vmem:[%s3060_s27 + $0x78] sm:$0xff] (%p2732_p4)  ;;  %1848 = vst [vmem:[%s3198_s20 + $0x138] sm:$0xff] (%p2732_p4), %v1847_v36  ;;  %1850 = vst [vmem:[%s3198_s20 + $0x140] sm:$0xff] (%p2732_p4), %v1849_v37 }
 0x4b5   : > { %2072 = vst.msk [vmem:[%s3060_s27 + $0x118] sm:$0xff] %vm738_vm1, %v1590_v2  ;;  %v1829_v27 = vld [vmem:[%s3060_s27 + $0x70] sm:$0xff] (%p2732_p4)  ;;  %1832 = vst [vmem:[%s3198_s20 + $0x78] sm:$0xff] (%p2732_p4), %v1831_v28 }
 0x4b6   : > { %2071 = vst.msk [vmem:[%s3060_s27 + $0x110] sm:$0xff] %vm738_vm1, %v1585_v4  ;;  %v2501_v5 = vpop.f32.mrb[52].mxu0  ;;  %1830 = vst [vmem:[%s3198_s20 + $0x70] sm:$0xff] (%p2732_p4), %v1829_v27  ;;  %v1861_v45 = vld [vmem:[%s3060_s27 + $0xf0] sm:$0xff] (%p2732_p4) }
 0x4b7   : > { %v1600_v6 = vadd.f32 %v2501_v5, %v2052_v46  ;;  %v1594_v7 = vpop.f32.mrb[53].mxu0  ;;  %1852 = vst [vmem:[%s3198_s20 + $0x148] sm:$0xff] (%p2732_p4), %v1851_v38  ;;  %1854 = vst [vmem:[%s3198_s20 + $0x150] sm:$0xff] (%p2732_p4), %v1853_v39 }
 0x4b8   : > { %v1595_v8 = vadd.f32 %v2052_v46, %v1594_v7  ;;  %1856 = vst [vmem:[%s3198_s20 + $0x158] sm:$0xff] (%p2732_p4), %v1855_v40  ;;  %1858 = vst [vmem:[%s3198_s20 + $0x160] sm:$0xff] (%p2732_p4), %v1857_v41  ;;  %v1867_v0 = vld [vmem:[%s3060_s27 + $0x108] sm:$0xff] (%p2732_p4) }
 0x4b9   : > { %2074 = vst.msk [vmem:[%s3060_s27 + $0x128] sm:$0xff] %vm738_vm1, %v1600_v6  ;;  %1860 = vst [vmem:[%s3198_s20 + $0x168] sm:$0xff] (%p2732_p4), %v1859_v44  ;;  %v1865_v47 = vld [vmem:[%s3060_s27 + $0x100] sm:$0xff] (%p2732_p4) }
 0x4ba   : > { %2073 = vst.msk [vmem:[%s3060_s27 + $0x120] sm:$0xff] %vm738_vm1, %v1595_v8  ;;  %v2504_v9 = vpop.f32.mrb[54].mxu0  ;;  %1862 = vst [vmem:[%s3198_s20 + $0x170] sm:$0xff] (%p2732_p4), %v1861_v45 }
 0x4bb   : > { %v1610_v10 = vadd.f32 %v2504_v9, %v2052_v46  ;;  %v1604_v11 = vpop.f32.mrb[55].mxu0  ;;  %1866 = vst [vmem:[%s3198_s20 + $0x200] sm:$0xff] (%p2732_p4), %v1865_v47  ;;  %1868 = vst [vmem:[%s3198_s20 + $0x208] sm:$0xff] (%p2732_p4), %v1867_v0 }
 0x4bc   : > { %v1605_v12 = vadd.f32 %v2052_v46, %v1604_v11  ;;  %v1871_v43 = vld [vmem:[%s3060_s27 + $0x118] sm:$0xff] (%p2732_p4) }
 0x4bd   : > { %2076 = vst.msk [vmem:[%s3060_s27 + $0x138] sm:$0xff] %vm738_vm1, %v1610_v10  ;;  %v1869_v42 = vld [vmem:[%s3060_s27 + $0x110] sm:$0xff] (%p2732_p4)  ;;  %1872 = vst [vmem:[%s3198_s20 + $0x218] sm:$0xff] (%p2732_p4), %v1871_v43 }
 0x4be   : > { %2075 = vst.msk [vmem:[%s3060_s27 + $0x130] sm:$0xff] %vm738_vm1, %v1605_v12  ;;  %v2507_v13 = vpop.f32.mrb[56].mxu0  ;;  %1870 = vst [vmem:[%s3198_s20 + $0x210] sm:$0xff] (%p2732_p4), %v1869_v42 }
 0x4bf   : > { %v1620_v14 = vadd.f32 %v2507_v13, %v2052_v46  ;;  %v1614_v48 = vpop.f32.mrb[57].mxu0 }
 0x4c0   : > { %v1615_v49 = vadd.f32 %v2052_v46, %v1614_v48  ;;  %v1875_v2 = vld [vmem:[%s3060_s27 + $0x128] sm:$0xff] (%p2732_p4) }
 0x4c1   : > { %2078 = vst.msk [vmem:[%s3060_s27 + $0x148] sm:$0xff] %vm738_vm1, %v1620_v14  ;;  %v1873_v1 = vld [vmem:[%s3060_s27 + $0x120] sm:$0xff] (%p2732_p4)  ;;  %1876 = vst [vmem:[%s3198_s20 + $0x228] sm:$0xff] (%p2732_p4), %v1875_v2 }
 0x4c2   : > { %2077 = vst.msk [vmem:[%s3060_s27 + $0x140] sm:$0xff] %vm738_vm1, %v1615_v49  ;;  %v2510_v50 = vpop.f32.mrb[58].mxu0  ;;  %1874 = vst [vmem:[%s3198_s20 + $0x220] sm:$0xff] (%p2732_p4), %v1873_v1 }
 0x4c3   : > { %v1630_v51 = vadd.f32 %v2510_v50, %v2052_v46  ;;  %v1624_v52 = vpop.f32.mrb[59].mxu0 }
 0x4c4   : > { %v1625_v53 = vadd.f32 %v2052_v46, %v1624_v52  ;;  %v1879_v4 = vld [vmem:[%s3060_s27 + $0x138] sm:$0xff] (%p2732_p4) }
 0x4c5   : > { %2080 = vst.msk [vmem:[%s3060_s27 + $0x158] sm:$0xff] %vm738_vm1, %v1630_v51  ;;  %v1877_v3 = vld [vmem:[%s3060_s27 + $0x130] sm:$0xff] (%p2732_p4)  ;;  %1880 = vst [vmem:[%s3198_s20 + $0x238] sm:$0xff] (%p2732_p4), %v1879_v4 }
 0x4c6   : > { %2079 = vst.msk [vmem:[%s3060_s27 + $0x150] sm:$0xff] %vm738_vm1, %v1625_v53  ;;  %v2513_v54 = vpop.f32.mrb[60].mxu0  ;;  %1878 = vst [vmem:[%s3198_s20 + $0x230] sm:$0xff] (%p2732_p4), %v1877_v3 }
 0x4c7   : > { %v1640_v55 = vadd.f32 %v2513_v54, %v2052_v46  ;;  %v1634_v56 = vpop.f32.mrb[61].mxu0 }
 0x4c8   : > { %v1635_v57 = vadd.f32 %v2052_v46, %v1634_v56  ;;  %1676 = sbr.rel (!%p2732_p4) target bundleno = 1239 (0x4d7), region = 56  ;;  %v1883_v6 = vld [vmem:[%s3060_s27 + $0x148] sm:$0xff] (%p2732_p4) }
 0x4c9   : > { %2082 = vst.msk [vmem:[%s3060_s27 + $0x168] sm:$0xff] %vm738_vm1, %v1640_v55  ;;  %v1881_v5 = vld [vmem:[%s3060_s27 + $0x140] sm:$0xff] (%p2732_p4)  ;;  %1884 = vst [vmem:[%s3198_s20 + $0x248] sm:$0xff] (%p2732_p4), %v1883_v6 }
 0x4ca   : > { %2081 = vst.msk [vmem:[%s3060_s27 + $0x160] sm:$0xff] %vm738_vm1, %v1635_v57  ;;  %v2516_v58 = vpop.f32.mrb[62].mxu0  ;;  %1882 = vst [vmem:[%s3198_s20 + $0x240] sm:$0xff] (%p2732_p4), %v1881_v5 }
 0x4cb   : > { %v1650_v59 = vadd.f32 %v2516_v58, %v2052_v46  ;;  %v1644_v60 = vpop.f32.mrb[63].mxu0 }
 0x4cc   : > { %v1645_v61 = vadd.f32 %v2052_v46, %v1644_v60  ;;  %v1863_v46 = vld [vmem:[%s3060_s27 + $0xf8] sm:$0xff] (%p2732_p4) }
 0x4cd   : > { %2084 = vst.msk [vmem:[%s3060_s27 + $0x178] sm:$0xff] %vm738_vm1, %v1650_v59  ;;  %1864 = vst [vmem:[%s3198_s20 + $0x178] sm:$0xff] (%p2732_p4), %v1863_v46  ;;  %v1885_v7 = vld [vmem:[%s3060_s27 + $0x150] sm:$0xff] (%p2732_p4)  ;;  %v1887_v8 = vld [vmem:[%s3060_s27 + $0x158] sm:$0xff] (%p2732_p4) }
 0x4ce   : > { %2083 = vst.msk [vmem:[%s3060_s27 + $0x170] sm:$0xff] %vm738_vm1, %v1645_v61  ;;  %1886 = vst [vmem:[%s3198_s20 + $0x250] sm:$0xff] (%p2732_p4), %v1885_v7 }
 0x4cf   : > { %1888 = vst [vmem:[%s3198_s20 + $0x258] sm:$0xff] %v1887_v8 }
 0x4d0   : > { %v1891_v10 = vld [vmem:[%s3060_s27 + $0x168] sm:$0xff] }
 0x4d1   : > { %v1889_v9 = vld [vmem:[%s3060_s27 + $0x160] sm:$0xff]  ;;  %1892 = vst [vmem:[%s3198_s20 + $0x268] sm:$0xff] %v1891_v10 }
 0x4d2   : > { %1890 = vst [vmem:[%s3198_s20 + $0x260] sm:$0xff] %v1889_v9 }
 0x4d4   : > { %v1895_v12 = vld [vmem:[%s3060_s27 + $0x178] sm:$0xff] }
 0x4d5   : > { %v1893_v11 = vld [vmem:[%s3060_s27 + $0x170] sm:$0xff]  ;;  %1896 = vst [vmem:[%s3198_s20 + $0x278] sm:$0xff] %v1895_v12 }
 0x4d6   : > { %1894 = vst [vmem:[%s3198_s20 + $0x270] sm:$0xff] %v1893_v11 }
 0x4d7 PF: > { %p15_p8 = scmp.ge.s32.totalorder %s2722_s9, 4   ;;  %s3313_s27 = smov %s2656_s28 }
 0x4d8   : > { %s3314_s28 = smov %s2730_s12  ;;  %s3315_s29 = smov %s2722_s9 }
 0x4d9   :  { %17 = sbr.rel (!%p15_p8) target bundleno = 2 (0x2), region = 126 }

// kernel: temporal_gcn_forward.3
= control target key start
LH: loop header
LB: loop body
LE: loop exit
PB: predicated region body
PF: predicated region fallthrough
CT: control target
= control target key end

     0   :  { %s4545_s18 = smov 0   ;;  %s4547_s19 = smov 0   ;;  %s5290_s0 = inlined_call_operand.vmem [shape: f32[3,8,32,32], index: 0, kind: input, shape index: {}]   ;;  %s5291_s1 = inlined_call_operand.vmem [shape: f32[3,32,32], index: 1, kind: input, shape index: {}]   ;;  %s5292_s2 = inlined_call_operand.vmem [shape: f32[3,1,32], index: 2, kind: input, shape index: {}]   ;;  %s5293_s3 = inlined_call_operand.vmem [shape: f32[32,4], index: 3, kind: input, shape index: {}]   ;;  %s5294_s4 = inlined_call_operand.vmem [shape: f32[1,4], index: 4, kind: input, shape index: {}]   ;;  %s5295_s5 = inlined_call_operand.vmem [shape: f32[8,32,4], index: 5, kind: output, shape index: {}]  }
   0x1   :  { %s4549_s20 = smov 0  }
   0x2 LB: > { %s3383_s21 = sadd.s32 4294967295, %s4512_s20   ;;  %s4562_s22 = sadd.s32 1, %s4512_s20   ;;  %s4512_s20 = sphi %s4549_s20, %s5299_s20   ;;  %s4508_s19 = sphi %s4547_s19, %s5298_s19   ;;  %s4504_s18 = sphi %s4545_s18, %s5297_s18  }
   0x3   : > { %s19_s23 = ssub.s32 %s4512_s20, %s4562_s22  ;;  %s22_s24 = sadd.s32 1, %s4508_s19 }
   0x4   : > { %p20_p0 = scmp.eq.s32.totalorder %s19_s23, 0  ;;  %p29_p1 = scmp.ne.s32.totalorder %s4508_s19, %s4504_s18 }
   0x5   : > { %p30_p2 = scmp.eq.s32.totalorder %s4512_s20, 0  ;;  %p143_p3 = scmp.eq.s32.totalorder %s3383_s21, 1 }
   0x6   : > { %s4573_s25 = scalar_select %p20_p0, %s4508_s19, %s22_s24  }
   0x7   : > { %p31_p4 = por %p30_p2, %p29_p1  ;;  %p4575_p5 = por %p143_p3, %p29_p1 }
   0x8   : > { %p3386_p6 = scmp.ge.s32.totalorder %s4512_s20, 2 }
   0xa   : > { %177 = sbr.rel (%p3386_p6) target bundleno = 45 (0x2d), region = 32 }
  0x11   : > { %180 = sbr.rel (!%p31_p4) target bundleno = 45 (0x2d), region = 36  ;;  %s182_s27 = sand.u32 (%p31_p4), 1, %s4508_s19  }
  0x12   : > { %s3637_s28 = sshll.u32 (%p31_p4), %s4512_s20, 4  ;;  %s4303_s29 = smul.u32 (%p31_p4), 384, %s182_s27 }
  0x13   : > { %s4585_s7 = scalar_lea.vmem (%p31_p4), %s5290_s0, %s3637_s28 }
  0x14   : > { %v309_v0 = vld [vmem:[%s4585_s7] sm:$0xff] (%p31_p4)  ;;  %v311_v1 = vld [vmem:[%s4585_s7 + $0x8] sm:$0xff] (%p31_p4)  ;;  %s4593_s8 = scalar_lea.vmem (%p31_p4), [#allocation3], %s4303_s29 }
  0x15   : > { %v313_v2 = vld [vmem:[%s4585_s7 + $0x20] sm:$0xff] (%p31_p4)  ;;  %v315_v3 = vld [vmem:[%s4585_s7 + $0x28] sm:$0xff] (%p31_p4)  ;;  %310 = vst [vmem:[%s4593_s8] sm:$0xff] (%p31_p4), %v309_v0  ;;  %312 = vst [vmem:[%s4593_s8 + $0x8] sm:$0xff] (%p31_p4), %v311_v1 }
  0x16   : > { %v317_v4 = vld [vmem:[%s4585_s7 + $0x40] sm:$0xff] (%p31_p4)  ;;  %v319_v5 = vld [vmem:[%s4585_s7 + $0x48] sm:$0xff] (%p31_p4)  ;;  %314 = vst [vmem:[%s4593_s8 + $0x10] sm:$0xff] (%p31_p4), %v313_v2  ;;  %316 = vst [vmem:[%s4593_s8 + $0x18] sm:$0xff] (%p31_p4), %v315_v3 }
  0x17   : > { %318 = vst [vmem:[%s4593_s8 + $0x20] sm:$0xff] (%p31_p4), %v317_v4  ;;  %320 = vst [vmem:[%s4593_s8 + $0x28] sm:$0xff] (%p31_p4), %v319_v5  ;;  %v321_v6 = vld [vmem:[%s4585_s7 + $0x60] sm:$0xff] (%p31_p4)  ;;  %v323_v7 = vld [vmem:[%s4585_s7 + $0x68] sm:$0xff] (%p31_p4) }
  0x18   : > { %v325_v8 = vld [vmem:[%s4585_s7 + $0x80] sm:$0xff]  ;;  %322 = vst [vmem:[%s4593_s8 + $0x30] sm:$0xff] %v321_v6  ;;  %324 = vst [vmem:[%s4593_s8 + $0x38] sm:$0xff] %v323_v7  ;;  %v327_v9 = vld [vmem:[%s4585_s7 + $0x88] sm:$0xff] }
  0x19   : > { %326 = vst [vmem:[%s4593_s8 + $0x40] sm:$0xff] %v325_v8  ;;  %v329_v10 = vld [vmem:[%s4585_s7 + $0xa0] sm:$0xff]  ;;  %v331_v11 = vld [vmem:[%s4585_s7 + $0xa8] sm:$0xff]  ;;  %328 = vst [vmem:[%s4593_s8 + $0x48] sm:$0xff] %v327_v9 }
  0x1a   : > { %330 = vst [vmem:[%s4593_s8 + $0x50] sm:$0xff] %v329_v10  ;;  %332 = vst [vmem:[%s4593_s8 + $0x58] sm:$0xff] %v331_v11  ;;  %v333_v12 = vld [vmem:[%s4585_s7 + $0xc0] sm:$0xff]  ;;  %v335_v13 = vld [vmem:[%s4585_s7 + $0xc8] sm:$0xff] }
  0x1b   : > { %v337_v14 = vld [vmem:[%s4585_s7 + $0xe0] sm:$0xff]  ;;  %334 = vst [vmem:[%s4593_s8 + $0x60] sm:$0xff] %v333_v12  ;;  %336 = vst [vmem:[%s4593_s8 + $0x68] sm:$0xff] %v335_v13  ;;  %v339_v15 = vld [vmem:[%s4585_s7 + $0xe8] sm:$0xff] }
  0x1c   : > { %338 = vst [vmem:[%s4593_s8 + $0x70] sm:$0xff] %v337_v14  ;;  %v341_v16 = vld [vmem:[%s4585_s7 + $0x100] sm:$0xff]  ;;  %v343_v17 = vld [vmem:[%s4585_s7 + $0x108] sm:$0xff]  ;;  %340 = vst [vmem:[%s4593_s8 + $0x78] sm:$0xff] %v339_v15 }
  0x1d   : > { %342 = vst [vmem:[%s4593_s8 + $0x80] sm:$0xff] %v341_v16  ;;  %344 = vst [vmem:[%s4593_s8 + $0x88] sm:$0xff] %v343_v17  ;;  %v345_v18 = vld [vmem:[%s4585_s7 + $0x120] sm:$0xff]  ;;  %v347_v19 = vld [vmem:[%s4585_s7 + $0x128] sm:$0xff] }
  0x1e   : > { %v349_v20 = vld [vmem:[%s4585_s7 + $0x140] sm:$0xff]  ;;  %346 = vst [vmem:[%s4593_s8 + $0x90] sm:$0xff] %v345_v18  ;;  %348 = vst [vmem:[%s4593_s8 + $0x98] sm:$0xff] %v347_v19  ;;  %v351_v21 = vld [vmem:[%s4585_s7 + $0x148] sm:$0xff] }
  0x1f   : > { %350 = vst [vmem:[%s4593_s8 + $0xa0] sm:$0xff] %v349_v20  ;;  %v353_v22 = vld [vmem:[%s4585_s7 + $0x160] sm:$0xff]  ;;  %v355_v23 = vld [vmem:[%s4585_s7 + $0x168] sm:$0xff]  ;;  %352 = vst [vmem:[%s4593_s8 + $0xa8] sm:$0xff] %v351_v21 }
  0x20   : > { %354 = vst [vmem:[%s4593_s8 + $0xb0] sm:$0xff] %v353_v22  ;;  %356 = vst [vmem:[%s4593_s8 + $0xb8] sm:$0xff] %v355_v23  ;;  %v357_v24 = vld [vmem:[%s4585_s7 + $0x180] sm:$0xff]  ;;  %v359_v25 = vld [vmem:[%s4585_s7 + $0x188] sm:$0xff] }
  0x21   : > { %v361_v26 = vld [vmem:[%s4585_s7 + $0x1a0] sm:$0xff]  ;;  %358 = vst [vmem:[%s4593_s8 + $0xc0] sm:$0xff] %v357_v24  ;;  %360 = vst [vmem:[%s4593_s8 + $0xc8] sm:$0xff] %v359_v25  ;;  %v363_v27 = vld [vmem:[%s4585_s7 + $0x1a8] sm:$0xff] }
  0x22   : > { %362 = vst [vmem:[%s4593_s8 + $0xd0] sm:$0xff] %v361_v26  ;;  %v365_v28 = vld [vmem:[%s4585_s7 + $0x1c0] sm:$0xff]  ;;  %v367_v29 = vld [vmem:[%s4585_s7 + $0x1c8] sm:$0xff]  ;;  %364 = vst [vmem:[%s4593_s8 + $0xd8] sm:$0xff] %v363_v27 }
  0x23   : > { %366 = vst [vmem:[%s4593_s8 + $0xe0] sm:$0xff] %v365_v28  ;;  %368 = vst [vmem:[%s4593_s8 + $0xe8] sm:$0xff] %v367_v29  ;;  %v369_v30 = vld [vmem:[%s4585_s7 + $0x1e0] sm:$0xff]  ;;  %v371_v31 = vld [vmem:[%s4585_s7 + $0x1e8] sm:$0xff] }
  0x24   : > { %v373_v32 = vld [vmem:[%s4585_s7 + $0x200] sm:$0xff]  ;;  %370 = vst [vmem:[%s4593_s8 + $0xf0] sm:$0xff] %v369_v30  ;;  %372 = vst [vmem:[%s4593_s8 + $0xf8] sm:$0xff] %v371_v31  ;;  %v375_v33 = vld [vmem:[%s4585_s7 + $0x208] sm:$0xff] }
  0x25   : > { %374 = vst [vmem:[%s4593_s8 + $0x100] sm:$0xff] %v373_v32  ;;  %v377_v34 = vld [vmem:[%s4585_s7 + $0x220] sm:$0xff]  ;;  %v379_v35 = vld [vmem:[%s4585_s7 + $0x228] sm:$0xff]  ;;  %376 = vst [vmem:[%s4593_s8 + $0x108] sm:$0xff] %v375_v33 }
  0x26   : > { %378 = vst [vmem:[%s4593_s8 + $0x110] sm:$0xff] %v377_v34  ;;  %380 = vst [vmem:[%s4593_s8 + $0x118] sm:$0xff] %v379_v35  ;;  %v381_v36 = vld [vmem:[%s4585_s7 + $0x240] sm:$0xff]  ;;  %v383_v37 = vld [vmem:[%s4585_s7 + $0x248] sm:$0xff] }
  0x27   : > { %v385_v38 = vld [vmem:[%s4585_s7 + $0x260] sm:$0xff]  ;;  %382 = vst [vmem:[%s4593_s8 + $0x120] sm:$0xff] %v381_v36  ;;  %384 = vst [vmem:[%s4593_s8 + $0x128] sm:$0xff] %v383_v37  ;;  %v387_v39 = vld [vmem:[%s4585_s7 + $0x268] sm:$0xff] }
  0x28   : > { %386 = vst [vmem:[%s4593_s8 + $0x130] sm:$0xff] %v385_v38  ;;  %v389_v40 = vld [vmem:[%s4585_s7 + $0x280] sm:$0xff]  ;;  %v391_v41 = vld [vmem:[%s4585_s7 + $0x288] sm:$0xff]  ;;  %388 = vst [vmem:[%s4593_s8 + $0x138] sm:$0xff] %v387_v39 }
  0x29   : > { %390 = vst [vmem:[%s4593_s8 + $0x140] sm:$0xff] %v389_v40  ;;  %392 = vst [vmem:[%s4593_s8 + $0x148] sm:$0xff] %v391_v41  ;;  %v393_v42 = vld [vmem:[%s4585_s7 + $0x2a0] sm:$0xff]  ;;  %v395_v43 = vld [vmem:[%s4585_s7 + $0x2a8] sm:$0xff] }
  0x2a   : > { %v397_v44 = vld [vmem:[%s4585_s7 + $0x2c0] sm:$0xff]  ;;  %394 = vst [vmem:[%s4593_s8 + $0x150] sm:$0xff] %v393_v42  ;;  %396 = vst [vmem:[%s4593_s8 + $0x158] sm:$0xff] %v395_v43  ;;  %v399_v45 = vld [vmem:[%s4585_s7 + $0x2c8] sm:$0xff] }
  0x2b   : > { %398 = vst [vmem:[%s4593_s8 + $0x160] sm:$0xff] %v397_v44  ;;  %v401_v46 = vld [vmem:[%s4585_s7 + $0x2e0] sm:$0xff]  ;;  %v403_v47 = vld [vmem:[%s4585_s7 + $0x2e8] sm:$0xff]  ;;  %400 = vst [vmem:[%s4593_s8 + $0x168] sm:$0xff] %v399_v45 }
  0x2c   : > { %402 = vst [vmem:[%s4593_s8 + $0x170] sm:$0xff] %v401_v46  ;;  %404 = vst [vmem:[%s4593_s8 + $0x178] sm:$0xff] %v403_v47 }
  0x2d PF: > { %p3389_p7 = scmp.ge.s32.totalorder %s4512_s20, 1  ;;  %p409_p8 = scmp.lt.s32.totalorder %s4512_s20, 3 }
  0x2f   : > { %p410_p9 = pnand %p3389_p7, %p409_p8 }
  0x30   : > { %v444_v48 = vld [vmem:[%s5291_s1] sm:$0xff] (!%p410_p9)  ;;  %v445_v49 = vld [vmem:[%s5291_s1 + $0x8] sm:$0xff] (!%p410_p9)  ;;  %v446_v50 = vld [vmem:[%s5291_s1 + $0x10] sm:$0xff] (!%p410_p9)  ;;  %v4514_v53 = vmov (!%p410_p9), 0.0   ;;  %s416_s15 = sand.u32 (!%p410_p9), 1, %s4504_s18   ;;  %vm455_vm0 = vcmask (!%p410_p9), 261120  }
  0x31   : > { %413 = sbr.rel (%p410_p9) target bundleno = 2395 (0x95b), region = 74  ;;  %v4696_v51 = vpack.c.bf16 (!%p410_p9), %v445_v49, %v444_v48  ;;  %v447_v52 = vld [vmem:[%s5291_s1 + $0x18] sm:$0xff] (!%p410_p9)  ;;  %3811 = vmatprep.mubr.f32.mxu0 (!%p410_p9), %v4514_v53  ;;  %v3392_v54 = vld [vmem:[%s5291_s1 + $0x20] sm:$0xff] (!%p410_p9)  ;;  %v3393_v55 = vld [vmem:[%s5291_s1 + $0x28] sm:$0xff] (!%p410_p9)  ;;  %3822 = vmatprep.mubr.f32.mxu1 (!%p410_p9), %v4514_v53  ;;  %s3390_s12 = sshll.u32 (!%p410_p9), %s416_s15, 7  ;;  %vm3208_vm1 = vcmask (!%p410_p9), 31744  }
  0x32   : > { %v4707_v56 = vpack.c.bf16 (!%p410_p9), %v447_v52, %v446_v50  ;;  %v4709_v57 = vpack.c.bf16 (!%p410_p9), %v3393_v55, %v3392_v54  ;;  %v3394_v58 = vld [vmem:[%s5291_s1 + $0x30] sm:$0xff] (!%p410_p9)  ;;  %v3395_v59 = vld [vmem:[%s5291_s1 + $0x38] sm:$0xff] (!%p410_p9)  ;;  %v3398_v60 = vld [vmem:[%s5291_s1 + $0x40] sm:$0xff] (!%p410_p9)  ;;  %s4304_s16 = smul.u32 (!%p410_p9), 384, %s416_s15  ;;  %s5199_s18 = scalar_lea.vmem (!%p410_p9), [#allocation4], %s3390_s12 }
  0x33   : > { %4100 = vmatprep.subr.bf16.mxu0 (!%p410_p9), %v4696_v51  ;;  %v4721_v61 = vpack.c.bf16 (!%p410_p9), %v3395_v59, %v3394_v58  ;;  %v3399_v62 = vld [vmem:[%s5291_s1 + $0x48] sm:$0xff] (!%p410_p9)  ;;  %v3400_v0 = vld [vmem:[%s5291_s1 + $0x50] sm:$0xff] (!%p410_p9)  ;;  %v3401_v1 = vld [vmem:[%s5291_s1 + $0x58] sm:$0xff] (!%p410_p9) }
  0x34   : > { %4102 = vmatpush3.bf16.msra.mxu0 (!%p410_p9), %v4696_v51  ;;  %4108 = vmatprep.subr.bf16.mxu1 (!%p410_p9), %v4709_v57  ;;  %v4730_v63 = vpack.c.bf16 (!%p410_p9), %v3399_v62, %v3398_v60  ;;  %v4742_v2 = vpack.c.bf16 (!%p410_p9), %v3401_v1, %v3400_v0  ;;  %v4763_v3 = vld [vmem:[%s5292_s2] ss:$0 sm:$0xff] (!%p410_p9)  ;;  %v4768_v4 = vld [vmem:[%s5292_s2 + $0x1] ss:$0 sm:$0xff] (!%p410_p9)  ;;  %s4770_s28 = scalar_lea.vmem (!%p410_p9), [#allocation3], %s4304_s16 }
  0x35   : > { %4104 = vmatprep.subr.bf16.mxu0 (!%p410_p9), %v4707_v56  ;;  %4110 = vmatpush3.bf16.msra.mxu1 (!%p410_p9), %v4709_v57  ;;  %v711_v6 = vld [vmem:[%s4770_s28 + $0x8] sm:$0xff] (!%p410_p9)  ;;  %v710_v9 = vld [vmem:[%s4770_s28] sm:$0xff] (!%p410_p9)  ;;  %v3432_v0 = vld [vmem:[%s4770_s28 + $0x18] sm:$0xff] (!%p410_p9) }
  0x36   : > { %4112 = vmatprep.subr.bf16.mxu1 (!%p410_p9), %v4721_v61  ;;  %v3407_v11 = vld [vmem:[%s4770_s28 + $0x88] sm:$0xff] (!%p410_p9)  ;;  %v3406_v15 = vld [vmem:[%s4770_s28 + $0x80] sm:$0xff] (!%p410_p9) }
  0x37   : > { %v4783_v33 = vld [vmem:[%s5292_s2 + $0x2] ss:$0 sm:$0xff] (!%p410_p9)  ;;  %v3411_v39 = vld [vmem:[%s4770_s28 + $0x108] sm:$0xff] (!%p410_p9) }
  0x38   : > { %4106 = vmatpush3.bf16.msra.mxu0 %v4707_v56  ;;  %v3410_v42 = vld [vmem:[%s4770_s28 + $0x100] sm:$0xff]  ;;  %s3638_s15 = sshll.u32 (%p4575_p5), %s3383_s21, 4 }
  0x39   : > { %4114 = vmatpush3.bf16.msra.mxu1 %v4721_v61  ;;  %4116 = vmatprep.subr.bf16.mxu0 %v4730_v63  ;;  %s3234_s26 = scalar_lea.vmem (%p4575_p5), %s5295_s5, %s3638_s15 }
  0x3a   : > { %4124 = vmatprep.subr.bf16.mxu1 %v4696_v51 }
  0x3b   : > { %3812 = vmatmul.mubr.f32.vlgmr.msra.gmra.mrb[0].mxu0 %v4514_v53 }
  0x3c   : > { %3823 = vmatmul.mubr.f32.vlgmr.msra.gmra.mrb[0].mxu1 %v4514_v53  ;;  %4118 = vmatpush3.bf16.msra.mxu0 %v4730_v63 }
  0x3d   : > { %4120 = vmatprep.subr.bf16.mxu0 %v4742_v2  ;;  %3833 = vmatprep.mubr.f32.mxu0 %v4514_v53 }
  0x3e   : > { %4126 = vmatpush3.bf16.msra.mxu1 %v4696_v51 }
  0x3f   : > { %4128 = vmatprep.subr.bf16.mxu1 %v4707_v56 }
  0x40   : > { %4122 = vmatpush3.bf16.msra.mxu0 %v4742_v2 }
  0x41   : > { %4132 = vmatprep.subr.bf16.mxu0 %v4709_v57 }
  0x42   : > { %4130 = vmatpush3.bf16.msra.mxu1 %v4707_v56 }
  0x43   : > { %3834 = vmatmul.mubr.f32.vlgmr.msra.gmra.mrb[2].mxu0 %v4514_v53  ;;  %4140 = vmatprep.subr.bf16.mxu1 %v4730_v63 }
  0x44   : > { %4134 = vmatpush3.bf16.msra.mxu0 %v4709_v57 }
  0x45   : > { %4136 = vmatprep.subr.bf16.mxu0 %v4721_v61 }
  0x48   : > { %4138 = vmatpush3.bf16.msra.mxu0 %v4721_v61 }
  0x49   : > { %4148 = vmatprep.subr.bf16.mxu0 %v4696_v51 }
 0x10e   : > { %v3813_v5 = vpop.f32.mrb[0].mxu0 }
 0x10f   : > { %v531_v7 = vadd.f32 %v3813_v5, %v4763_v3  ;;  %v525_v8 = vpop.f32.mrb[1].mxu0  ;;  %v3824_v10 = vpop.f32.mrb[0].mxu1 }
 0x110   : > { %v526_v12 = vadd.f32 %v4763_v3, %v525_v8  ;;  %v619_v13 = vadd.f32 %v3824_v10, %v4768_v4  ;;  %v613_v14 = vpop.f32.mrb[1].mxu1 }
 0x111   : > { %v713_v16 = vadd.f32 %v711_v6, %v531_v7  ;;  %v614_v17 = vadd.f32 %v4768_v4, %v613_v14  ;;  %v3431_v7 = vld [vmem:[%s4770_s28 + $0x10] sm:$0xff] }
 0x112   : > { %v712_v18 = vadd.f32 %v710_v9, %v526_v12  ;;  %v730_v19 = vadd.f32 %v3407_v11, %v619_v13  ;;  %v3436_v12 = vld [vmem:[%s4770_s28 + $0x98] sm:$0xff] }
 0x113   : > { %v3405_v20 = vmul.f32 -1.442695, %v713_v16  ;;  %v729_v21 = vadd.f32 %v3406_v15, %v614_v17  ;;  %v3435_v16 = vld [vmem:[%s4770_s28 + $0x90] sm:$0xff] }
 0x114   : > { %v3404_v22 = vmul.f32 -1.442695, %v712_v18  ;;  %v3409_v23 = vmul.f32 -1.442695, %v730_v19 }
 0x115   : > { %4330 = vpow2.f32 %v3405_v20  ;;  %v3408_v25 = vmul.f32 -1.442695, %v729_v21 }
 0x116   : > { %4332 = vpow2.f32 %v3404_v22  ;;  %v3835_v24 = vpop.f32.mrb[2].mxu0 }
 0x117   : > { %v701_v26 = vpop.f32.mrb[3].mxu0  ;;  %4334 = vpow2.f32 %v3409_v23  ;;  %v707_v36 = vadd.f32 %v3835_v24, %v4783_v33 }
 0x118   : > { %4336 = vpow2.f32 %v3408_v25  ;;  %v702_v37 = vadd.f32 %v4783_v33, %v701_v26 }
 0x11f   : > { %v4331_v27 = vpop.eup %4330 }
 0x120   : > { %v4333_v28 = vpop.eup %4332  ;;  %v721_v29 = vadd.f32 1.0, %v4331_v27 }
 0x121   : > { %v720_v30 = vadd.f32 1.0, %v4333_v28  ;;  %v4335_v31 = vpop.eup %4334 }
 0x122   : > { %4338 = vrcp.f32 %v721_v29  ;;  %v4337_v32 = vpop.eup %4336  ;;  %v738_v34 = vadd.f32 1.0, %v4335_v31 }
 0x123   : > { %4340 = vrcp.f32 %v720_v30  ;;  %v737_v35 = vadd.f32 1.0, %v4337_v32 }
 0x124   : > { %4342 = vrcp.f32 %v738_v34 }
 0x125   : > { %4344 = vrcp.f32 %v737_v35  ;;  %v3440_v35 = vld [vmem:[%s4770_s28 + $0x118] sm:$0xff] }
 0x12c   : > { %v4339_v38 = vpop.eup %4338 }
 0x12d   : > { %v4341_v40 = vpop.eup %4340  ;;  %v747_v41 = vmul.f32 %v4339_v38, %v707_v36 }
 0x12e   : > { %v746_v43 = vmul.f32 %v4341_v40, %v702_v37  ;;  %v4343_v46 = vpop.eup %4342 }
 0x12f   : > { %v749_v44 = vadd.f32 %v3411_v39, %v747_v41  ;;  %v4345_v47 = vpop.eup %4344  ;;  %v753_v48 = vsub.f32 1.0, %v4343_v46  ;;  %v757_v54 = vmul.f32 0.0, %v4343_v46  ;;  %v3439_v39 = vld [vmem:[%s4770_s28 + $0x110] sm:$0xff] }
 0x130   : > { %v748_v45 = vadd.f32 %v3410_v42, %v746_v43  ;;  %v752_v49 = vsub.f32 1.0, %v4345_v47  ;;  %v756_v58 = vmul.f32 0.0, %v4345_v47 }
 0x131   : > { %4346 = vtanh.f32 %v749_v44 }
 0x132   : > { %4348 = vtanh.f32 %v748_v45 }
 0x13b   : > { %v4347_v50 = vpop.eup %4346 }
 0x13c   : > { %v4349_v52 = vpop.eup %4348  ;;  %v755_v53 = vmul.f32 %v4347_v50, %v753_v48 }
 0x13d   : > { %v754_v55 = vmul.f32 %v4349_v52, %v752_v49 }
 0x13e   : > { %v4789_v59 = vadd.f32 %v757_v54, %v755_v53 }
 0x13f   : > { %v4791_v60 = vadd.f32 %v756_v58, %v754_v55 }
 0x140   : > { %761 = vst.msk [vmem:[#allocation2 + $0x8] sm:$0xff] %vm455_vm0, %v4789_v59 }
 0x141   : > { %760 = vst.msk [vmem:[#allocation2] sm:$0xff] %vm455_vm0, %v4791_v60  ;;  %3844 = vmatprep.mubr.msk.f32.mxu1 %vm455_vm0, %v4791_v60  ;;  %3855 = vmatprep.mubr.msk.f32.mxu0 %vm455_vm0, %v4791_v60 }
 0x142   : > { %3845 = vmatmul.mubr.msk.f32.vlgmr.msra.gmra.mrb[2].mxu1 %vm455_vm0, %v4789_v59  ;;  %3856 = vmatmul.mubr.msk.f32.vlgmr.msra.gmra.mrb[4].mxu0 %vm455_vm0, %v4789_v59 }
 0x143   : > { %4142 = vmatpush3.bf16.msra.mxu1 %v4730_v63  ;;  %3866 = vmatprep.mubr.msk.f32.mxu1 %vm455_vm0, %v4791_v60 }
 0x144   : > { %4144 = vmatprep.subr.bf16.mxu1 %v4742_v2  ;;  %4150 = vmatpush3.bf16.msra.mxu0 %v4696_v51 }
 0x145   : > { %4152 = vmatprep.subr.bf16.mxu0 %v4707_v56 }
 0x147   : > { %4146 = vmatpush3.bf16.msra.mxu1 %v4742_v2 }
 0x148   : > { %4156 = vmatprep.subr.bf16.mxu1 %v4709_v57  ;;  %4154 = vmatpush3.bf16.msra.mxu0 %v4707_v56 }
 0x149   : > { %4164 = vmatprep.subr.bf16.mxu0 %v4730_v63 }
 0x14a   : > { %3867 = vmatmul.mubr.msk.f32.vlgmr.msra.gmra.mrb[4].mxu1 %vm455_vm0, %v4789_v59 }
 0x14b   : > { %4158 = vmatpush3.bf16.msra.mxu1 %v4709_v57 }
 0x14c   : > { %4160 = vmatprep.subr.bf16.mxu1 %v4721_v61 }
 0x14f   : > { %4162 = vmatpush3.bf16.msra.mxu1 %v4721_v61 }
 0x150   : > { %4172 = vmatprep.subr.bf16.mxu1 %v4696_v51 }
 0x215   : > { %v3846_v62 = vpop.f32.mrb[2].mxu1  ;;  %v3857_v1 = vpop.f32.mrb[4].mxu0 }
 0x216   : > { %v851_v5 = vadd.f32 %v3846_v62, %v4763_v3  ;;  %v845_v6 = vpop.f32.mrb[3].mxu1  ;;  %v931_v8 = vpop.f32.mrb[5].mxu0  ;;  %v937_v9 = vadd.f32 %v3857_v1, %v4768_v4  ;;  %v3460_v1 = vld [vmem:[%s4770_s28 + $0x20] sm:$0xff] }
 0x217   : > { %v846_v10 = vadd.f32 %v4763_v3, %v845_v6  ;;  %v932_v14 = vadd.f32 %v4768_v4, %v931_v8 }
 0x218   : > { %v1030_v11 = vadd.f32 %v3432_v0, %v851_v5  ;;  %v1047_v17 = vadd.f32 %v3436_v12, %v937_v9  ;;  %v3465_v9 = vld [vmem:[%s4770_s28 + $0xa8] sm:$0xff] }
 0x219   : > { %v1029_v13 = vadd.f32 %v3431_v7, %v846_v10  ;;  %v1046_v19 = vadd.f32 %v3435_v16, %v932_v14 }
 0x21a   : > { %v3434_v15 = vmul.f32 -1.442695, %v1030_v11  ;;  %v3438_v22 = vmul.f32 -1.442695, %v1047_v17 }
 0x21b   : > { %v3433_v18 = vmul.f32 -1.442695, %v1029_v13  ;;  %v3437_v23 = vmul.f32 -1.442695, %v1046_v19  ;;  %v3464_v13 = vld [vmem:[%s4770_s28 + $0xa0] sm:$0xff] }
 0x21c   : > { %4350 = vpow2.f32 %v3434_v15 }
 0x21d   : > { %v3868_v20 = vpop.f32.mrb[4].mxu1  ;;  %4352 = vpow2.f32 %v3433_v18 }
 0x21e   : > { %v1017_v21 = vpop.f32.mrb[5].mxu1  ;;  %4354 = vpow2.f32 %v3438_v22  ;;  %v1023_v32 = vadd.f32 %v3868_v20, %v4783_v33 }
 0x21f   : > { %4356 = vpow2.f32 %v3437_v23  ;;  %v1018_v37 = vadd.f32 %v4783_v33, %v1017_v21 }
 0x226   : > { %v4351_v24 = vpop.eup %4350 }
 0x227   : > { %v1038_v25 = vadd.f32 1.0, %v4351_v24  ;;  %v4353_v26 = vpop.eup %4352 }
 0x228   : > { %v1037_v27 = vadd.f32 1.0, %v4353_v26  ;;  %v4355_v28 = vpop.eup %4354 }
 0x229   : > { %4358 = vrcp.f32 %v1038_v25  ;;  %v4357_v29 = vpop.eup %4356  ;;  %v1055_v30 = vadd.f32 1.0, %v4355_v28 }
 0x22a   : > { %4360 = vrcp.f32 %v1037_v27  ;;  %v1054_v31 = vadd.f32 1.0, %v4357_v29 }
 0x22b   : > { %4362 = vrcp.f32 %v1055_v30 }
 0x22c   : > { %4364 = vrcp.f32 %v1054_v31  ;;  %v3469_v31 = vld [vmem:[%s4770_s28 + $0x128] sm:$0xff] }
 0x233   : > { %v4359_v34 = vpop.eup %4358 }
 0x234   : > { %v1064_v36 = vmul.f32 %v4359_v34, %v1023_v32  ;;  %v4361_v38 = vpop.eup %4360 }
 0x235   : > { %v1063_v41 = vmul.f32 %v4361_v38, %v1018_v37  ;;  %v4363_v43 = vpop.eup %4362 }
 0x236   : > { %v1066_v40 = vadd.f32 %v3440_v35, %v1064_v36  ;;  %v4365_v44 = vpop.eup %4364  ;;  %v1070_v45 = vsub.f32 1.0, %v4363_v43  ;;  %v1074_v49 = vmul.f32 %v4363_v43, %v4789_v59  ;;  %v3461_v59 = vld [vmem:[%s4770_s28 + $0x28] sm:$0xff]  ;;  %v3468_v36 = vld [vmem:[%s4770_s28 + $0x120] sm:$0xff] }
 0x237   : > { %v1065_v42 = vadd.f32 %v3439_v39, %v1063_v41  ;;  %v1069_v47 = vsub.f32 1.0, %v4365_v44  ;;  %v1073_v53 = vmul.f32 %v4365_v44, %v4791_v60 }
 0x238   : > { %4366 = vtanh.f32 %v1066_v40 }
 0x239   : > { %4368 = vtanh.f32 %v1065_v42 }
 0x242   : > { %v4367_v46 = vpop.eup %4366 }
 0x243   : > { %v1072_v48 = vmul.f32 %v4367_v46, %v1070_v45  ;;  %v4369_v50 = vpop.eup %4368 }
 0x244   : > { %v1071_v52 = vmul.f32 %v4369_v50, %v1069_v47 }
 0x245   : > { %v4835_v54 = vadd.f32 %v1074_v49, %v1072_v48 }
 0x246   : > { %v4837_v55 = vadd.f32 %v1073_v53, %v1071_v52 }
 0x247   : > { %1079 = vst.msk [vmem:[#allocation2 + $0x18] sm:$0xff] %vm455_vm0, %v4835_v54 }
 0x248   : > { %1078 = vst.msk [vmem:[#allocation2 + $0x10] sm:$0xff] %vm455_vm0, %v4837_v55  ;;  %3877 = vmatprep.mubr.msk.f32.mxu0 %vm455_vm0, %v4837_v55  ;;  %3888 = vmatprep.mubr.msk.f32.mxu1 %vm455_vm0, %v4837_v55 }
 0x249   : > { %3878 = vmatmul.mubr.msk.f32.vlgmr.msra.gmra.mrb[6].mxu0 %vm455_vm0, %v4835_v54  ;;  %3889 = vmatmul.mubr.msk.f32.vlgmr.msra.gmra.mrb[6].mxu1 %vm455_vm0, %v4835_v54 }
 0x24a   : > { %4166 = vmatpush3.bf16.msra.mxu0 %v4730_v63  ;;  %3899 = vmatprep.mubr.msk.f32.mxu0 %vm455_vm0, %v4837_v55 }
 0x24b   : > { %4168 = vmatprep.subr.bf16.mxu0 %v4742_v2  ;;  %4174 = vmatpush3.bf16.msra.mxu1 %v4696_v51 }
 0x24c   : > { %4176 = vmatprep.subr.bf16.mxu1 %v4707_v56 }
 0x24e   : > { %4170 = vmatpush3.bf16.msra.mxu0 %v4742_v2 }
 0x24f   : > { %4180 = vmatprep.subr.bf16.mxu0 %v4709_v57  ;;  %4178 = vmatpush3.bf16.msra.mxu1 %v4707_v56 }
 0x250   : > { %4188 = vmatprep.subr.bf16.mxu1 %v4730_v63 }
 0x251   : > { %3900 = vmatmul.mubr.msk.f32.vlgmr.msra.gmra.mrb[8].mxu0 %vm455_vm0, %v4835_v54 }
 0x252   : > { %4182 = vmatpush3.bf16.msra.mxu0 %v4709_v57 }
 0x253   : > { %4184 = vmatprep.subr.bf16.mxu0 %v4721_v61 }
 0x256   : > { %4186 = vmatpush3.bf16.msra.mxu0 %v4721_v61 }
 0x257   : > { %4196 = vmatprep.subr.bf16.mxu0 %v4696_v51 }
 0x31c   : > { %v3879_v58 = vpop.f32.mrb[6].mxu0  ;;  %v3890_v60 = vpop.f32.mrb[6].mxu1 }
 0x31d   : > { %v1169_v62 = vadd.f32 %v3879_v58, %v4763_v3  ;;  %v1163_v0 = vpop.f32.mrb[7].mxu0  ;;  %v1249_v5 = vpop.f32.mrb[7].mxu1  ;;  %v1255_v6 = vadd.f32 %v3890_v60, %v4768_v4  ;;  %v3489_v60 = vld [vmem:[%s4770_s28 + $0x30] sm:$0xff] }
 0x31e   : > { %v1164_v7 = vadd.f32 %v4763_v3, %v1163_v0  ;;  %v1250_v11 = vadd.f32 %v4768_v4, %v1249_v5 }
 0x31f   : > { %v1348_v8 = vadd.f32 %v3461_v59, %v1169_v62  ;;  %v1365_v14 = vadd.f32 %v3465_v9, %v1255_v6  ;;  %v3494_v6 = vld [vmem:[%s4770_s28 + $0xb8] sm:$0xff] }
 0x320   : > { %v1347_v10 = vadd.f32 %v3460_v1, %v1164_v7  ;;  %v1364_v16 = vadd.f32 %v3464_v13, %v1250_v11 }
 0x321   : > { %v3463_v12 = vmul.f32 -1.442695, %v1348_v8  ;;  %v3467_v19 = vmul.f32 -1.442695, %v1365_v14 }
 0x322   : > { %v3462_v15 = vmul.f32 -1.442695, %v1347_v10  ;;  %v3466_v20 = vmul.f32 -1.442695, %v1364_v16  ;;  %v3493_v10 = vld [vmem:[%s4770_s28 + $0xb0] sm:$0xff] }
 0x323   : > { %4370 = vpow2.f32 %v3463_v12 }
 0x324   : > { %v3901_v17 = vpop.f32.mrb[8].mxu0  ;;  %4372 = vpow2.f32 %v3462_v15 }
 0x325   : > { %v1335_v18 = vpop.f32.mrb[9].mxu0  ;;  %4374 = vpow2.f32 %v3467_v19  ;;  %v1341_v29 = vadd.f32 %v3901_v17, %v4783_v33 }
 0x326   : > { %4376 = vpow2.f32 %v3466_v20  ;;  %v1336_v34 = vadd.f32 %v4783_v33, %v1335_v18 }
 0x32d   : > { %v4371_v21 = vpop.eup %4370 }
 0x32e   : > { %v1356_v22 = vadd.f32 1.0, %v4371_v21  ;;  %v4373_v23 = vpop.eup %4372 }
 0x32f   : > { %v1355_v24 = vadd.f32 1.0, %v4373_v23  ;;  %v4375_v25 = vpop.eup %4374 }
 0x330   : > { %4378 = vrcp.f32 %v1356_v22  ;;  %v4377_v26 = vpop.eup %4376  ;;  %v1373_v27 = vadd.f32 1.0, %v4375_v25 }
 0x331   : > { %4380 = vrcp.f32 %v1355_v24  ;;  %v1372_v28 = vadd.f32 1.0, %v4377_v26 }
 0x332   : > { %4382 = vrcp.f32 %v1373_v27 }
 0x333   : > { %4384 = vrcp.f32 %v1372_v28  ;;  %v3498_v28 = vld [vmem:[%s4770_s28 + $0x138] sm:$0xff] }
 0x33a   : > { %v4379_v30 = vpop.eup %4378 }
 0x33b   : > { %v1382_v32 = vmul.f32 %v4379_v30, %v1341_v29  ;;  %v4381_v35 = vpop.eup %4380 }
 0x33c   : > { %v1381_v38 = vmul.f32 %v4381_v35, %v1336_v34  ;;  %v4383_v40 = vpop.eup %4382 }
 0x33d   : > { %v1384_v37 = vadd.f32 %v3469_v31, %v1382_v32  ;;  %v4385_v41 = vpop.eup %4384  ;;  %v1388_v42 = vsub.f32 1.0, %v4383_v40  ;;  %v1392_v46 = vmul.f32 %v4383_v40, %v4835_v54  ;;  %v3490_v54 = vld [vmem:[%s4770_s28 + $0x38] sm:$0xff]  ;;  %v3497_v32 = vld [vmem:[%s4770_s28 + $0x130] sm:$0xff] }
 0x33e   : > { %v1383_v39 = vadd.f32 %v3468_v36, %v1381_v38  ;;  %v1387_v44 = vsub.f32 1.0, %v4385_v41  ;;  %v1391_v49 = vmul.f32 %v4385_v41, %v4837_v55 }
 0x33f   : > { %4386 = vtanh.f32 %v1384_v37 }
 0x340   : > { %4388 = vtanh.f32 %v1383_v39 }
 0x349   : > { %v4387_v43 = vpop.eup %4386 }
 0x34a   : > { %v1390_v45 = vmul.f32 %v4387_v43, %v1388_v42  ;;  %v4389_v47 = vpop.eup %4388 }
 0x34b   : > { %v1389_v48 = vmul.f32 %v4389_v47, %v1387_v44 }
 0x34c   : > { %v4881_v50 = vadd.f32 %v1392_v46, %v1390_v45 }
 0x34d   : > { %v4883_v52 = vadd.f32 %v1391_v49, %v1389_v48  ;;  %v3519_v49 = vld [vmem:[%s4770_s28 + $0x48] sm:$0xff] }
 0x34e   : > { %1397 = vst.msk [vmem:[#allocation2 + $0x28] sm:$0xff] %vm455_vm0, %v4881_v50 }
 0x34f   : > { %1396 = vst.msk [vmem:[#allocation2 + $0x20] sm:$0xff] %vm455_vm0, %v4883_v52  ;;  %3910 = vmatprep.mubr.msk.f32.mxu1 %vm455_vm0, %v4883_v52  ;;  %3921 = vmatprep.mubr.msk.f32.mxu0 %vm455_vm0, %v4883_v52 }
 0x350   : > { %3911 = vmatmul.mubr.msk.f32.vlgmr.msra.gmra.mrb[8].mxu1 %vm455_vm0, %v4881_v50  ;;  %3922 = vmatmul.mubr.msk.f32.vlgmr.msra.gmra.mrb[10].mxu0 %vm455_vm0, %v4881_v50 }
 0x351   : > { %4190 = vmatpush3.bf16.msra.mxu1 %v4730_v63  ;;  %3932 = vmatprep.mubr.msk.f32.mxu1 %vm455_vm0, %v4883_v52 }
 0x352   : > { %4192 = vmatprep.subr.bf16.mxu1 %v4742_v2  ;;  %4198 = vmatpush3.bf16.msra.mxu0 %v4696_v51 }
 0x353   : > { %4200 = vmatprep.subr.bf16.mxu0 %v4707_v56 }
 0x355   : > { %4194 = vmatpush3.bf16.msra.mxu1 %v4742_v2 }
 0x356   : > { %4204 = vmatprep.subr.bf16.mxu1 %v4709_v57  ;;  %4202 = vmatpush3.bf16.msra.mxu0 %v4707_v56 }
 0x357   : > { %4212 = vmatprep.subr.bf16.mxu0 %v4730_v63 }
 0x358   : > { %3933 = vmatmul.mubr.msk.f32.vlgmr.msra.gmra.mrb[10].mxu1 %vm455_vm0, %v4881_v50 }
 0x359   : > { %4206 = vmatpush3.bf16.msra.mxu1 %v4709_v57 }
 0x35a   : > { %4208 = vmatprep.subr.bf16.mxu1 %v4721_v61 }
 0x35d   : > { %4210 = vmatpush3.bf16.msra.mxu1 %v4721_v61 }
 0x35e   : > { %4220 = vmatprep.subr.bf16.mxu1 %v4696_v51 }
 0x423   : > { %v3912_v53 = vpop.f32.mrb[8].mxu1  ;;  %v3923_v55 = vpop.f32.mrb[10].mxu0 }
 0x424   : > { %v1487_v58 = vadd.f32 %v3912_v53, %v4763_v3  ;;  %v1481_v59 = vpop.f32.mrb[9].mxu1  ;;  %v1567_v62 = vpop.f32.mrb[11].mxu0  ;;  %v1573_v0 = vadd.f32 %v3923_v55, %v4768_v4 }
 0x425   : > { %v1482_v1 = vadd.f32 %v4763_v3, %v1481_v59  ;;  %v1568_v8 = vadd.f32 %v4768_v4, %v1567_v62 }
 0x426   : > { %v1666_v5 = vadd.f32 %v3490_v54, %v1487_v58  ;;  %v1683_v11 = vadd.f32 %v3494_v6, %v1573_v0 }
 0x427   : > { %v1665_v7 = vadd.f32 %v3489_v60, %v1482_v1  ;;  %v1682_v13 = vadd.f32 %v3493_v10, %v1568_v8  ;;  %v3523_v60 = vld [vmem:[%s4770_s28 + $0xc8] sm:$0xff]  ;;  %v3522_v1 = vld [vmem:[%s4770_s28 + $0xc0] sm:$0xff] }
 0x428   : > { %v3492_v9 = vmul.f32 -1.442695, %v1666_v5  ;;  %v3496_v16 = vmul.f32 -1.442695, %v1683_v11 }
 0x429   : > { %v3491_v12 = vmul.f32 -1.442695, %v1665_v7  ;;  %v3495_v17 = vmul.f32 -1.442695, %v1682_v13 }
 0x42a   : > { %4390 = vpow2.f32 %v3492_v9 }
 0x42b   : > { %v3934_v14 = vpop.f32.mrb[10].mxu1  ;;  %4392 = vpow2.f32 %v3491_v12 }
 0x42c   : > { %v1653_v15 = vpop.f32.mrb[11].mxu1  ;;  %4394 = vpow2.f32 %v3496_v16  ;;  %v1659_v26 = vadd.f32 %v3934_v14, %v4783_v33 }
 0x42d   : > { %4396 = vpow2.f32 %v3495_v17  ;;  %v1654_v30 = vadd.f32 %v4783_v33, %v1653_v15 }
 0x434   : > { %v4391_v18 = vpop.eup %4390 }
 0x435   : > { %v1674_v19 = vadd.f32 1.0, %v4391_v18  ;;  %v4393_v20 = vpop.eup %4392 }
 0x436   : > { %v1673_v21 = vadd.f32 1.0, %v4393_v20  ;;  %v4395_v22 = vpop.eup %4394 }
 0x437   : > { %4398 = vrcp.f32 %v1674_v19  ;;  %v4397_v23 = vpop.eup %4396  ;;  %v1691_v24 = vadd.f32 1.0, %v4395_v22 }
 0x438   : > { %4400 = vrcp.f32 %v1673_v21  ;;  %v1690_v25 = vadd.f32 1.0, %v4397_v23  ;;  %v3527_v21 = vld [vmem:[%s4770_s28 + $0x148] sm:$0xff] }
 0x439   : > { %4402 = vrcp.f32 %v1691_v24 }
 0x43a   : > { %4404 = vrcp.f32 %v1690_v25  ;;  %v3526_v25 = vld [vmem:[%s4770_s28 + $0x140] sm:$0xff] }
 0x441   : > { %v4399_v27 = vpop.eup %4398 }
 0x442   : > { %v1700_v29 = vmul.f32 %v4399_v27, %v1659_v26  ;;  %v4401_v31 = vpop.eup %4400 }
 0x443   : > { %v1699_v35 = vmul.f32 %v4401_v31, %v1654_v30  ;;  %v4403_v37 = vpop.eup %4402 }
 0x444   : > { %v1702_v34 = vadd.f32 %v3498_v28, %v1700_v29  ;;  %v4405_v38 = vpop.eup %4404  ;;  %v1706_v39 = vsub.f32 1.0, %v4403_v37  ;;  %v1710_v43 = vmul.f32 %v4403_v37, %v4881_v50 }
 0x445   : > { %v1701_v36 = vadd.f32 %v3497_v32, %v1699_v35  ;;  %v1705_v41 = vsub.f32 1.0, %v4405_v38  ;;  %v1709_v46 = vmul.f32 %v4405_v38, %v4883_v52 }
 0x446   : > { %4406 = vtanh.f32 %v1702_v34 }
 0x447   : > { %4408 = vtanh.f32 %v1701_v36 }
 0x450   : > { %v4407_v40 = vpop.eup %4406 }
 0x451   : > { %v1708_v42 = vmul.f32 %v4407_v40, %v1706_v39  ;;  %v4409_v44 = vpop.eup %4408 }
 0x452   : > { %v1707_v45 = vmul.f32 %v4409_v44, %v1705_v41 }
 0x453   : > { %v4927_v47 = vadd.f32 %v1710_v43, %v1708_v42  ;;  %v2352_v42 = vld [vmem:[%s5291_s1] sm:$0xff]  ;;  %v2353_v43 = vld [vmem:[%s5291_s1 + $0x8] sm:$0xff] }
 0x454   : > { %v4929_v48 = vadd.f32 %v1709_v46, %v1707_v45  ;;  %v5004_v44 = vpack.c.bf16 %v2353_v43, %v2352_v42  ;;  %v2354_v45 = vld [vmem:[%s5291_s1 + $0x10] sm:$0xff]  ;;  %v2355_v46 = vld [vmem:[%s5291_s1 + $0x18] sm:$0xff] }
 0x455   : > { %1715 = vst.msk [vmem:[#allocation2 + $0x38] sm:$0xff] %vm455_vm0, %v4927_v47 }
 0x456   : > { %1714 = vst.msk [vmem:[#allocation2 + $0x30] sm:$0xff] %vm455_vm0, %v4929_v48  ;;  %3943 = vmatprep.mubr.msk.f32.mxu0 %vm455_vm0, %v4929_v48  ;;  %3954 = vmatprep.mubr.msk.f32.mxu1 %vm455_vm0, %v4929_v48 }
 0x457   : > { %3944 = vmatmul.mubr.msk.f32.vlgmr.msra.gmra.mrb[12].mxu0 %vm455_vm0, %v4927_v47  ;;  %3955 = vmatmul.mubr.msk.f32.vlgmr.msra.gmra.mrb[12].mxu1 %vm455_vm0, %v4927_v47 }
 0x458   : > { %4214 = vmatpush3.bf16.msra.mxu0 %v4730_v63  ;;  %3965 = vmatprep.mubr.msk.f32.mxu0 %vm455_vm0, %v4929_v48 }
 0x459   : > { %4216 = vmatprep.subr.bf16.mxu0 %v4742_v2  ;;  %4222 = vmatpush3.bf16.msra.mxu1 %v4696_v51 }
 0x45a   : > { %4224 = vmatprep.subr.bf16.mxu1 %v4707_v56 }
 0x45c   : > { %4218 = vmatpush3.bf16.msra.mxu0 %v4742_v2 }
 0x45d   : > { %4228 = vmatprep.subr.bf16.mxu0 %v4709_v57  ;;  %4226 = vmatpush3.bf16.msra.mxu1 %v4707_v56  ;;  %v3518_v56 = vld [vmem:[%s4770_s28 + $0x40] sm:$0xff] }
 0x45e   : > { %4236 = vmatprep.subr.bf16.mxu1 %v4730_v63 }
 0x45f   : > { %3966 = vmatmul.mubr.msk.f32.vlgmr.msra.gmra.mrb[14].mxu0 %vm455_vm0, %v4927_v47 }
 0x460   : > { %4230 = vmatpush3.bf16.msra.mxu0 %v4709_v57 }
 0x461   : > { %4232 = vmatprep.subr.bf16.mxu0 %v4721_v61 }
 0x464   : > { %4234 = vmatpush3.bf16.msra.mxu0 %v4721_v61 }
 0x465   : > { %4244 = vmatprep.subr.bf16.mxu0 %v5004_v44 }
 0x52a   : > { %v3945_v51 = vpop.f32.mrb[12].mxu0  ;;  %v3956_v50 = vpop.f32.mrb[12].mxu1 }
 0x52b   : > { %v1805_v52 = vadd.f32 %v3945_v51, %v4763_v3  ;;  %v1799_v53 = vpop.f32.mrb[13].mxu0  ;;  %v1885_v54 = vpop.f32.mrb[13].mxu1  ;;  %v1891_v55 = vadd.f32 %v3956_v50, %v4768_v4  ;;  %v3562_v51 = vld [vmem:[%s5291_s1 + $0x30] sm:$0xff] }
 0x52c   : > { %v1800_v58 = vadd.f32 %v4763_v3, %v1799_v53  ;;  %v1886_v62 = vadd.f32 %v4768_v4, %v1885_v54  ;;  %v3569_v53 = vld [vmem:[%s5291_s1 + $0x48] sm:$0xff] }
 0x52d   : > { %v1984_v59 = vadd.f32 %v3519_v49, %v1805_v52  ;;  %v2001_v61 = vadd.f32 %v3523_v60, %v1891_v55  ;;  %v3563_v49 = vld [vmem:[%s5291_s1 + $0x38] sm:$0xff]  ;;  %v3568_v52 = vld [vmem:[%s5291_s1 + $0x40] sm:$0xff] }
 0x52e   : > { %v1983_v57 = vadd.f32 %v3518_v56, %v1800_v58  ;;  %v2000_v6 = vadd.f32 %v3522_v1, %v1886_v62  ;;  %v5026_v50 = vpack.c.bf16 %v3563_v49, %v3562_v51  ;;  %v5042_v56 = vpack.c.bf16 %v3569_v53, %v3568_v52  ;;  %v3548_v55 = vld [vmem:[%s4770_s28 + $0x58] sm:$0xff]  ;;  %v5115_v49 = vld [vmem:[%s5292_s2 + $0x1] ss:$0 sm:$0xff]  ;;  %v3577_v52 = vld [vmem:[%s4770_s28 + $0x68] sm:$0xff] }
 0x52f   : > { %v3521_v0 = vmul.f32 -1.442695, %v1984_v59  ;;  %v3525_v9 = vmul.f32 -1.442695, %v2001_v61 }
 0x530   : > { %v3520_v5 = vmul.f32 -1.442695, %v1983_v57  ;;  %v3524_v10 = vmul.f32 -1.442695, %v2000_v6  ;;  %v3547_v57 = vld [vmem:[%s4770_s28 + $0x50] sm:$0xff] }
 0x531   : > { %4410 = vpow2.f32 %v3521_v0 }
 0x532   : > { %v3967_v7 = vpop.f32.mrb[14].mxu0  ;;  %4412 = vpow2.f32 %v3520_v5  ;;  %v3552_v5 = vld [vmem:[%s4770_s28 + $0xd8] sm:$0xff] }
 0x533   : > { %v1971_v8 = vpop.f32.mrb[15].mxu0  ;;  %4414 = vpow2.f32 %v3525_v9  ;;  %v1977_v19 = vadd.f32 %v3967_v7, %v4783_v33  ;;  %v3551_v9 = vld [vmem:[%s4770_s28 + $0xd0] sm:$0xff] }
 0x534   : > { %4416 = vpow2.f32 %v3524_v10  ;;  %v1972_v23 = vadd.f32 %v4783_v33, %v1971_v8 }
 0x53b   : > { %v4411_v11 = vpop.eup %4410 }
 0x53c   : > { %v1992_v12 = vadd.f32 1.0, %v4411_v11  ;;  %v4413_v13 = vpop.eup %4412 }
 0x53d   : > { %v1991_v14 = vadd.f32 1.0, %v4413_v13  ;;  %v4415_v15 = vpop.eup %4414 }
 0x53e   : > { %4418 = vrcp.f32 %v1992_v12  ;;  %v4417_v16 = vpop.eup %4416  ;;  %v2009_v17 = vadd.f32 1.0, %v4415_v15 }
 0x53f   : > { %4420 = vrcp.f32 %v1991_v14  ;;  %v2008_v18 = vadd.f32 1.0, %v4417_v16 }
 0x540   : > { %4422 = vrcp.f32 %v2009_v17 }
 0x541   : > { %4424 = vrcp.f32 %v2008_v18 }
 0x548   : > { %v4419_v20 = vpop.eup %4418 }
 0x549   : > { %v2018_v22 = vmul.f32 %v4419_v20, %v1977_v19  ;;  %v4421_v24 = vpop.eup %4420 }
 0x54a   : > { %v2017_v27 = vmul.f32 %v4421_v24, %v1972_v23  ;;  %v4423_v29 = vpop.eup %4422 }
 0x54b   : > { %v2020_v26 = vadd.f32 %v3527_v21, %v2018_v22  ;;  %v4425_v30 = vpop.eup %4424  ;;  %v2024_v31 = vsub.f32 1.0, %v4423_v29  ;;  %v2028_v36 = vmul.f32 %v4423_v29, %v4927_v47  ;;  %v3555_v29 = vld [vmem:[%s4770_s28 + $0x150] sm:$0xff] }
 0x54c   : > { %v2019_v28 = vadd.f32 %v3526_v25, %v2017_v27  ;;  %v2023_v34 = vsub.f32 1.0, %v4425_v30  ;;  %v2027_v39 = vmul.f32 %v4425_v30, %v4929_v48  ;;  %v5017_v48 = vpack.c.bf16 %v2355_v46, %v2354_v45  ;;  %v3556_v25 = vld [vmem:[%s4770_s28 + $0x158] sm:$0xff]  ;;  %v3570_v45 = vld [vmem:[%s5291_s1 + $0x50] sm:$0xff] }
 0x54d   : > { %4426 = vtanh.f32 %v2020_v26  ;;  %v3571_v46 = vld [vmem:[%s5291_s1 + $0x58] sm:$0xff] }
 0x54e   : > { %4428 = vtanh.f32 %v2019_v28 }
 0x557   : > { %v4427_v32 = vpop.eup %4426 }
 0x558   : > { %v2026_v35 = vmul.f32 %v4427_v32, %v2024_v31  ;;  %v4429_v37 = vpop.eup %4428 }
 0x559   : > { %v2025_v38 = vmul.f32 %v4429_v37, %v2023_v34 }
 0x55a   : > { %v4972_v40 = vadd.f32 %v2028_v36, %v2026_v35 }
 0x55b   : > { %v4974_v41 = vadd.f32 %v2027_v39, %v2025_v38 }
 0x55c   : > { %2033 = vst.msk [vmem:[#allocation2 + $0x48] sm:$0xff] %vm455_vm0, %v4972_v40 }
 0x55d   : > { %2032 = vst.msk [vmem:[#allocation2 + $0x40] sm:$0xff] %vm455_vm0, %v4974_v41  ;;  %3976 = vmatprep.mubr.msk.f32.mxu1 %vm455_vm0, %v4974_v41  ;;  %3987 = vmatprep.mubr.msk.f32.mxu0 %vm455_vm0, %v4974_v41 }
 0x55e   : > { %3977 = vmatmul.mubr.msk.f32.vlgmr.msra.gmra.mrb[14].mxu1 %vm455_vm0, %v4972_v40  ;;  %3988 = vmatmul.mubr.msk.f32.vlgmr.msra.gmra.mrb[16].mxu0 %vm455_vm0, %v4972_v40 }
 0x55f   : > { %4238 = vmatpush3.bf16.msra.mxu1 %v4730_v63  ;;  %3998 = vmatprep.mubr.msk.f32.mxu1 %vm455_vm0, %v4974_v41  ;;  %v3560_v63 = vld [vmem:[%s5291_s1 + $0x20] sm:$0xff] }
 0x560   : > { %4240 = vmatprep.subr.bf16.mxu1 %v4742_v2  ;;  %4246 = vmatpush3.bf16.msra.mxu0 %v5004_v44 }
 0x561   : > { %4248 = vmatprep.subr.bf16.mxu0 %v5017_v48 }
 0x563   : > { %4242 = vmatpush3.bf16.msra.mxu1 %v4742_v2  ;;  %v3561_v2 = vld [vmem:[%s5291_s1 + $0x28] sm:$0xff] }
 0x564   : > { %v5015_v47 = vpack.c.bf16 %v3561_v2, %v3560_v63  ;;  %4250 = vmatpush3.bf16.msra.mxu0 %v5017_v48 }
 0x565   : > { %4260 = vmatprep.subr.bf16.mxu0 %v5042_v56 }
 0x566   : > { %3999 = vmatmul.mubr.msk.f32.vlgmr.msra.gmra.mrb[16].mxu1 %vm455_vm0, %v4972_v40  ;;  %4252 = vmatprep.subr.bf16.mxu1 %v5015_v47 }
 0x567   : > { %4254 = vmatpush3.bf16.msra.mxu1 %v5015_v47 }
 0x568   : > { %4256 = vmatprep.subr.bf16.mxu1 %v5026_v50 }
 0x56b   : > { %4258 = vmatpush3.bf16.msra.mxu1 %v5026_v50 }
 0x56c   : > { %4268 = vmatprep.subr.bf16.mxu1 %v5004_v44 }
 0x631   : > { %v3978_v54 = vpop.f32.mrb[14].mxu1  ;;  %v3989_v58 = vpop.f32.mrb[16].mxu0 }
 0x632   : > { %v2123_v59 = vadd.f32 %v3978_v54, %v4763_v3  ;;  %v2117_v60 = vpop.f32.mrb[15].mxu1  ;;  %v2203_v62 = vpop.f32.mrb[17].mxu0  ;;  %v2209_v0 = vadd.f32 %v3989_v58, %v4768_v4  ;;  %v3576_v58 = vld [vmem:[%s4770_s28 + $0x60] sm:$0xff] }
 0x633   : > { %v2118_v1 = vadd.f32 %v4763_v3, %v2117_v60  ;;  %v2204_v7 = vadd.f32 %v4768_v4, %v2203_v62 }
 0x634   : > { %v2302_v61 = vadd.f32 %v3548_v55, %v2123_v59  ;;  %v2319_v10 = vadd.f32 %v3552_v5, %v2209_v0  ;;  %v3581_v0 = vld [vmem:[%s4770_s28 + $0xe8] sm:$0xff] }
 0x635   : > { %v2301_v6 = vadd.f32 %v3547_v57, %v2118_v1  ;;  %v2318_v12 = vadd.f32 %v3551_v9, %v2204_v7 }
 0x636   : > { %v3550_v8 = vmul.f32 -1.442695, %v2302_v61  ;;  %v3554_v15 = vmul.f32 -1.442695, %v2319_v10 }
 0x637   : > { %v3549_v11 = vmul.f32 -1.442695, %v2301_v6  ;;  %v3553_v16 = vmul.f32 -1.442695, %v2318_v12  ;;  %v3580_v6 = vld [vmem:[%s4770_s28 + $0xe0] sm:$0xff] }
 0x638   : > { %4430 = vpow2.f32 %v3550_v8 }
 0x639   : > { %v4000_v13 = vpop.f32.mrb[16].mxu1  ;;  %4432 = vpow2.f32 %v3549_v11 }
 0x63a   : > { %v2289_v14 = vpop.f32.mrb[17].mxu1  ;;  %4434 = vpow2.f32 %v3554_v15  ;;  %v2295_v23 = vadd.f32 %v4000_v13, %v4783_v33 }
 0x63b   : > { %4436 = vpow2.f32 %v3553_v16  ;;  %v2290_v27 = vadd.f32 %v4783_v33, %v2289_v14 }
 0x642   : > { %v4431_v3 = vpop.eup %4430 }
 0x643   : > { %v2310_v17 = vadd.f32 1.0, %v4431_v3  ;;  %v4433_v18 = vpop.eup %4432 }
 0x644   : > { %v2309_v4 = vadd.f32 1.0, %v4433_v18  ;;  %v4435_v19 = vpop.eup %4434 }
 0x645   : > { %4438 = vrcp.f32 %v2310_v17  ;;  %v4437_v20 = vpop.eup %4436  ;;  %v2327_v21 = vadd.f32 1.0, %v4435_v19 }
 0x646   : > { %4440 = vrcp.f32 %v2309_v4  ;;  %v2326_v22 = vadd.f32 1.0, %v4437_v20  ;;  %v5128_v4 = vld [vmem:[%s5292_s2 + $0x2] ss:$0 sm:$0xff] }
 0x647   : > { %4442 = vrcp.f32 %v2327_v21 }
 0x648   : > { %4444 = vrcp.f32 %v2326_v22 }
 0x64f   : > { %v4439_v24 = vpop.eup %4438 }
 0x650   : > { %v2336_v26 = vmul.f32 %v4439_v24, %v2295_v23  ;;  %v4441_v28 = vpop.eup %4440  ;;  %v3585_v23 = vld [vmem:[%s4770_s28 + $0x168] sm:$0xff] }
 0x651   : > { %v2335_v31 = vmul.f32 %v4441_v28, %v2290_v27  ;;  %v4443_v34 = vpop.eup %4442  ;;  %v3584_v27 = vld [vmem:[%s4770_s28 + $0x160] sm:$0xff] }
 0x652   : > { %v2338_v30 = vadd.f32 %v3556_v25, %v2336_v26  ;;  %v4445_v35 = vpop.eup %4444  ;;  %v2342_v36 = vsub.f32 1.0, %v4443_v34  ;;  %v2346_v42 = vmul.f32 %v4443_v34, %v4972_v40  ;;  %v5071_v40 = vpack.c.bf16 %v3571_v46, %v3570_v45  ;;  %v3007_v45 = vld [vmem:[%s5293_s3 + $0x18] sm:$0xff] }
 0x653   : > { %v2337_v32 = vadd.f32 %v3555_v29, %v2335_v31  ;;  %v2341_v38 = vsub.f32 1.0, %v4445_v35  ;;  %v2345_v33 = vmul.f32 %v4445_v35, %v4974_v41  ;;  %v3004_v41 = vld [vmem:[%s5293_s3] sm:$0xff] }
 0x654   : > { %4446 = vtanh.f32 %v2338_v30 }
 0x655   : > { %4448 = vtanh.f32 %v2337_v32 }
 0x65e   : > { %v4447_v37 = vpop.eup %4446 }
 0x65f   : > { %v2344_v39 = vmul.f32 %v4447_v37, %v2342_v36  ;;  %v4449_v43 = vpop.eup %4448 }
 0x660   : > { %v2343_v63 = vmul.f32 %v4449_v43, %v2341_v38 }
 0x661   : > { %v5059_v2 = vadd.f32 %v2346_v42, %v2344_v39 }
 0x662   : > { %v5067_v51 = vadd.f32 %v2345_v33, %v2343_v63  ;;  %v3006_v33 = vld [vmem:[%s5293_s3 + $0x10] sm:$0xff] }
 0x663   : > { %2351 = vst.msk [vmem:[#allocation2 + $0x58] sm:$0xff] %vm455_vm0, %v5059_v2 }
 0x664   : > { %2350 = vst.msk [vmem:[#allocation2 + $0x50] sm:$0xff] %vm455_vm0, %v5067_v51  ;;  %4009 = vmatprep.mubr.msk.f32.mxu0 %vm455_vm0, %v5067_v51  ;;  %4020 = vmatprep.mubr.msk.f32.mxu1 %vm455_vm0, %v5067_v51 }
 0x665   : > { %4010 = vmatmul.mubr.msk.f32.vlgmr.msra.gmra.mrb[18].mxu0 %vm455_vm0, %v5059_v2  ;;  %4021 = vmatmul.mubr.msk.f32.vlgmr.msra.gmra.mrb[18].mxu1 %vm455_vm0, %v5059_v2 }
 0x666   : > { %4262 = vmatpush3.bf16.msra.mxu0 %v5042_v56  ;;  %4031 = vmatprep.mubr.msk.f32.mxu0 %vm455_vm0, %v5067_v51 }
 0x667   : > { %4264 = vmatprep.subr.bf16.mxu0 %v5071_v40  ;;  %4270 = vmatpush3.bf16.msra.mxu1 %v5004_v44  ;;  %v3005_v44 = vld [vmem:[%s5293_s3 + $0x8] sm:$0xff] }
 0x668   : > { %4272 = vmatprep.subr.bf16.mxu1 %v5017_v48 }
 0x66a   : > { %4266 = vmatpush3.bf16.msra.mxu0 %v5071_v40 }
 0x66b   : > { %4276 = vmatprep.subr.bf16.mxu0 %v5015_v47  ;;  %4274 = vmatpush3.bf16.msra.mxu1 %v5017_v48  ;;  %v5104_v48 = vpack.c.bf16 %v3005_v44, %v3004_v41  ;;  %v2989_v41 = vld [vmem:[#allocation2 + $0x8] sm:$0xff]  ;;  %v2996_v44 = vld [vmem:[#allocation2 + $0x40] sm:$0xff] }
 0x66c   : > { %4284 = vmatprep.subr.bf16.mxu1 %v5042_v56 }
 0x66d   : > { %4032 = vmatmul.mubr.msk.f32.vlgmr.msra.gmra.mrb[20].mxu0 %vm455_vm0, %v5059_v2 }
 0x66e   : > { %4278 = vmatpush3.bf16.msra.mxu0 %v5015_v47  ;;  %v5110_v47 = vld [vmem:[%s5292_s2] ss:$0 sm:$0xff] }
 0x66f   : > { %4280 = vmatprep.subr.bf16.mxu0 %v5026_v50 }
 0x672   : > { %4282 = vmatpush3.bf16.msra.mxu0 %v5026_v50 }
 0x673   : > { %4292 = vmatprep.subr.bf16.mxu0 %v5104_v48 }
 0x738   : > { %v4011_v50 = vpop.f32.mrb[18].mxu0  ;;  %v4022_v53 = vpop.f32.mrb[18].mxu1 }
 0x739   : > { %v2441_v54 = vadd.f32 %v4011_v50, %v5110_v47  ;;  %v2435_v55 = vpop.f32.mrb[19].mxu0  ;;  %v2521_v59 = vpop.f32.mrb[19].mxu1  ;;  %v2527_v60 = vadd.f32 %v4022_v53, %v5115_v49  ;;  %v2991_v50 = vld [vmem:[#allocation2 + $0x18] sm:$0xff]  ;;  %v2997_v53 = vld [vmem:[#allocation2 + $0x48] sm:$0xff] }
 0x73a   : > { %v2436_v57 = vadd.f32 %v5110_v47, %v2435_v55  ;;  %v2522_v61 = vadd.f32 %v5115_v49, %v2521_v59  ;;  %v2995_v55 = vld [vmem:[#allocation2 + $0x38] sm:$0xff] }
 0x73b   : > { %v2620_v62 = vadd.f32 %v3577_v52, %v2441_v54  ;;  %v2637_v7 = vadd.f32 %v3581_v0, %v2527_v60  ;;  %v2993_v52 = vld [vmem:[#allocation2 + $0x28] sm:$0xff]  ;;  %v2998_v54 = vld [vmem:[#allocation2 + $0x50] sm:$0xff] }
 0x73c   : > { %v2619_v1 = vadd.f32 %v3576_v58, %v2436_v57  ;;  %v2636_v9 = vadd.f32 %v3580_v6, %v2522_v61  ;;  %v2999_v58 = vld [vmem:[#allocation2 + $0x58] sm:$0xff] }
 0x73d   : > { %v3579_v5 = vmul.f32 -1.442695, %v2620_v62  ;;  %v3583_v12 = vmul.f32 -1.442695, %v2637_v7  ;;  %v3606_v62 = vld [vmem:[%s4770_s28 + $0x78] sm:$0xff] }
 0x73e   : > { %v3578_v8 = vmul.f32 -1.442695, %v2619_v1  ;;  %v3582_v13 = vmul.f32 -1.442695, %v2636_v9 }
 0x73f   : > { %4450 = vpow2.f32 %v3579_v5  ;;  %v3605_v5 = vld [vmem:[%s4770_s28 + $0x70] sm:$0xff] }
 0x740   : > { %v4033_v10 = vpop.f32.mrb[20].mxu0  ;;  %4452 = vpow2.f32 %v3578_v8 }
 0x741   : > { %v2607_v11 = vpop.f32.mrb[21].mxu0  ;;  %4454 = vpow2.f32 %v3583_v12  ;;  %v2613_v21 = vadd.f32 %v4033_v10, %v5128_v4  ;;  %v3610_v10 = vld [vmem:[%s4770_s28 + $0xf8] sm:$0xff] }
 0x742   : > { %4456 = vpow2.f32 %v3582_v13  ;;  %v2608_v25 = vadd.f32 %v5128_v4, %v2607_v11 }
 0x749   : > { %v4451_v14 = vpop.eup %4450 }
 0x74a   : > { %v2628_v15 = vadd.f32 1.0, %v4451_v14  ;;  %v4453_v16 = vpop.eup %4452  ;;  %v3609_v14 = vld [vmem:[%s4770_s28 + $0xf0] sm:$0xff] }
 0x74b   : > { %v2627_v3 = vadd.f32 1.0, %v4453_v16  ;;  %v4455_v17 = vpop.eup %4454 }
 0x74c   : > { %4458 = vrcp.f32 %v2628_v15  ;;  %v4457_v18 = vpop.eup %4456  ;;  %v2645_v19 = vadd.f32 1.0, %v4455_v17 }
 0x74d   : > { %4460 = vrcp.f32 %v2627_v3  ;;  %v2644_v20 = vadd.f32 1.0, %v4457_v18  ;;  %v5195_v3 = vld [vmem:[%s5294_s4] ss:$0 sm:$0xff] }
 0x74e   : > { %4462 = vrcp.f32 %v2645_v19 }
 0x74f   : > { %4464 = vrcp.f32 %v2644_v20 }
 0x756   : > { %v4459_v22 = vpop.eup %4458 }
 0x757   : > { %v2654_v24 = vmul.f32 %v4459_v22, %v2613_v21  ;;  %v4461_v26 = vpop.eup %4460 }
 0x758   : > { %v2653_v29 = vmul.f32 %v4461_v26, %v2608_v25  ;;  %v4463_v31 = vpop.eup %4462 }
 0x759   : > { %v2656_v28 = vadd.f32 %v3585_v23, %v2654_v24  ;;  %v4465_v32 = vpop.eup %4464  ;;  %v2660_v34 = vsub.f32 1.0, %v4463_v31  ;;  %v2664_v38 = vmul.f32 %v4463_v31, %v5059_v2  ;;  %v4295_v2 = vpack.c.bf16 %v3007_v45, %v3006_v33 }
 0x75a   : > { %v2655_v30 = vadd.f32 %v3584_v27, %v2653_v29  ;;  %v2659_v36 = vsub.f32 1.0, %v4465_v32  ;;  %v2663_v43 = vmul.f32 %v4465_v32, %v5067_v51  ;;  %v2988_v51 = vld [vmem:[#allocation2] sm:$0xff] }
 0x75b   : > { %4466 = vtanh.f32 %v2656_v28 }
 0x75c   : > { %4468 = vtanh.f32 %v2655_v30 }
 0x765   : > { %v4467_v35 = vpop.eup %4466 }
 0x766   : > { %v2662_v37 = vmul.f32 %v4467_v35, %v2660_v34  ;;  %v4469_v39 = vpop.eup %4468 }
 0x767   : > { %v2661_v42 = vmul.f32 %v4469_v39, %v2659_v36 }
 0x768   : > { %v5136_v63 = vadd.f32 %v2664_v38, %v2662_v37 }
 0x769   : > { %v5144_v46 = vadd.f32 %v2663_v43, %v2661_v42 }
 0x76a   : > { %2669 = vst.msk [vmem:[#allocation2 + $0x68] sm:$0xff] %vm455_vm0, %v5136_v63 }
 0x76b   : > { %2668 = vst.msk [vmem:[#allocation2 + $0x60] sm:$0xff] %vm455_vm0, %v5144_v46  ;;  %4042 = vmatprep.mubr.msk.f32.mxu1 %vm455_vm0, %v5144_v46  ;;  %4053 = vmatprep.mubr.msk.f32.mxu0 %vm455_vm0, %v5144_v46 }
 0x76c   : > { %4043 = vmatmul.mubr.msk.f32.vlgmr.msra.gmra.mrb[20].mxu1 %vm455_vm0, %v5136_v63  ;;  %4054 = vmatmul.mubr.msk.f32.vlgmr.msra.gmra.mrb[22].mxu0 %vm455_vm0, %v5136_v63 }
 0x76d   : > { %4286 = vmatpush3.bf16.msra.mxu1 %v5042_v56  ;;  %4294 = vmatpush3.bf16.msra.mxu0 %v5104_v48  ;;  %v2990_v56 = vld [vmem:[#allocation2 + $0x10] sm:$0xff] }
 0x76e   : > { %4064 = vmatprep.mubr.msk.f32.mxu1 %vm455_vm0, %v5144_v46  ;;  %4075 = vmatprep.mubr.msk.f32.mxu0 %vm455_vm0, %v2988_v51 }
 0x76f   : > { %4288 = vmatprep.subr.bf16.mxu1 %v5071_v40  ;;  %4296 = vmatprep.subr.bf16.mxu0 %v4295_v2 }
 0x771   : > { %4290 = vmatpush3.bf16.msra.mxu1 %v5071_v40  ;;  %4298 = vmatpush3.bf16.msra.mxu0 %v4295_v2  ;;  %v2992_v40 = vld [vmem:[#allocation2 + $0x20] sm:$0xff]  ;;  %v3001_v60 = vld [vmem:[#allocation2 + $0x68] sm:$0xff] }
 0x772   : > { %4299 = vmatprep.subr.bf16.mxu1 %v5104_v48  ;;  %v3000_v59 = vld [vmem:[#allocation2 + $0x60] sm:$0xff] }
 0x774   : > { %4065 = vmatmul.mubr.msk.f32.vlgmr.msra.gmra.mrb[22].mxu1 %vm455_vm0, %v5136_v63  ;;  %4076 = vmatmul.mubr.msk.f32.vlgmr.msra.gmra.mrb[24].mxu0 %vm455_vm0, %v2989_v41 }
 0x775   : > { %4301 = vmatpush3.bf16.msra.mxu1 %v5104_v48  ;;  %4078 = vmatprep.mubr.msk.f32.mxu0 %vm455_vm0, %v2990_v56  ;;  %v2994_v48 = vld [vmem:[#allocation2 + $0x30] sm:$0xff] }
 0x776   : > { %4087 = vmatprep.mubr.msk.f32.mxu1 %vm455_vm0, %v2996_v44  ;;  %4300 = vmatprep.subr.bf16.mxu1 %v4295_v2 }
 0x778   : > { %4079 = vmatmul.mubr.msk.f32.gmra.mrb[26].mxu0 %vm455_vm0, %v2991_v50 }
 0x779   : > { %4302 = vmatpush3.bf16.msra.mxu1 %v4295_v2  ;;  %4081 = vmatprep.mubr.msk.f32.mxu0 %vm455_vm0, %v2992_v40 }
 0x77c   : > { %4082 = vmatmul.mubr.msk.f32.gmra.mrb[28].mxu0 %vm455_vm0, %v2993_v52  ;;  %4088 = vmatmul.mubr.msk.f32.vlgmr.msra.gmra.mrb[24].mxu1 %vm455_vm0, %v2997_v53 }
 0x77d   : > { %4084 = vmatprep.mubr.msk.f32.mxu0 %vm455_vm0, %v2994_v48  ;;  %4090 = vmatprep.mubr.msk.f32.mxu1 %vm455_vm0, %v2998_v54 }
 0x780   : > { %4085 = vmatmul.mubr.msk.f32.gmra.mrb[30].mxu0 %vm455_vm0, %v2995_v55  ;;  %4091 = vmatmul.mubr.msk.f32.gmra.mrb[26].mxu1 %vm455_vm0, %v2999_v58 }
 0x781   : > { %4093 = vmatprep.mubr.msk.f32.mxu1 %vm455_vm0, %v3000_v59 }
 0x784   : > { %4094 = vmatmul.mubr.msk.f32.gmra.mrb[28].mxu1 %vm455_vm0, %v3001_v60 }
 0x83f   : > { %v4044_v57 = vpop.f32.mrb[20].mxu1  ;;  %v4055_v0 = vpop.f32.mrb[22].mxu0 }
 0x840   : > { %v2759_v1 = vadd.f32 %v4044_v57, %v5110_v47  ;;  %v2753_v61 = vpop.f32.mrb[21].mxu1  ;;  %v2839_v6 = vpop.f32.mrb[23].mxu0  ;;  %v2845_v7 = vadd.f32 %v4055_v0, %v5115_v49  ;;  %v3614_v57 = vld [vmem:[%s4770_s28 + $0x178] sm:$0xff] }
 0x841   : > { %v2754_v8 = vadd.f32 %v5110_v47, %v2753_v61  ;;  %v2840_v12 = vadd.f32 %v5115_v49, %v2839_v6  ;;  %v3613_v61 = vld [vmem:[%s4770_s28 + $0x170] sm:$0xff] }
 0x842   : > { %v2938_v9 = vadd.f32 %v3606_v62, %v2759_v1  ;;  %v2955_v15 = vadd.f32 %v3610_v10, %v2845_v7 }
 0x843   : > { %v2937_v11 = vadd.f32 %v3605_v5, %v2754_v8  ;;  %v2954_v17 = vadd.f32 %v3609_v14, %v2840_v12 }
 0x844   : > { %v3608_v13 = vmul.f32 -1.442695, %v2938_v9  ;;  %v3612_v21 = vmul.f32 -1.442695, %v2955_v15 }
 0x845   : > { %v3607_v16 = vmul.f32 -1.442695, %v2937_v11  ;;  %v3611_v23 = vmul.f32 -1.442695, %v2954_v17 }
 0x846   : > { %4470 = vpow2.f32 %v3608_v13 }
 0x847   : > { %v4066_v18 = vpop.f32.mrb[22].mxu1  ;;  %v4077_v47 = vpop.f32.mrb[24].mxu0  ;;  %4472 = vpow2.f32 %v3607_v16 }
 0x848   : > { %v3135_v19 = vadd.f32 %v4077_v47, %v5195_v3  ;;  %v2925_v49 = vpop.f32.mrb[23].mxu1  ;;  %v3129_v20 = vpop.f32.mrb[25].mxu0  ;;  %4474 = vpow2.f32 %v3612_v21  ;;  %v2931_v59 = vadd.f32 %v4066_v18, %v5128_v4 }
 0x849   : > { %v3130_v22 = vadd.f32 %v5195_v3, %v3129_v20  ;;  %4476 = vpow2.f32 %v3611_v23  ;;  %v2926_v0 = vadd.f32 %v5128_v4, %v2925_v49 }
 0x84a   : > { %3210 = vst.msk [vmem:[%s5199_s18 + $0x8] sm:$0xff] %vm3208_vm1, %v3135_v19 }
 0x84b   : > { %3209 = vst.msk [vmem:[%s5199_s18] sm:$0xff] %vm3208_vm1, %v3130_v22  ;;  %v4080_v24 = vpop.f32.mrb[26].mxu0 }
 0x84c   : > { %v3145_v25 = vadd.f32 %v4080_v24, %v5195_v3  ;;  %v3139_v26 = vpop.f32.mrb[27].mxu0 }
 0x84d   : > { %v3140_v27 = vadd.f32 %v5195_v3, %v3139_v26 }
 0x84e   : > { %3212 = vst.msk [vmem:[%s5199_s18 + $0x18] sm:$0xff] %vm3208_vm1, %v3145_v25 }
 0x84f   : > { %3211 = vst.msk [vmem:[%s5199_s18 + $0x10] sm:$0xff] %vm3208_vm1, %v3140_v27  ;;  %v4083_v28 = vpop.f32.mrb[28].mxu0  ;;  %v4089_v29 = vpop.f32.mrb[24].mxu1 }
 0x850   : > { %v4471_v30 = vpop.eup %4470  ;;  %v3155_v31 = vadd.f32 %v4083_v28, %v5195_v3  ;;  %v3175_v32 = vadd.f32 %v4089_v29, %v5195_v3  ;;  %v3149_v34 = vpop.f32.mrb[29].mxu0 }
 0x851   : > { %v3169_v35 = vpop.f32.mrb[25].mxu1  ;;  %v2946_v36 = vadd.f32 1.0, %v4471_v30  ;;  %v3150_v37 = vadd.f32 %v5195_v3, %v3149_v34  ;;  %v4473_v39 = vpop.eup %4472 }
 0x852   : > { %v3170_v38 = vadd.f32 %v5195_v3, %v3169_v35  ;;  %3214 = vst.msk [vmem:[%s5199_s18 + $0x28] sm:$0xff] %vm3208_vm1, %v3155_v31  ;;  %3218 = vst.msk [vmem:[%s5199_s18 + $0x48] sm:$0xff] %vm3208_vm1, %v3175_v32  ;;  %v2945_v42 = vadd.f32 1.0, %v4473_v39  ;;  %v4475_v50 = vpop.eup %4474 }
 0x853   : > { %4478 = vrcp.f32 %v2946_v36  ;;  %3213 = vst.msk [vmem:[%s5199_s18 + $0x20] sm:$0xff] %vm3208_vm1, %v3150_v37  ;;  %v4086_v43 = vpop.f32.mrb[30].mxu0  ;;  %v4092_v33 = vpop.f32.mrb[26].mxu1  ;;  %v2963_v55 = vadd.f32 1.0, %v4475_v50 }
 0x854   : > { %3217 = vst.msk [vmem:[%s5199_s18 + $0x40] sm:$0xff] %vm3208_vm1, %v3170_v38  ;;  %v3165_v45 = vadd.f32 %v4086_v43, %v5195_v3  ;;  %v3185_v2 = vadd.f32 %v4092_v33, %v5195_v3  ;;  %v3159_v51 = vpop.f32.mrb[31].mxu0  ;;  %v3179_v41 = vpop.f32.mrb[27].mxu1  ;;  %4480 = vrcp.f32 %v2945_v42 }
 0x855   : > { %v3160_v56 = vadd.f32 %v5195_v3, %v3159_v51  ;;  %v3180_v44 = vadd.f32 %v5195_v3, %v3179_v41  ;;  %v4477_v48 = vpop.eup %4476  ;;  %4482 = vrcp.f32 %v2963_v55  ;;  %v3298_v23 = vld [vmem:[%s5199_s18 + $0x18] sm:$0xff] (%p4575_p5) }
 0x856   : > { %3216 = vst.msk [vmem:[%s5199_s18 + $0x38] sm:$0xff] %vm3208_vm1, %v3165_v45  ;;  %3220 = vst.msk [vmem:[%s5199_s18 + $0x58] sm:$0xff] %vm3208_vm1, %v3185_v2  ;;  %v2962_v58 = vadd.f32 1.0, %v4477_v48  ;;  %v3296_v22 = vld [vmem:[%s5199_s18 + $0x10] sm:$0xff] (%p4575_p5) }
 0x857   : > { %3215 = vst.msk [vmem:[%s5199_s18 + $0x30] sm:$0xff] %vm3208_vm1, %v3160_v56  ;;  %3219 = vst.msk [vmem:[%s5199_s18 + $0x50] sm:$0xff] %vm3208_vm1, %v3180_v44  ;;  %v4095_v40 = vpop.f32.mrb[28].mxu1 }
 0x858   : > { %v3195_v52 = vadd.f32 %v4095_v40, %v5195_v3  ;;  %v3189_v53 = vpop.f32.mrb[29].mxu1  ;;  %4484 = vrcp.f32 %v2962_v58  ;;  %3297 = vst [vmem:[%s3234_s26 + $0x20] sm:$0xff] (%p4575_p5), %v3296_v22  ;;  %3299 = vst [vmem:[%s3234_s26 + $0x28] sm:$0xff] (%p4575_p5), %v3298_v23 }
 0x859   : > { %v3190_v54 = vadd.f32 %v5195_v3, %v3189_v53  ;;  %v3302_v25 = vld [vmem:[%s5199_s18 + $0x28] sm:$0xff] (%p4575_p5) }
 0x85a   : > { %3222 = vst.msk [vmem:[%s5199_s18 + $0x68] sm:$0xff] %vm3208_vm1, %v3195_v52  ;;  %v3300_v24 = vld [vmem:[%s5199_s18 + $0x20] sm:$0xff] (%p4575_p5)  ;;  %3303 = vst [vmem:[%s3234_s26 + $0x48] sm:$0xff] (%p4575_p5), %v3302_v25  ;;  %v3310_v29 = vld [vmem:[%s5199_s18 + $0x48] sm:$0xff] (%p4575_p5) }
 0x85b   : > { %3221 = vst.msk [vmem:[%s5199_s18 + $0x60] sm:$0xff] %vm3208_vm1, %v3190_v54  ;;  %3301 = vst [vmem:[%s3234_s26 + $0x40] sm:$0xff] (%p4575_p5), %v3300_v24  ;;  %v3308_v28 = vld [vmem:[%s5199_s18 + $0x40] sm:$0xff] (%p4575_p5) }
 0x85c   : > { %3309 = vst [vmem:[%s3234_s26 + $0x80] sm:$0xff] (%p4575_p5), %v3308_v28  ;;  %3311 = vst [vmem:[%s3234_s26 + $0x88] sm:$0xff] (%p4575_p5), %v3310_v29 }
 0x85d   : > { %v4479_v60 = vpop.eup %4478  ;;  %v3306_v27 = vld [vmem:[%s5199_s18 + $0x38] sm:$0xff] (%p4575_p5) }
 0x85e   : > { %v2972_v62 = vmul.f32 %v4479_v60, %v2931_v59  ;;  %v4481_v1 = vpop.eup %4480  ;;  %v3304_v26 = vld [vmem:[%s5199_s18 + $0x30] sm:$0xff] (%p4575_p5)  ;;  %3307 = vst [vmem:[%s3234_s26 + $0x68] sm:$0xff] (%p4575_p5), %v3306_v27  ;;  %v3314_v31 = vld [vmem:[%s5199_s18 + $0x58] sm:$0xff] (%p4575_p5) }
 0x85f   : > { %v2971_v6 = vmul.f32 %v4481_v1, %v2926_v0  ;;  %v4483_v8 = vpop.eup %4482  ;;  %3305 = vst [vmem:[%s3234_s26 + $0x60] sm:$0xff] (%p4575_p5), %v3304_v26  ;;  %v3312_v30 = vld [vmem:[%s5199_s18 + $0x50] sm:$0xff] (%p4575_p5)  ;;  %3315 = vst [vmem:[%s3234_s26 + $0xa8] sm:$0xff] (%p4575_p5), %v3314_v31 }
 0x860   : > { %v2974_v5 = vadd.f32 %v3614_v57, %v2972_v62  ;;  %v2978_v10 = vsub.f32 1.0, %v4483_v8  ;;  %v2982_v12 = vmul.f32 %v4483_v8, %v5136_v63  ;;  %3313 = vst [vmem:[%s3234_s26 + $0xa0] sm:$0xff] (%p4575_p5), %v3312_v30 }
 0x861   : > { %v2973_v7 = vadd.f32 %v3613_v61, %v2971_v6  ;;  %v3318_v34 = vld [vmem:[%s5199_s18 + $0x68] sm:$0xff] (%p4575_p5) }
 0x862   : > { %4486 = vtanh.f32 %v2974_v5  ;;  %v4485_v9 = vpop.eup %4484  ;;  %v3316_v32 = vld [vmem:[%s5199_s18 + $0x60] sm:$0xff] (%p4575_p5)  ;;  %3319 = vst [vmem:[%s3234_s26 + $0xc8] sm:$0xff] (%p4575_p5), %v3318_v34 }
 0x863   : > { %4488 = vtanh.f32 %v2973_v7  ;;  %v2977_v13 = vsub.f32 1.0, %v4485_v9  ;;  %v2981_v4 = vmul.f32 %v4485_v9, %v5144_v46  ;;  %v3292_v46 = vld [vmem:[%s5199_s18] sm:$0xff] (%p4575_p5)  ;;  %3317 = vst [vmem:[%s3234_s26 + $0xc0] sm:$0xff] (%p4575_p5), %v3316_v32 }
 0x864   : > { %3293 = vst [vmem:[%s3234_s26] sm:$0xff] (%p4575_p5), %v3292_v46 }
 0x86c   : > { %v4487_v11 = vpop.eup %4486 }
 0x86d   : > { %v2980_v14 = vmul.f32 %v4487_v11, %v2978_v10  ;;  %v4489_v15 = vpop.eup %4488 }
 0x86e   : > { %v2979_v17 = vmul.f32 %v4489_v15, %v2977_v13 }
 0x86f   : > { %v2984_v16 = vadd.f32 %v2982_v12, %v2980_v14 }
 0x870   : > { %v2983_v18 = vadd.f32 %v2981_v4, %v2979_v17 }
 0x871   : > { %2987 = vst.msk [vmem:[#allocation2 + $0x78] sm:$0xff] %vm455_vm0, %v2984_v16 }
 0x872   : > { %2986 = vst.msk [vmem:[#allocation2 + $0x70] sm:$0xff] %vm455_vm0, %v2983_v18 }
 0x878   : > { %v3003_v19 = vld [vmem:[#allocation2 + $0x78] sm:$0xff] }
 0x879   : > { %v3002_v47 = vld [vmem:[#allocation2 + $0x70] sm:$0xff] }
 0x87a   : > { %4096 = vmatprep.mubr.msk.f32.mxu1 %vm455_vm0, %v3002_v47 }
 0x87b   : > { %4097 = vmatmul.mubr.msk.f32.gmra.mrb[30].mxu1 %vm455_vm0, %v3003_v19 }
 0x94c   : > { %3231 = sbr.rel (!%p4575_p5) target bundleno = 2395 (0x95b), region = 82 }
 0x94e   : > { %v4098_v63 = vpop.f32.mrb[30].mxu1 }
 0x94f   : > { %v3205_v49 = vadd.f32 %v4098_v63, %v5195_v3  ;;  %v3199_v20 = vpop.f32.mrb[31].mxu1 }
 0x950   : > { %v3200_v21 = vadd.f32 %v5195_v3, %v3199_v20  ;;  %v3294_v3 = vld [vmem:[%s5199_s18 + $0x8] sm:$0xff] (%p4575_p5) }
 0x951   : > { %3224 = vst.msk [vmem:[%s5199_s18 + $0x78] sm:$0xff] %vm3208_vm1, %v3205_v49  ;;  %3295 = vst [vmem:[%s3234_s26 + $0x8] sm:$0xff] (%p4575_p5), %v3294_v3 }
 0x952   : > { %3223 = vst.msk [vmem:[%s5199_s18 + $0x70] sm:$0xff] %vm3208_vm1, %v3200_v21 }
 0x958   : > { %v3322_v36 = vld [vmem:[%s5199_s18 + $0x78] sm:$0xff] }
 0x959   : > { %v3320_v35 = vld [vmem:[%s5199_s18 + $0x70] sm:$0xff]  ;;  %3323 = vst [vmem:[%s3234_s26 + $0xe8] sm:$0xff] %v3322_v36 }
 0x95a   : > { %3321 = vst [vmem:[%s3234_s26 + $0xe0] sm:$0xff] %v3320_v35 }
 0x95b PF: > { %p12_p10 = scmp.ge.s32.totalorder %s4562_s22, 4   ;;  %s5297_s18 = smov %s4508_s19 }
 0x95c   : > { %s5298_s19 = smov %s4573_s25  ;;  %s5299_s20 = smov %s4562_s22 }
 0x95d   :  { %14 = sbr.rel (!%p12_p10) target bundleno = 2 (0x2), region = 185 }

</bundles_post_ra>
